<compile_context>
chip_gen: v5e
topology: v5e:2x2
jax: 0.10.0
libtpu: 0.0.40
codegen_flags: <defaults>
</compile_context>

<pallas_src>
import functools

import jax
import jax.numpy as jnp
from jax.experimental import pallas as pl
from jax.experimental.pallas import tpu as pltpu


def _decoder_kernel(x_ref, w_ref, b_ref, o_ref, *, steps_per_block, num_batch,
                    num_in_ch):
    """One (time-step-block, pixel-row-block) tile of the per-step 1x1 conv.

    x_ref: (TS, B, C, TH, 128) VMEM  -- pixels on sublane+lane axes (dense)
    w_ref: (S*3*C,)            SMEM  -- per-step conv weights, [out, in] order
    b_ref: (S*3,)              SMEM  -- per-step biases
    o_ref: (TS, B, 3, TH, 128) VMEM
    """
    s0 = pl.program_id(0) * steps_per_block
    for ls in range(steps_per_block):          # static unroll (TS small)
        s = s0 + ls
        w_base = s * (3 * num_in_ch)
        b_base = s * 3
        # Hoist all scalar SMEM reads for this step out of the batch loop.
        w = [[w_ref[w_base + o * num_in_ch + c] for c in range(num_in_ch)]
             for o in range(3)]
        bias = [b_ref[b_base + o] for o in range(3)]
        for b in range(num_batch):             # B small & static -> unrolled
            xs = [x_ref[ls, b, c] for c in range(num_in_ch)]  # (TH, 128) slabs
            for o in range(3):
                # out_o = sum_c w[o,c] * x[c] + bias[o]   (full-vreg VPU FMAs)
                acc = xs[0] * w[o][0]
                for c in range(1, num_in_ch):
                    acc = acc + xs[c] * w[o][c]
                # Dense (TH, 128) store, one per output channel (no concat).
                o_ref[ls, b, o] = acc + bias[o]


def _choose_tiles(S, B, C, HR, cap_bytes=3 << 20):
    """Pick (TS, TH): time steps and 128-pixel rows per block.

    Keeps combined in+out block bytes under `cap_bytes` so default double
    buffering fits every generation's scoped VMEM (v5e 16 MiB, v6e/v7x 32 MiB).
    """
    def block_bytes(ts, th):
        th_pad = -(-th // 8) * 8          # sublane padding per (th,128) slab
        return ts * B * (C + 3) * th_pad * 128 * 4

    # (1) Fully collapse the grid when the whole problem fits one small block.
    if block_bytes(S, HR) <= cap_bytes:
        return S, HR
    # (2) One time step per block; full pixel extent if it fits (or is tiny).
    if HR < 16 or block_bytes(1, HR) <= cap_bytes:
        return 1, HR
    # (3) Tile pixel rows: multiple of 8 (full vreg sublanes), >= 2 blocks so
    #     v7x megacore can shard the axis, capped by VMEM budget.
    rows_cap = max(8, (cap_bytes // (B * (C + 3) * 128 * 4)) // 8 * 8)
    th = min(rows_cap, max(8, (HR // 2) // 8 * 8))
    return 1, th


def decoder_forward(x_steps, weights, biases):
    """Pallas forward pass of the per-step 1x1 convs.

    Args:
      x_steps: (S, B, C, H, W) float32 -- stacked per-step NCHW inputs.
      weights: (S, 3, C)       float32 -- per-step Conv2d(1x1) weights
                                          (PyTorch [out_ch, in_ch] layout).
      biases:  (S, 3)          float32 -- per-step biases.
    Returns:
      (S, B, 3, H, W) float32 -- out[i] == conv_i(x_steps[i]) (PyTorch list
      semantics, stacked).
    """
    S, B, C, H, W = x_steps.shape
    HW = H * W
    pad = (-HW) % 128                      # pad pixel axis to a 128 multiple
    x = x_steps.reshape(S, B, C, HW)       # free view of contiguous NCHW
    if pad:
        x = jnp.pad(x, ((0, 0), (0, 0), (0, 0), (0, pad)))
    HWp = HW + pad
    HR = HWp // 128                        # pixel rows of 128 lanes
    x = x.reshape(S, B, C, HR, 128)        # pixels on sublane + lane axes

    w_flat = weights.reshape(S * 3 * C).astype(jnp.float32)
    b_flat = biases.reshape(S * 3).astype(jnp.float32)

    TS, TH = _choose_tiles(S, B, C, HR)
    grid = (pl.cdiv(S, TS), pl.cdiv(HR, TH))

    kernel = functools.partial(
        _decoder_kernel, steps_per_block=TS, num_batch=B, num_in_ch=C)

    bytes_accessed = (x.size + w_flat.size + b_flat.size + S * B * 3 * HWp) * 4

    out = pl.pallas_call(
        kernel,
        out_shape=jax.ShapeDtypeStruct((S, B, 3, HR, 128), jnp.float32),
        grid_spec=pltpu.PrefetchScalarGridSpec(
            num_scalar_prefetch=0,
            grid=grid,
            in_specs=[
                # Dense pixel-tiled input block; S/B/C folded into the block.
                pl.BlockSpec((TS, B, C, TH, 128),
                             lambda si, mi: (si, 0, 0, mi, 0)),
                # Tiny parameter tables stay resident in SMEM for the call.
                pl.BlockSpec(memory_space=pltpu.MemorySpace.SMEM),
                pl.BlockSpec(memory_space=pltpu.MemorySpace.SMEM),
            ],
            out_specs=pl.BlockSpec((TS, B, 3, TH, 128),
                                   lambda si, mi: (si, 0, 0, mi, 0)),
        ),
        compiler_params=pltpu.CompilerParams(
            dimension_semantics=("parallel", "parallel"),
        ),
        cost_estimate=pl.CostEstimate(
            flops=2 * S * B * 3 * C * HWp,
            transcendentals=0,
            bytes_accessed=bytes_accessed,
        ),
    )(x, w_flat, b_flat)

    out = out.reshape(S, B, 3, HWp)
    if pad:
        out = out[..., :HW]
    return out.reshape(S, B, 3, H, W)      # PyTorch NCHW layout per step


def init_decoder_params(key, num_step, num_channel):
    """Deterministic init mimicking nn.Conv2d defaults (uniform +-1/sqrt(fan_in))."""
    kw, kb = jax.random.split(key)
    bound = 1.0 / jnp.sqrt(float(num_channel))  # 1x1 kernel -> fan_in = C
    weights = jax.random.uniform(
        kw, (num_step, 3, num_channel), minval=-bound, maxval=bound,
        dtype=jnp.float32)
    biases = jax.random.uniform(
        kb, (num_step, 3), minval=-bound, maxval=bound, dtype=jnp.float32)
    return weights, biases


def decoder_reference(x_steps, weights, biases):
    """Pure-JAX reference (per-step 1x1 conv as einsum), stacked output."""
    out = jnp.einsum("sbchw,soc->sbohw", x_steps, weights)
    return out + biases[:, None, :, None, None]


if __name__ == "__main__":
    num_step = 8       # sequence length / number of conv layers
    num_channel = 4    # input channels per step
    B, H, W = 2, 16, 16

    key = jax.random.PRNGKey(0)
    k_x, k_p = jax.random.split(key)

    # Stacked per-step NCHW inputs: input[i] == x_steps[i] of shape (B, C, H, W)
    x_steps = jax.random.normal(
        k_x, (num_step, B, num_channel, H, W), dtype=jnp.float32)

    weights, biases = init_decoder_params(k_p, num_step, num_channel)

    out = decoder_forward(x_steps, weights, biases)
    out = jax.block_until_ready(out)

    ref = decoder_reference(x_steps, weights, biases)
    assert out.shape == (num_step, B, 3, H, W)
    assert jnp.allclose(out, ref, atol=1e-5, rtol=1e-5)

    print("KERNEL_OK")
</pallas_src>

<mosaic_0001>
module attributes {stable_mosaic.version = 11 : i64} {
  func.func @_decoder_kernel(%arg0: i32, %arg1: i32, %arg2: memref<8x2x4x2x128xf32, #tpu.memory_space<vmem>>, %arg3: memref<96xf32, #tpu.memory_space<smem>>, %arg4: memref<24xf32, #tpu.memory_space<smem>>, %arg5: memref<8x2x3x2x128xf32, #tpu.memory_space<vmem>>) attributes {dimension_semantics = [#tpu.dimension_semantics<parallel>, #tpu.dimension_semantics<parallel>], iteration_bounds = array<i64: 1, 1>, scalar_prefetch = 0 : i64, scratch_operands = 0 : i64, tpu.core_type = #tpu.core_type<tc>, window_params = [{transform_indices = @transform_0, window_bounds = array<i64: 8, 2, 4, 2, 128>}, {transform_indices = @transform_1, window_bounds = array<i64: 96>}, {transform_indices = @transform_2, window_bounds = array<i64: 24>}, {transform_indices = @transform_3, window_bounds = array<i64: 8, 2, 3, 2, 128>}]} {
    %c8_i32 = arith.constant 8 : i32
    %0 = arith.muli %arg0, %c8_i32 : i32
    %c0_i32 = arith.constant 0 : i32
    %1 = arith.addi %0, %c0_i32 : i32
    %c12_i32 = arith.constant 12 : i32
    %2 = arith.muli %1, %c12_i32 : i32
    %c3_i32 = arith.constant 3 : i32
    %3 = arith.muli %1, %c3_i32 : i32
    %c0_i32_0 = arith.constant 0 : i32
    %4 = arith.addi %2, %c0_i32_0 : i32
    %c0_i32_1 = arith.constant 0 : i32
    %5 = arith.addi %4, %c0_i32_1 : i32
    %6 = arith.index_cast %5 : i32 to index
    %7 = memref.load %arg3[%6] : memref<96xf32, #tpu.memory_space<smem>>
    %c0_i32_2 = arith.constant 0 : i32
    %8 = arith.addi %2, %c0_i32_2 : i32
    %c1_i32 = arith.constant 1 : i32
    %9 = arith.addi %8, %c1_i32 : i32
    %10 = arith.index_cast %9 : i32 to index
    %11 = memref.load %arg3[%10] : memref<96xf32, #tpu.memory_space<smem>>
    %c0_i32_3 = arith.constant 0 : i32
    %12 = arith.addi %2, %c0_i32_3 : i32
    %c2_i32 = arith.constant 2 : i32
    %13 = arith.addi %12, %c2_i32 : i32
    %14 = arith.index_cast %13 : i32 to index
    %15 = memref.load %arg3[%14] : memref<96xf32, #tpu.memory_space<smem>>
    %c0_i32_4 = arith.constant 0 : i32
    %16 = arith.addi %2, %c0_i32_4 : i32
    %c3_i32_5 = arith.constant 3 : i32
    %17 = arith.addi %16, %c3_i32_5 : i32
    %18 = arith.index_cast %17 : i32 to index
    %19 = memref.load %arg3[%18] : memref<96xf32, #tpu.memory_space<smem>>
    %c4_i32 = arith.constant 4 : i32
    %20 = arith.addi %2, %c4_i32 : i32
    %c0_i32_6 = arith.constant 0 : i32
    %21 = arith.addi %20, %c0_i32_6 : i32
    %22 = arith.index_cast %21 : i32 to index
    %23 = memref.load %arg3[%22] : memref<96xf32, #tpu.memory_space<smem>>
    %c4_i32_7 = arith.constant 4 : i32
    %24 = arith.addi %2, %c4_i32_7 : i32
    %c1_i32_8 = arith.constant 1 : i32
    %25 = arith.addi %24, %c1_i32_8 : i32
    %26 = arith.index_cast %25 : i32 to index
    %27 = memref.load %arg3[%26] : memref<96xf32, #tpu.memory_space<smem>>
    %c4_i32_9 = arith.constant 4 : i32
    %28 = arith.addi %2, %c4_i32_9 : i32
    %c2_i32_10 = arith.constant 2 : i32
    %29 = arith.addi %28, %c2_i32_10 : i32
    %30 = arith.index_cast %29 : i32 to index
    %31 = memref.load %arg3[%30] : memref<96xf32, #tpu.memory_space<smem>>
    %c4_i32_11 = arith.constant 4 : i32
    %32 = arith.addi %2, %c4_i32_11 : i32
    %c3_i32_12 = arith.constant 3 : i32
    %33 = arith.addi %32, %c3_i32_12 : i32
    %34 = arith.index_cast %33 : i32 to index
    %35 = memref.load %arg3[%34] : memref<96xf32, #tpu.memory_space<smem>>
    %c8_i32_13 = arith.constant 8 : i32
    %36 = arith.addi %2, %c8_i32_13 : i32
    %c0_i32_14 = arith.constant 0 : i32
    %37 = arith.addi %36, %c0_i32_14 : i32
    %38 = arith.index_cast %37 : i32 to index
    %39 = memref.load %arg3[%38] : memref<96xf32, #tpu.memory_space<smem>>
    %c8_i32_15 = arith.constant 8 : i32
    %40 = arith.addi %2, %c8_i32_15 : i32
    %c1_i32_16 = arith.constant 1 : i32
    %41 = arith.addi %40, %c1_i32_16 : i32
    %42 = arith.index_cast %41 : i32 to index
    %43 = memref.load %arg3[%42] : memref<96xf32, #tpu.memory_space<smem>>
    %c8_i32_17 = arith.constant 8 : i32
    %44 = arith.addi %2, %c8_i32_17 : i32
    %c2_i32_18 = arith.constant 2 : i32
    %45 = arith.addi %44, %c2_i32_18 : i32
    %46 = arith.index_cast %45 : i32 to index
    %47 = memref.load %arg3[%46] : memref<96xf32, #tpu.memory_space<smem>>
    %c8_i32_19 = arith.constant 8 : i32
    %48 = arith.addi %2, %c8_i32_19 : i32
    %c3_i32_20 = arith.constant 3 : i32
    %49 = arith.addi %48, %c3_i32_20 : i32
    %50 = arith.index_cast %49 : i32 to index
    %51 = memref.load %arg3[%50] : memref<96xf32, #tpu.memory_space<smem>>
    %c0_i32_21 = arith.constant 0 : i32
    %52 = arith.addi %3, %c0_i32_21 : i32
    %53 = arith.index_cast %52 : i32 to index
    %54 = memref.load %arg4[%53] : memref<24xf32, #tpu.memory_space<smem>>
    %c1_i32_22 = arith.constant 1 : i32
    %55 = arith.addi %3, %c1_i32_22 : i32
    %56 = arith.index_cast %55 : i32 to index
    %57 = memref.load %arg4[%56] : memref<24xf32, #tpu.memory_space<smem>>
    %c2_i32_23 = arith.constant 2 : i32
    %58 = arith.addi %3, %c2_i32_23 : i32
    %59 = arith.index_cast %58 : i32 to index
    %60 = memref.load %arg4[%59] : memref<24xf32, #tpu.memory_space<smem>>
    %c0 = arith.constant 0 : index
    %c0_24 = arith.constant 0 : index
    %c0_25 = arith.constant 0 : index
    %c0_26 = arith.constant 0 : index
    %c0_27 = arith.constant 0 : index
    %61 = vector.load %arg2[%c0, %c0_24, %c0_25, %c0_26, %c0_27] : memref<8x2x4x2x128xf32, #tpu.memory_space<vmem>>, vector<1x1x1x2x128xf32>
    %62 = vector.shape_cast %61 : vector<1x1x1x2x128xf32> to vector<2x128xf32>
    %c0_28 = arith.constant 0 : index
    %c0_29 = arith.constant 0 : index
    %c1 = arith.constant 1 : index
    %c0_30 = arith.constant 0 : index
    %c0_31 = arith.constant 0 : index
    %63 = vector.load %arg2[%c0_28, %c0_29, %c1, %c0_30, %c0_31] : memref<8x2x4x2x128xf32, #tpu.memory_space<vmem>>, vector<1x1x1x2x128xf32>
    %64 = vector.shape_cast %63 : vector<1x1x1x2x128xf32> to vector<2x128xf32>
    %c0_32 = arith.constant 0 : index
    %c0_33 = arith.constant 0 : index
    %c2 = arith.constant 2 : index
    %c0_34 = arith.constant 0 : index
    %c0_35 = arith.constant 0 : index
    %65 = vector.load %arg2[%c0_32, %c0_33, %c2, %c0_34, %c0_35] : memref<8x2x4x2x128xf32, #tpu.memory_space<vmem>>, vector<1x1x1x2x128xf32>
    %66 = vector.shape_cast %65 : vector<1x1x1x2x128xf32> to vector<2x128xf32>
    %c0_36 = arith.constant 0 : index
    %c0_37 = arith.constant 0 : index
    %c3 = arith.constant 3 : index
    %c0_38 = arith.constant 0 : index
    %c0_39 = arith.constant 0 : index
    %67 = vector.load %arg2[%c0_36, %c0_37, %c3, %c0_38, %c0_39] : memref<8x2x4x2x128xf32, #tpu.memory_space<vmem>>, vector<1x1x1x2x128xf32>
    %68 = vector.shape_cast %67 : vector<1x1x1x2x128xf32> to vector<2x128xf32>
    %69 = vector.broadcast %7 : f32 to vector<2x128xf32>
    %70 = arith.mulf %62, %69 : vector<2x128xf32>
    %71 = vector.broadcast %11 : f32 to vector<2x128xf32>
    %72 = arith.mulf %64, %71 : vector<2x128xf32>
    %73 = arith.addf %70, %72 : vector<2x128xf32>
    %74 = vector.broadcast %15 : f32 to vector<2x128xf32>
    %75 = arith.mulf %66, %74 : vector<2x128xf32>
    %76 = arith.addf %73, %75 : vector<2x128xf32>
    %77 = vector.broadcast %19 : f32 to vector<2x128xf32>
    %78 = arith.mulf %68, %77 : vector<2x128xf32>
    %79 = arith.addf %76, %78 : vector<2x128xf32>
    %80 = vector.broadcast %54 : f32 to vector<2x128xf32>
    %81 = arith.addf %79, %80 : vector<2x128xf32>
    %c0_40 = arith.constant 0 : index
    %c0_41 = arith.constant 0 : index
    %c0_42 = arith.constant 0 : index
    %c0_43 = arith.constant 0 : index
    %c0_44 = arith.constant 0 : index
    %82 = vector.load %arg5[%c0_40, %c0_41, %c0_42, %c0_43, %c0_44] : memref<8x2x3x2x128xf32, #tpu.memory_space<vmem>>, vector<1x1x1x2x128xf32>
    %83 = vector.shape_cast %82 : vector<1x1x1x2x128xf32> to vector<2x128xf32>
    %84 = vector.shape_cast %81 : vector<2x128xf32> to vector<1x1x1x2x128xf32>
    tpu.vector_store %arg5[%c0_40, %c0_41, %c0_42, %c0_43, %c0_44], %84 {strides = array<i32>} : memref<8x2x3x2x128xf32, #tpu.memory_space<vmem>>, vector<1x1x1x2x128xf32>,
    %85 = vector.broadcast %23 : f32 to vector<2x128xf32>
    %86 = arith.mulf %62, %85 : vector<2x128xf32>
    %87 = vector.broadcast %27 : f32 to vector<2x128xf32>
    %88 = arith.mulf %64, %87 : vector<2x128xf32>
    %89 = arith.addf %86, %88 : vector<2x128xf32>
    %90 = vector.broadcast %31 : f32 to vector<2x128xf32>
    %91 = arith.mulf %66, %90 : vector<2x128xf32>
    %92 = arith.addf %89, %91 : vector<2x128xf32>
    %93 = vector.broadcast %35 : f32 to vector<2x128xf32>
    %94 = arith.mulf %68, %93 : vector<2x128xf32>
    %95 = arith.addf %92, %94 : vector<2x128xf32>
    %96 = vector.broadcast %57 : f32 to vector<2x128xf32>
    %97 = arith.addf %95, %96 : vector<2x128xf32>
    %c0_45 = arith.constant 0 : index
    %c0_46 = arith.constant 0 : index
    %c1_47 = arith.constant 1 : index
    %c0_48 = arith.constant 0 : index
    %c0_49 = arith.constant 0 : index
    %98 = vector.load %arg5[%c0_45, %c0_46, %c1_47, %c0_48, %c0_49] : memref<8x2x3x2x128xf32, #tpu.memory_space<vmem>>, vector<1x1x1x2x128xf32>
    %99 = vector.shape_cast %98 : vector<1x1x1x2x128xf32> to vector<2x128xf32>
    %100 = vector.shape_cast %97 : vector<2x128xf32> to vector<1x1x1x2x128xf32>
    tpu.vector_store %arg5[%c0_45, %c0_46, %c1_47, %c0_48, %c0_49], %100 {strides = array<i32>} : memref<8x2x3x2x128xf32, #tpu.memory_space<vmem>>, vector<1x1x1x2x128xf32>,
    %101 = vector.broadcast %39 : f32 to vector<2x128xf32>
    %102 = arith.mulf %62, %101 : vector<2x128xf32>
    %103 = vector.broadcast %43 : f32 to vector<2x128xf32>
    %104 = arith.mulf %64, %103 : vector<2x128xf32>
    %105 = arith.addf %102, %104 : vector<2x128xf32>
    %106 = vector.broadcast %47 : f32 to vector<2x128xf32>
    %107 = arith.mulf %66, %106 : vector<2x128xf32>
    %108 = arith.addf %105, %107 : vector<2x128xf32>
    %109 = vector.broadcast %51 : f32 to vector<2x128xf32>
    %110 = arith.mulf %68, %109 : vector<2x128xf32>
    %111 = arith.addf %108, %110 : vector<2x128xf32>
    %112 = vector.broadcast %60 : f32 to vector<2x128xf32>
    %113 = arith.addf %111, %112 : vector<2x128xf32>
    %c0_50 = arith.constant 0 : index
    %c0_51 = arith.constant 0 : index
    %c2_52 = arith.constant 2 : index
    %c0_53 = arith.constant 0 : index
    %c0_54 = arith.constant 0 : index
    %114 = vector.load %arg5[%c0_50, %c0_51, %c2_52, %c0_53, %c0_54] : memref<8x2x3x2x128xf32, #tpu.memory_space<vmem>>, vector<1x1x1x2x128xf32>
    %115 = vector.shape_cast %114 : vector<1x1x1x2x128xf32> to vector<2x128xf32>
    %116 = vector.shape_cast %113 : vector<2x128xf32> to vector<1x1x1x2x128xf32>
    tpu.vector_store %arg5[%c0_50, %c0_51, %c2_52, %c0_53, %c0_54], %116 {strides = array<i32>} : memref<8x2x3x2x128xf32, #tpu.memory_space<vmem>>, vector<1x1x1x2x128xf32>,
    %c0_55 = arith.constant 0 : index
    %c1_56 = arith.constant 1 : index
    %c0_57 = arith.constant 0 : index
    %c0_58 = arith.constant 0 : index
    %c0_59 = arith.constant 0 : index
    %117 = vector.load %arg2[%c0_55, %c1_56, %c0_57, %c0_58, %c0_59] : memref<8x2x4x2x128xf32, #tpu.memory_space<vmem>>, vector<1x1x1x2x128xf32>
    %118 = vector.shape_cast %117 : vector<1x1x1x2x128xf32> to vector<2x128xf32>
    %c0_60 = arith.constant 0 : index
    %c1_61 = arith.constant 1 : index
    %c1_62 = arith.constant 1 : index
    %c0_63 = arith.constant 0 : index
    %c0_64 = arith.constant 0 : index
    %119 = vector.load %arg2[%c0_60, %c1_61, %c1_62, %c0_63, %c0_64] : memref<8x2x4x2x128xf32, #tpu.memory_space<vmem>>, vector<1x1x1x2x128xf32>
    %120 = vector.shape_cast %119 : vector<1x1x1x2x128xf32> to vector<2x128xf32>
    %c0_65 = arith.constant 0 : index
    %c1_66 = arith.constant 1 : index
    %c2_67 = arith.constant 2 : index
    %c0_68 = arith.constant 0 : index
    %c0_69 = arith.constant 0 : index
    %121 = vector.load %arg2[%c0_65, %c1_66, %c2_67, %c0_68, %c0_69] : memref<8x2x4x2x128xf32, #tpu.memory_space<vmem>>, vector<1x1x1x2x128xf32>
    %122 = vector.shape_cast %121 : vector<1x1x1x2x128xf32> to vector<2x128xf32>
    %c0_70 = arith.constant 0 : index
    %c1_71 = arith.constant 1 : index
    %c3_72 = arith.constant 3 : index
    %c0_73 = arith.constant 0 : index
    %c0_74 = arith.constant 0 : index
    %123 = vector.load %arg2[%c0_70, %c1_71, %c3_72, %c0_73, %c0_74] : memref<8x2x4x2x128xf32, #tpu.memory_space<vmem>>, vector<1x1x1x2x128xf32>
    %124 = vector.shape_cast %123 : vector<1x1x1x2x128xf32> to vector<2x128xf32>
    %125 = vector.broadcast %7 : f32 to vector<2x128xf32>
    %126 = arith.mulf %118, %125 : vector<2x128xf32>
    %127 = vector.broadcast %11 : f32 to vector<2x128xf32>
    %128 = arith.mulf %120, %127 : vector<2x128xf32>
    %129 = arith.addf %126, %128 : vector<2x128xf32>
    %130 = vector.broadcast %15 : f32 to vector<2x128xf32>
    %131 = arith.mulf %122, %130 : vector<2x128xf32>
    %132 = arith.addf %129, %131 : vector<2x128xf32>
    %133 = vector.broadcast %19 : f32 to vector<2x128xf32>
    %134 = arith.mulf %124, %133 : vector<2x128xf32>
    %135 = arith.addf %132, %134 : vector<2x128xf32>
    %136 = vector.broadcast %54 : f32 to vector<2x128xf32>
    %137 = arith.addf %135, %136 : vector<2x128xf32>
    %c0_75 = arith.constant 0 : index
    %c1_76 = arith.constant 1 : index
    %c0_77 = arith.constant 0 : index
    %c0_78 = arith.constant 0 : index
    %c0_79 = arith.constant 0 : index
    %138 = vector.load %arg5[%c0_75, %c1_76, %c0_77, %c0_78, %c0_79] : memref<8x2x3x2x128xf32, #tpu.memory_space<vmem>>, vector<1x1x1x2x128xf32>
    %139 = vector.shape_cast %138 : vector<1x1x1x2x128xf32> to vector<2x128xf32>
    %140 = vector.shape_cast %137 : vector<2x128xf32> to vector<1x1x1x2x128xf32>
    tpu.vector_store %arg5[%c0_75, %c1_76, %c0_77, %c0_78, %c0_79], %140 {strides = array<i32>} : memref<8x2x3x2x128xf32, #tpu.memory_space<vmem>>, vector<1x1x1x2x128xf32>,
    %141 = vector.broadcast %23 : f32 to vector<2x128xf32>
    %142 = arith.mulf %118, %141 : vector<2x128xf32>
    %143 = vector.broadcast %27 : f32 to vector<2x128xf32>
    %144 = arith.mulf %120, %143 : vector<2x128xf32>
    %145 = arith.addf %142, %144 : vector<2x128xf32>
    %146 = vector.broadcast %31 : f32 to vector<2x128xf32>
    %147 = arith.mulf %122, %146 : vector<2x128xf32>
    %148 = arith.addf %145, %147 : vector<2x128xf32>
    %149 = vector.broadcast %35 : f32 to vector<2x128xf32>
    %150 = arith.mulf %124, %149 : vector<2x128xf32>
    %151 = arith.addf %148, %150 : vector<2x128xf32>
    %152 = vector.broadcast %57 : f32 to vector<2x128xf32>
    %153 = arith.addf %151, %152 : vector<2x128xf32>
    %c0_80 = arith.constant 0 : index
    %c1_81 = arith.constant 1 : index
    %c1_82 = arith.constant 1 : index
    %c0_83 = arith.constant 0 : index
    %c0_84 = arith.constant 0 : index
    %154 = vector.load %arg5[%c0_80, %c1_81, %c1_82, %c0_83, %c0_84] : memref<8x2x3x2x128xf32, #tpu.memory_space<vmem>>, vector<1x1x1x2x128xf32>
    %155 = vector.shape_cast %154 : vector<1x1x1x2x128xf32> to vector<2x128xf32>
    %156 = vector.shape_cast %153 : vector<2x128xf32> to vector<1x1x1x2x128xf32>
    tpu.vector_store %arg5[%c0_80, %c1_81, %c1_82, %c0_83, %c0_84], %156 {strides = array<i32>} : memref<8x2x3x2x128xf32, #tpu.memory_space<vmem>>, vector<1x1x1x2x128xf32>,
    %157 = vector.broadcast %39 : f32 to vector<2x128xf32>
    %158 = arith.mulf %118, %157 : vector<2x128xf32>
    %159 = vector.broadcast %43 : f32 to vector<2x128xf32>
    %160 = arith.mulf %120, %159 : vector<2x128xf32>
    %161 = arith.addf %158, %160 : vector<2x128xf32>
    %162 = vector.broadcast %47 : f32 to vector<2x128xf32>
    %163 = arith.mulf %122, %162 : vector<2x128xf32>
    %164 = arith.addf %161, %163 : vector<2x128xf32>
    %165 = vector.broadcast %51 : f32 to vector<2x128xf32>
    %166 = arith.mulf %124, %165 : vector<2x128xf32>
    %167 = arith.addf %164, %166 : vector<2x128xf32>
    %168 = vector.broadcast %60 : f32 to vector<2x128xf32>
    %169 = arith.addf %167, %168 : vector<2x128xf32>
    %c0_85 = arith.constant 0 : index
    %c1_86 = arith.constant 1 : index
    %c2_87 = arith.constant 2 : index
    %c0_88 = arith.constant 0 : index
    %c0_89 = arith.constant 0 : index
    %170 = vector.load %arg5[%c0_85, %c1_86, %c2_87, %c0_88, %c0_89] : memref<8x2x3x2x128xf32, #tpu.memory_space<vmem>>, vector<1x1x1x2x128xf32>
    %171 = vector.shape_cast %170 : vector<1x1x1x2x128xf32> to vector<2x128xf32>
    %172 = vector.shape_cast %169 : vector<2x128xf32> to vector<1x1x1x2x128xf32>
    tpu.vector_store %arg5[%c0_85, %c1_86, %c2_87, %c0_88, %c0_89], %172 {strides = array<i32>} : memref<8x2x3x2x128xf32, #tpu.memory_space<vmem>>, vector<1x1x1x2x128xf32>,
    %c1_i32_90 = arith.constant 1 : i32
    %173 = arith.addi %0, %c1_i32_90 : i32
    %c12_i32_91 = arith.constant 12 : i32
    %174 = arith.muli %173, %c12_i32_91 : i32
    %c3_i32_92 = arith.constant 3 : i32
    %175 = arith.muli %173, %c3_i32_92 : i32
    %c0_i32_93 = arith.constant 0 : i32
    %176 = arith.addi %174, %c0_i32_93 : i32
    %c0_i32_94 = arith.constant 0 : i32
    %177 = arith.addi %176, %c0_i32_94 : i32
    %178 = arith.index_cast %177 : i32 to index
    %179 = memref.load %arg3[%178] : memref<96xf32, #tpu.memory_space<smem>>
    %c0_i32_95 = arith.constant 0 : i32
    %180 = arith.addi %174, %c0_i32_95 : i32
    %c1_i32_96 = arith.constant 1 : i32
    %181 = arith.addi %180, %c1_i32_96 : i32
    %182 = arith.index_cast %181 : i32 to index
    %183 = memref.load %arg3[%182] : memref<96xf32, #tpu.memory_space<smem>>
    %c0_i32_97 = arith.constant 0 : i32
    %184 = arith.addi %174, %c0_i32_97 : i32
    %c2_i32_98 = arith.constant 2 : i32
    %185 = arith.addi %184, %c2_i32_98 : i32
    %186 = arith.index_cast %185 : i32 to index
    %187 = memref.load %arg3[%186] : memref<96xf32, #tpu.memory_space<smem>>
    %c0_i32_99 = arith.constant 0 : i32
    %188 = arith.addi %174, %c0_i32_99 : i32
    %c3_i32_100 = arith.constant 3 : i32
    %189 = arith.addi %188, %c3_i32_100 : i32
    %190 = arith.index_cast %189 : i32 to index
    %191 = memref.load %arg3[%190] : memref<96xf32, #tpu.memory_space<smem>>
    %c4_i32_101 = arith.constant 4 : i32
    %192 = arith.addi %174, %c4_i32_101 : i32
    %c0_i32_102 = arith.constant 0 : i32
    %193 = arith.addi %192, %c0_i32_102 : i32
    %194 = arith.index_cast %193 : i32 to index
    %195 = memref.load %arg3[%194] : memref<96xf32, #tpu.memory_space<smem>>
    %c4_i32_103 = arith.constant 4 : i32
    %196 = arith.addi %174, %c4_i32_103 : i32
    %c1_i32_104 = arith.constant 1 : i32
    %197 = arith.addi %196, %c1_i32_104 : i32
    %198 = arith.index_cast %197 : i32 to index
    %199 = memref.load %arg3[%198] : memref<96xf32, #tpu.memory_space<smem>>
    %c4_i32_105 = arith.constant 4 : i32
    %200 = arith.addi %174, %c4_i32_105 : i32
    %c2_i32_106 = arith.constant 2 : i32
    %201 = arith.addi %200, %c2_i32_106 : i32
    %202 = arith.index_cast %201 : i32 to index
    %203 = memref.load %arg3[%202] : memref<96xf32, #tpu.memory_space<smem>>
    %c4_i32_107 = arith.constant 4 : i32
    %204 = arith.addi %174, %c4_i32_107 : i32
    %c3_i32_108 = arith.constant 3 : i32
    %205 = arith.addi %204, %c3_i32_108 : i32
    %206 = arith.index_cast %205 : i32 to index
    %207 = memref.load %arg3[%206] : memref<96xf32, #tpu.memory_space<smem>>
    %c8_i32_109 = arith.constant 8 : i32
    %208 = arith.addi %174, %c8_i32_109 : i32
    %c0_i32_110 = arith.constant 0 : i32
    %209 = arith.addi %208, %c0_i32_110 : i32
    %210 = arith.index_cast %209 : i32 to index
    %211 = memref.load %arg3[%210] : memref<96xf32, #tpu.memory_space<smem>>
    %c8_i32_111 = arith.constant 8 : i32
    %212 = arith.addi %174, %c8_i32_111 : i32
    %c1_i32_112 = arith.constant 1 : i32
    %213 = arith.addi %212, %c1_i32_112 : i32
    %214 = arith.index_cast %213 : i32 to index
    %215 = memref.load %arg3[%214] : memref<96xf32, #tpu.memory_space<smem>>
    %c8_i32_113 = arith.constant 8 : i32
    %216 = arith.addi %174, %c8_i32_113 : i32
    %c2_i32_114 = arith.constant 2 : i32
    %217 = arith.addi %216, %c2_i32_114 : i32
    %218 = arith.index_cast %217 : i32 to index
    %219 = memref.load %arg3[%218] : memref<96xf32, #tpu.memory_space<smem>>
    %c8_i32_115 = arith.constant 8 : i32
    %220 = arith.addi %174, %c8_i32_115 : i32
    %c3_i32_116 = arith.constant 3 : i32
    %221 = arith.addi %220, %c3_i32_116 : i32
    %222 = arith.index_cast %221 : i32 to index
    %223 = memref.load %arg3[%222] : memref<96xf32, #tpu.memory_space<smem>>
    %c0_i32_117 = arith.constant 0 : i32
    %224 = arith.addi %175, %c0_i32_117 : i32
    %225 = arith.index_cast %224 : i32 to index
    %226 = memref.load %arg4[%225] : memref<24xf32, #tpu.memory_space<smem>>
    %c1_i32_118 = arith.constant 1 : i32
    %227 = arith.addi %175, %c1_i32_118 : i32
    %228 = arith.index_cast %227 : i32 to index
    %229 = memref.load %arg4[%228] : memref<24xf32, #tpu.memory_space<smem>>
    %c2_i32_119 = arith.constant 2 : i32
    %230 = arith.addi %175, %c2_i32_119 : i32
    %231 = arith.index_cast %230 : i32 to index
    %232 = memref.load %arg4[%231] : memref<24xf32, #tpu.memory_space<smem>>
    %c1_120 = arith.constant 1 : index
    %c0_121 = arith.constant 0 : index
    %c0_122 = arith.constant 0 : index
    %c0_123 = arith.constant 0 : index
    %c0_124 = arith.constant 0 : index
    %233 = vector.load %arg2[%c1_120, %c0_121, %c0_122, %c0_123, %c0_124] : memref<8x2x4x2x128xf32, #tpu.memory_space<vmem>>, vector<1x1x1x2x128xf32>
    %234 = vector.shape_cast %233 : vector<1x1x1x2x128xf32> to vector<2x128xf32>
    %c1_125 = arith.constant 1 : index
    %c0_126 = arith.constant 0 : index
    %c1_127 = arith.constant 1 : index
    %c0_128 = arith.constant 0 : index
    %c0_129 = arith.constant 0 : index
    %235 = vector.load %arg2[%c1_125, %c0_126, %c1_127, %c0_128, %c0_129] : memref<8x2x4x2x128xf32, #tpu.memory_space<vmem>>, vector<1x1x1x2x128xf32>
    %236 = vector.shape_cast %235 : vector<1x1x1x2x128xf32> to vector<2x128xf32>
    %c1_130 = arith.constant 1 : index
    %c0_131 = arith.constant 0 : index
    %c2_132 = arith.constant 2 : index
    %c0_133 = arith.constant 0 : index
    %c0_134 = arith.constant 0 : index
    %237 = vector.load %arg2[%c1_130, %c0_131, %c2_132, %c0_133, %c0_134] : memref<8x2x4x2x128xf32, #tpu.memory_space<vmem>>, vector<1x1x1x2x128xf32>
    %238 = vector.shape_cast %237 : vector<1x1x1x2x128xf32> to vector<2x128xf32>
    %c1_135 = arith.constant 1 : index
    %c0_136 = arith.constant 0 : index
    %c3_137 = arith.constant 3 : index
    %c0_138 = arith.constant 0 : index
    %c0_139 = arith.constant 0 : index
    %239 = vector.load %arg2[%c1_135, %c0_136, %c3_137, %c0_138, %c0_139] : memref<8x2x4x2x128xf32, #tpu.memory_space<vmem>>, vector<1x1x1x2x128xf32>
    %240 = vector.shape_cast %239 : vector<1x1x1x2x128xf32> to vector<2x128xf32>
    %241 = vector.broadcast %179 : f32 to vector<2x128xf32>
    %242 = arith.mulf %234, %241 : vector<2x128xf32>
    %243 = vector.broadcast %183 : f32 to vector<2x128xf32>
    %244 = arith.mulf %236, %243 : vector<2x128xf32>
    %245 = arith.addf %242, %244 : vector<2x128xf32>
    %246 = vector.broadcast %187 : f32 to vector<2x128xf32>
    %247 = arith.mulf %238, %246 : vector<2x128xf32>
    %248 = arith.addf %245, %247 : vector<2x128xf32>
    %249 = vector.broadcast %191 : f32 to vector<2x128xf32>
    %250 = arith.mulf %240, %249 : vector<2x128xf32>
    %251 = arith.addf %248, %250 : vector<2x128xf32>
    %252 = vector.broadcast %226 : f32 to vector<2x128xf32>
    %253 = arith.addf %251, %252 : vector<2x128xf32>
    %c1_140 = arith.constant 1 : index
    %c0_141 = arith.constant 0 : index
    %c0_142 = arith.constant 0 : index
    %c0_143 = arith.constant 0 : index
    %c0_144 = arith.constant 0 : index
    %254 = vector.load %arg5[%c1_140, %c0_141, %c0_142, %c0_143, %c0_144] : memref<8x2x3x2x128xf32, #tpu.memory_space<vmem>>, vector<1x1x1x2x128xf32>
    %255 = vector.shape_cast %254 : vector<1x1x1x2x128xf32> to vector<2x128xf32>
    %256 = vector.shape_cast %253 : vector<2x128xf32> to vector<1x1x1x2x128xf32>
    tpu.vector_store %arg5[%c1_140, %c0_141, %c0_142, %c0_143, %c0_144], %256 {strides = array<i32>} : memref<8x2x3x2x128xf32, #tpu.memory_space<vmem>>, vector<1x1x1x2x128xf32>,
    %257 = vector.broadcast %195 : f32 to vector<2x128xf32>
    %258 = arith.mulf %234, %257 : vector<2x128xf32>
    %259 = vector.broadcast %199 : f32 to vector<2x128xf32>
    %260 = arith.mulf %236, %259 : vector<2x128xf32>
    %261 = arith.addf %258, %260 : vector<2x128xf32>
    %262 = vector.broadcast %203 : f32 to vector<2x128xf32>
    %263 = arith.mulf %238, %262 : vector<2x128xf32>
    %264 = arith.addf %261, %263 : vector<2x128xf32>
    %265 = vector.broadcast %207 : f32 to vector<2x128xf32>
    %266 = arith.mulf %240, %265 : vector<2x128xf32>
    %267 = arith.addf %264, %266 : vector<2x128xf32>
    %268 = vector.broadcast %229 : f32 to vector<2x128xf32>
    %269 = arith.addf %267, %268 : vector<2x128xf32>
    %c1_145 = arith.constant 1 : index
    %c0_146 = arith.constant 0 : index
    %c1_147 = arith.constant 1 : index
    %c0_148 = arith.constant 0 : index
    %c0_149 = arith.constant 0 : index
    %270 = vector.load %arg5[%c1_145, %c0_146, %c1_147, %c0_148, %c0_149] : memref<8x2x3x2x128xf32, #tpu.memory_space<vmem>>, vector<1x1x1x2x128xf32>
    %271 = vector.shape_cast %270 : vector<1x1x1x2x128xf32> to vector<2x128xf32>
    %272 = vector.shape_cast %269 : vector<2x128xf32> to vector<1x1x1x2x128xf32>
    tpu.vector_store %arg5[%c1_145, %c0_146, %c1_147, %c0_148, %c0_149], %272 {strides = array<i32>} : memref<8x2x3x2x128xf32, #tpu.memory_space<vmem>>, vector<1x1x1x2x128xf32>,
    %273 = vector.broadcast %211 : f32 to vector<2x128xf32>
    %274 = arith.mulf %234, %273 : vector<2x128xf32>
    %275 = vector.broadcast %215 : f32 to vector<2x128xf32>
    %276 = arith.mulf %236, %275 : vector<2x128xf32>
    %277 = arith.addf %274, %276 : vector<2x128xf32>
    %278 = vector.broadcast %219 : f32 to vector<2x128xf32>
    %279 = arith.mulf %238, %278 : vector<2x128xf32>
    %280 = arith.addf %277, %279 : vector<2x128xf32>
    %281 = vector.broadcast %223 : f32 to vector<2x128xf32>
    %282 = arith.mulf %240, %281 : vector<2x128xf32>
    %283 = arith.addf %280, %282 : vector<2x128xf32>
    %284 = vector.broadcast %232 : f32 to vector<2x128xf32>
    %285 = arith.addf %283, %284 : vector<2x128xf32>
    %c1_150 = arith.constant 1 : index
    %c0_151 = arith.constant 0 : index
    %c2_152 = arith.constant 2 : index
    %c0_153 = arith.constant 0 : index
    %c0_154 = arith.constant 0 : index
    %286 = vector.load %arg5[%c1_150, %c0_151, %c2_152, %c0_153, %c0_154] : memref<8x2x3x2x128xf32, #tpu.memory_space<vmem>>, vector<1x1x1x2x128xf32>
    %287 = vector.shape_cast %286 : vector<1x1x1x2x128xf32> to vector<2x128xf32>
    %288 = vector.shape_cast %285 : vector<2x128xf32> to vector<1x1x1x2x128xf32>
    tpu.vector_store %arg5[%c1_150, %c0_151, %c2_152, %c0_153, %c0_154], %288 {strides = array<i32>} : memref<8x2x3x2x128xf32, #tpu.memory_space<vmem>>, vector<1x1x1x2x128xf32>,
    %c1_155 = arith.constant 1 : index
    %c1_156 = arith.constant 1 : index
    %c0_157 = arith.constant 0 : index
    %c0_158 = arith.constant 0 : index
    %c0_159 = arith.constant 0 : index
    %289 = vector.load %arg2[%c1_155, %c1_156, %c0_157, %c0_158, %c0_159] : memref<8x2x4x2x128xf32, #tpu.memory_space<vmem>>, vector<1x1x1x2x128xf32>
    %290 = vector.shape_cast %289 : vector<1x1x1x2x128xf32> to vector<2x128xf32>
    %c1_160 = arith.constant 1 : index
    %c1_161 = arith.constant 1 : index
    %c1_162 = arith.constant 1 : index
    %c0_163 = arith.constant 0 : index
    %c0_164 = arith.constant 0 : index
    %291 = vector.load %arg2[%c1_160, %c1_161, %c1_162, %c0_163, %c0_164] : memref<8x2x4x2x128xf32, #tpu.memory_space<vmem>>, vector<1x1x1x2x128xf32>
    %292 = vector.shape_cast %291 : vector<1x1x1x2x128xf32> to vector<2x128xf32>
    %c1_165 = arith.constant 1 : index
    %c1_166 = arith.constant 1 : index
    %c2_167 = arith.constant 2 : index
    %c0_168 = arith.constant 0 : index
    %c0_169 = arith.constant 0 : index
    %293 = vector.load %arg2[%c1_165, %c1_166, %c2_167, %c0_168, %c0_169] : memref<8x2x4x2x128xf32, #tpu.memory_space<vmem>>, vector<1x1x1x2x128xf32>
    %294 = vector.shape_cast %293 : vector<1x1x1x2x128xf32> to vector<2x128xf32>
    %c1_170 = arith.constant 1 : index
    %c1_171 = arith.constant 1 : index
    %c3_172 = arith.constant 3 : index
    %c0_173 = arith.constant 0 : index
    %c0_174 = arith.constant 0 : index
    %295 = vector.load %arg2[%c1_170, %c1_171, %c3_172, %c0_173, %c0_174] : memref<8x2x4x2x128xf32, #tpu.memory_space<vmem>>, vector<1x1x1x2x128xf32>
    %296 = vector.shape_cast %295 : vector<1x1x1x2x128xf32> to vector<2x128xf32>
    %297 = vector.broadcast %179 : f32 to vector<2x128xf32>
    %298 = arith.mulf %290, %297 : vector<2x128xf32>
    %299 = vector.broadcast %183 : f32 to vector<2x128xf32>
    %300 = arith.mulf %292, %299 : vector<2x128xf32>
    %301 = arith.addf %298, %300 : vector<2x128xf32>
    %302 = vector.broadcast %187 : f32 to vector<2x128xf32>
    %303 = arith.mulf %294, %302 : vector<2x128xf32>
    %304 = arith.addf %301, %303 : vector<2x128xf32>
    %305 = vector.broadcast %191 : f32 to vector<2x128xf32>
    %306 = arith.mulf %296, %305 : vector<2x128xf32>
    %307 = arith.addf %304, %306 : vector<2x128xf32>
    %308 = vector.broadcast %226 : f32 to vector<2x128xf32>
    %309 = arith.addf %307, %308 : vector<2x128xf32>
    %c1_175 = arith.constant 1 : index
    %c1_176 = arith.constant 1 : index
    %c0_177 = arith.constant 0 : index
    %c0_178 = arith.constant 0 : index
    %c0_179 = arith.constant 0 : index
    %310 = vector.load %arg5[%c1_175, %c1_176, %c0_177, %c0_178, %c0_179] : memref<8x2x3x2x128xf32, #tpu.memory_space<vmem>>, vector<1x1x1x2x128xf32>
    %311 = vector.shape_cast %310 : vector<1x1x1x2x128xf32> to vector<2x128xf32>
    %312 = vector.shape_cast %309 : vector<2x128xf32> to vector<1x1x1x2x128xf32>
    tpu.vector_store %arg5[%c1_175, %c1_176, %c0_177, %c0_178, %c0_179], %312 {strides = array<i32>} : memref<8x2x3x2x128xf32, #tpu.memory_space<vmem>>, vector<1x1x1x2x128xf32>,
    %313 = vector.broadcast %195 : f32 to vector<2x128xf32>
    %314 = arith.mulf %290, %313 : vector<2x128xf32>
    %315 = vector.broadcast %199 : f32 to vector<2x128xf32>
    %316 = arith.mulf %292, %315 : vector<2x128xf32>
    %317 = arith.addf %314, %316 : vector<2x128xf32>
    %318 = vector.broadcast %203 : f32 to vector<2x128xf32>
    %319 = arith.mulf %294, %318 : vector<2x128xf32>
    %320 = arith.addf %317, %319 : vector<2x128xf32>
    %321 = vector.broadcast %207 : f32 to vector<2x128xf32>
    %322 = arith.mulf %296, %321 : vector<2x128xf32>
    %323 = arith.addf %320, %322 : vector<2x128xf32>
    %324 = vector.broadcast %229 : f32 to vector<2x128xf32>
    %325 = arith.addf %323, %324 : vector<2x128xf32>
    %c1_180 = arith.constant 1 : index
    %c1_181 = arith.constant 1 : index
    %c1_182 = arith.constant 1 : index
    %c0_183 = arith.constant 0 : index
    %c0_184 = arith.constant 0 : index
    %326 = vector.load %arg5[%c1_180, %c1_181, %c1_182, %c0_183, %c0_184] : memref<8x2x3x2x128xf32, #tpu.memory_space<vmem>>, vector<1x1x1x2x128xf32>
    %327 = vector.shape_cast %326 : vector<1x1x1x2x128xf32> to vector<2x128xf32>
    %328 = vector.shape_cast %325 : vector<2x128xf32> to vector<1x1x1x2x128xf32>
    tpu.vector_store %arg5[%c1_180, %c1_181, %c1_182, %c0_183, %c0_184], %328 {strides = array<i32>} : memref<8x2x3x2x128xf32, #tpu.memory_space<vmem>>, vector<1x1x1x2x128xf32>,
    %329 = vector.broadcast %211 : f32 to vector<2x128xf32>
    %330 = arith.mulf %290, %329 : vector<2x128xf32>
    %331 = vector.broadcast %215 : f32 to vector<2x128xf32>
    %332 = arith.mulf %292, %331 : vector<2x128xf32>
    %333 = arith.addf %330, %332 : vector<2x128xf32>
    %334 = vector.broadcast %219 : f32 to vector<2x128xf32>
    %335 = arith.mulf %294, %334 : vector<2x128xf32>
    %336 = arith.addf %333, %335 : vector<2x128xf32>
    %337 = vector.broadcast %223 : f32 to vector<2x128xf32>
    %338 = arith.mulf %296, %337 : vector<2x128xf32>
    %339 = arith.addf %336, %338 : vector<2x128xf32>
    %340 = vector.broadcast %232 : f32 to vector<2x128xf32>
    %341 = arith.addf %339, %340 : vector<2x128xf32>
    %c1_185 = arith.constant 1 : index
    %c1_186 = arith.constant 1 : index
    %c2_187 = arith.constant 2 : index
    %c0_188 = arith.constant 0 : index
    %c0_189 = arith.constant 0 : index
    %342 = vector.load %arg5[%c1_185, %c1_186, %c2_187, %c0_188, %c0_189] : memref<8x2x3x2x128xf32, #tpu.memory_space<vmem>>, vector<1x1x1x2x128xf32>
    %343 = vector.shape_cast %342 : vector<1x1x1x2x128xf32> to vector<2x128xf32>
    %344 = vector.shape_cast %341 : vector<2x128xf32> to vector<1x1x1x2x128xf32>
    tpu.vector_store %arg5[%c1_185, %c1_186, %c2_187, %c0_188, %c0_189], %344 {strides = array<i32>} : memref<8x2x3x2x128xf32, #tpu.memory_space<vmem>>, vector<1x1x1x2x128xf32>,
    %c2_i32_190 = arith.constant 2 : i32
    %345 = arith.addi %0, %c2_i32_190 : i32
    %c12_i32_191 = arith.constant 12 : i32
    %346 = arith.muli %345, %c12_i32_191 : i32
    %c3_i32_192 = arith.constant 3 : i32
    %347 = arith.muli %345, %c3_i32_192 : i32
    %c0_i32_193 = arith.constant 0 : i32
    %348 = arith.addi %346, %c0_i32_193 : i32
    %c0_i32_194 = arith.constant 0 : i32
    %349 = arith.addi %348, %c0_i32_194 : i32
    %350 = arith.index_cast %349 : i32 to index
    %351 = memref.load %arg3[%350] : memref<96xf32, #tpu.memory_space<smem>>
    %c0_i32_195 = arith.constant 0 : i32
    %352 = arith.addi %346, %c0_i32_195 : i32
    %c1_i32_196 = arith.constant 1 : i32
    %353 = arith.addi %352, %c1_i32_196 : i32
    %354 = arith.index_cast %353 : i32 to index
    %355 = memref.load %arg3[%354] : memref<96xf32, #tpu.memory_space<smem>>
    %c0_i32_197 = arith.constant 0 : i32
    %356 = arith.addi %346, %c0_i32_197 : i32
    %c2_i32_198 = arith.constant 2 : i32
    %357 = arith.addi %356, %c2_i32_198 : i32
    %358 = arith.index_cast %357 : i32 to index
    %359 = memref.load %arg3[%358] : memref<96xf32, #tpu.memory_space<smem>>
    %c0_i32_199 = arith.constant 0 : i32
    %360 = arith.addi %346, %c0_i32_199 : i32
    %c3_i32_200 = arith.constant 3 : i32
    %361 = arith.addi %360, %c3_i32_200 : i32
    %362 = arith.index_cast %361 : i32 to index
    %363 = memref.load %arg3[%362] : memref<96xf32, #tpu.memory_space<smem>>
    %c4_i32_201 = arith.constant 4 : i32
    %364 = arith.addi %346, %c4_i32_201 : i32
    %c0_i32_202 = arith.constant 0 : i32
    %365 = arith.addi %364, %c0_i32_202 : i32
    %366 = arith.index_cast %365 : i32 to index
    %367 = memref.load %arg3[%366] : memref<96xf32, #tpu.memory_space<smem>>
    %c4_i32_203 = arith.constant 4 : i32
    %368 = arith.addi %346, %c4_i32_203 : i32
    %c1_i32_204 = arith.constant 1 : i32
    %369 = arith.addi %368, %c1_i32_204 : i32
    %370 = arith.index_cast %369 : i32 to index
    %371 = memref.load %arg3[%370] : memref<96xf32, #tpu.memory_space<smem>>
    %c4_i32_205 = arith.constant 4 : i32
    %372 = arith.addi %346, %c4_i32_205 : i32
    %c2_i32_206 = arith.constant 2 : i32
    %373 = arith.addi %372, %c2_i32_206 : i32
    %374 = arith.index_cast %373 : i32 to index
    %375 = memref.load %arg3[%374] : memref<96xf32, #tpu.memory_space<smem>>
    %c4_i32_207 = arith.constant 4 : i32
    %376 = arith.addi %346, %c4_i32_207 : i32
    %c3_i32_208 = arith.constant 3 : i32
    %377 = arith.addi %376, %c3_i32_208 : i32
    %378 = arith.index_cast %377 : i32 to index
    %379 = memref.load %arg3[%378] : memref<96xf32, #tpu.memory_space<smem>>
    %c8_i32_209 = arith.constant 8 : i32
    %380 = arith.addi %346, %c8_i32_209 : i32
    %c0_i32_210 = arith.constant 0 : i32
    %381 = arith.addi %380, %c0_i32_210 : i32
    %382 = arith.index_cast %381 : i32 to index
    %383 = memref.load %arg3[%382] : memref<96xf32, #tpu.memory_space<smem>>
    %c8_i32_211 = arith.constant 8 : i32
    %384 = arith.addi %346, %c8_i32_211 : i32
    %c1_i32_212 = arith.constant 1 : i32
    %385 = arith.addi %384, %c1_i32_212 : i32
    %386 = arith.index_cast %385 : i32 to index
    %387 = memref.load %arg3[%386] : memref<96xf32, #tpu.memory_space<smem>>
    %c8_i32_213 = arith.constant 8 : i32
    %388 = arith.addi %346, %c8_i32_213 : i32
    %c2_i32_214 = arith.constant 2 : i32
    %389 = arith.addi %388, %c2_i32_214 : i32
    %390 = arith.index_cast %389 : i32 to index
    %391 = memref.load %arg3[%390] : memref<96xf32, #tpu.memory_space<smem>>
    %c8_i32_215 = arith.constant 8 : i32
    %392 = arith.addi %346, %c8_i32_215 : i32
    %c3_i32_216 = arith.constant 3 : i32
    %393 = arith.addi %392, %c3_i32_216 : i32
    %394 = arith.index_cast %393 : i32 to index
    %395 = memref.load %arg3[%394] : memref<96xf32, #tpu.memory_space<smem>>
    %c0_i32_217 = arith.constant 0 : i32
    %396 = arith.addi %347, %c0_i32_217 : i32
    %397 = arith.index_cast %396 : i32 to index
    %398 = memref.load %arg4[%397] : memref<24xf32, #tpu.memory_space<smem>>
    %c1_i32_218 = arith.constant 1 : i32
    %399 = arith.addi %347, %c1_i32_218 : i32
    %400 = arith.index_cast %399 : i32 to index
    %401 = memref.load %arg4[%400] : memref<24xf32, #tpu.memory_space<smem>>
    %c2_i32_219 = arith.constant 2 : i32
    %402 = arith.addi %347, %c2_i32_219 : i32
    %403 = arith.index_cast %402 : i32 to index
    %404 = memref.load %arg4[%403] : memref<24xf32, #tpu.memory_space<smem>>
    %c2_220 = arith.constant 2 : index
    %c0_221 = arith.constant 0 : index
    %c0_222 = arith.constant 0 : index
    %c0_223 = arith.constant 0 : index
    %c0_224 = arith.constant 0 : index
    %405 = vector.load %arg2[%c2_220, %c0_221, %c0_222, %c0_223, %c0_224] : memref<8x2x4x2x128xf32, #tpu.memory_space<vmem>>, vector<1x1x1x2x128xf32>
    %406 = vector.shape_cast %405 : vector<1x1x1x2x128xf32> to vector<2x128xf32>
    %c2_225 = arith.constant 2 : index
    %c0_226 = arith.constant 0 : index
    %c1_227 = arith.constant 1 : index
    %c0_228 = arith.constant 0 : index
    %c0_229 = arith.constant 0 : index
    %407 = vector.load %arg2[%c2_225, %c0_226, %c1_227, %c0_228, %c0_229] : memref<8x2x4x2x128xf32, #tpu.memory_space<vmem>>, vector<1x1x1x2x128xf32>
    %408 = vector.shape_cast %407 : vector<1x1x1x2x128xf32> to vector<2x128xf32>
    %c2_230 = arith.constant 2 : index
    %c0_231 = arith.constant 0 : index
    %c2_232 = arith.constant 2 : index
    %c0_233 = arith.constant 0 : index
    %c0_234 = arith.constant 0 : index
    %409 = vector.load %arg2[%c2_230, %c0_231, %c2_232, %c0_233, %c0_234] : memref<8x2x4x2x128xf32, #tpu.memory_space<vmem>>, vector<1x1x1x2x128xf32>
    %410 = vector.shape_cast %409 : vector<1x1x1x2x128xf32> to vector<2x128xf32>
    %c2_235 = arith.constant 2 : index
    %c0_236 = arith.constant 0 : index
    %c3_237 = arith.constant 3 : index
    %c0_238 = arith.constant 0 : index
    %c0_239 = arith.constant 0 : index
    %411 = vector.load %arg2[%c2_235, %c0_236, %c3_237, %c0_238, %c0_239] : memref<8x2x4x2x128xf32, #tpu.memory_space<vmem>>, vector<1x1x1x2x128xf32>
    %412 = vector.shape_cast %411 : vector<1x1x1x2x128xf32> to vector<2x128xf32>
    %413 = vector.broadcast %351 : f32 to vector<2x128xf32>
    %414 = arith.mulf %406, %413 : vector<2x128xf32>
    %415 = vector.broadcast %355 : f32 to vector<2x128xf32>
    %416 = arith.mulf %408, %415 : vector<2x128xf32>
    %417 = arith.addf %414, %416 : vector<2x128xf32>
    %418 = vector.broadcast %359 : f32 to vector<2x128xf32>
    %419 = arith.mulf %410, %418 : vector<2x128xf32>
    %420 = arith.addf %417, %419 : vector<2x128xf32>
    %421 = vector.broadcast %363 : f32 to vector<2x128xf32>
    %422 = arith.mulf %412, %421 : vector<2x128xf32>
    %423 = arith.addf %420, %422 : vector<2x128xf32>
    %424 = vector.broadcast %398 : f32 to vector<2x128xf32>
    %425 = arith.addf %423, %424 : vector<2x128xf32>
    %c2_240 = arith.constant 2 : index
    %c0_241 = arith.constant 0 : index
    %c0_242 = arith.constant 0 : index
    %c0_243 = arith.constant 0 : index
    %c0_244 = arith.constant 0 : index
    %426 = vector.load %arg5[%c2_240, %c0_241, %c0_242, %c0_243, %c0_244] : memref<8x2x3x2x128xf32, #tpu.memory_space<vmem>>, vector<1x1x1x2x128xf32>
    %427 = vector.shape_cast %426 : vector<1x1x1x2x128xf32> to vector<2x128xf32>
    %428 = vector.shape_cast %425 : vector<2x128xf32> to vector<1x1x1x2x128xf32>
    tpu.vector_store %arg5[%c2_240, %c0_241, %c0_242, %c0_243, %c0_244], %428 {strides = array<i32>} : memref<8x2x3x2x128xf32, #tpu.memory_space<vmem>>, vector<1x1x1x2x128xf32>,
    %429 = vector.broadcast %367 : f32 to vector<2x128xf32>
    %430 = arith.mulf %406, %429 : vector<2x128xf32>
    %431 = vector.broadcast %371 : f32 to vector<2x128xf32>
    %432 = arith.mulf %408, %431 : vector<2x128xf32>
    %433 = arith.addf %430, %432 : vector<2x128xf32>
    %434 = vector.broadcast %375 : f32 to vector<2x128xf32>
    %435 = arith.mulf %410, %434 : vector<2x128xf32>
    %436 = arith.addf %433, %435 : vector<2x128xf32>
    %437 = vector.broadcast %379 : f32 to vector<2x128xf32>
    %438 = arith.mulf %412, %437 : vector<2x128xf32>
    %439 = arith.addf %436, %438 : vector<2x128xf32>
    %440 = vector.broadcast %401 : f32 to vector<2x128xf32>
    %441 = arith.addf %439, %440 : vector<2x128xf32>
    %c2_245 = arith.constant 2 : index
    %c0_246 = arith.constant 0 : index
    %c1_247 = arith.constant 1 : index
    %c0_248 = arith.constant 0 : index
    %c0_249 = arith.constant 0 : index
    %442 = vector.load %arg5[%c2_245, %c0_246, %c1_247, %c0_248, %c0_249] : memref<8x2x3x2x128xf32, #tpu.memory_space<vmem>>, vector<1x1x1x2x128xf32>
    %443 = vector.shape_cast %442 : vector<1x1x1x2x128xf32> to vector<2x128xf32>
    %444 = vector.shape_cast %441 : vector<2x128xf32> to vector<1x1x1x2x128xf32>
    tpu.vector_store %arg5[%c2_245, %c0_246, %c1_247, %c0_248, %c0_249], %444 {strides = array<i32>} : memref<8x2x3x2x128xf32, #tpu.memory_space<vmem>>, vector<1x1x1x2x128xf32>,
    %445 = vector.broadcast %383 : f32 to vector<2x128xf32>
    %446 = arith.mulf %406, %445 : vector<2x128xf32>
    %447 = vector.broadcast %387 : f32 to vector<2x128xf32>
    %448 = arith.mulf %408, %447 : vector<2x128xf32>
    %449 = arith.addf %446, %448 : vector<2x128xf32>
    %450 = vector.broadcast %391 : f32 to vector<2x128xf32>
    %451 = arith.mulf %410, %450 : vector<2x128xf32>
    %452 = arith.addf %449, %451 : vector<2x128xf32>
    %453 = vector.broadcast %395 : f32 to vector<2x128xf32>
    %454 = arith.mulf %412, %453 : vector<2x128xf32>
    %455 = arith.addf %452, %454 : vector<2x128xf32>
    %456 = vector.broadcast %404 : f32 to vector<2x128xf32>
    %457 = arith.addf %455, %456 : vector<2x128xf32>
    %c2_250 = arith.constant 2 : index
    %c0_251 = arith.constant 0 : index
    %c2_252 = arith.constant 2 : index
    %c0_253 = arith.constant 0 : index
    %c0_254 = arith.constant 0 : index
    %458 = vector.load %arg5[%c2_250, %c0_251, %c2_252, %c0_253, %c0_254] : memref<8x2x3x2x128xf32, #tpu.memory_space<vmem>>, vector<1x1x1x2x128xf32>
    %459 = vector.shape_cast %458 : vector<1x1x1x2x128xf32> to vector<2x128xf32>
    %460 = vector.shape_cast %457 : vector<2x128xf32> to vector<1x1x1x2x128xf32>
    tpu.vector_store %arg5[%c2_250, %c0_251, %c2_252, %c0_253, %c0_254], %460 {strides = array<i32>} : memref<8x2x3x2x128xf32, #tpu.memory_space<vmem>>, vector<1x1x1x2x128xf32>,
    %c2_255 = arith.constant 2 : index
    %c1_256 = arith.constant 1 : index
    %c0_257 = arith.constant 0 : index
    %c0_258 = arith.constant 0 : index
    %c0_259 = arith.constant 0 : index
    %461 = vector.load %arg2[%c2_255, %c1_256, %c0_257, %c0_258, %c0_259] : memref<8x2x4x2x128xf32, #tpu.memory_space<vmem>>, vector<1x1x1x2x128xf32>
    %462 = vector.shape_cast %461 : vector<1x1x1x2x128xf32> to vector<2x128xf32>
    %c2_260 = arith.constant 2 : index
    %c1_261 = arith.constant 1 : index
    %c1_262 = arith.constant 1 : index
    %c0_263 = arith.constant 0 : index
    %c0_264 = arith.constant 0 : index
    %463 = vector.load %arg2[%c2_260, %c1_261, %c1_262, %c0_263, %c0_264] : memref<8x2x4x2x128xf32, #tpu.memory_space<vmem>>, vector<1x1x1x2x128xf32>
    %464 = vector.shape_cast %463 : vector<1x1x1x2x128xf32> to vector<2x128xf32>
    %c2_265 = arith.constant 2 : index
    %c1_266 = arith.constant 1 : index
    %c2_267 = arith.constant 2 : index
    %c0_268 = arith.constant 0 : index
    %c0_269 = arith.constant 0 : index
    %465 = vector.load %arg2[%c2_265, %c1_266, %c2_267, %c0_268, %c0_269] : memref<8x2x4x2x128xf32, #tpu.memory_space<vmem>>, vector<1x1x1x2x128xf32>
    %466 = vector.shape_cast %465 : vector<1x1x1x2x128xf32> to vector<2x128xf32>
    %c2_270 = arith.constant 2 : index
    %c1_271 = arith.constant 1 : index
    %c3_272 = arith.constant 3 : index
    %c0_273 = arith.constant 0 : index
    %c0_274 = arith.constant 0 : index
    %467 = vector.load %arg2[%c2_270, %c1_271, %c3_272, %c0_273, %c0_274] : memref<8x2x4x2x128xf32, #tpu.memory_space<vmem>>, vector<1x1x1x2x128xf32>
    %468 = vector.shape_cast %467 : vector<1x1x1x2x128xf32> to vector<2x128xf32>
    %469 = vector.broadcast %351 : f32 to vector<2x128xf32>
    %470 = arith.mulf %462, %469 : vector<2x128xf32>
    %471 = vector.broadcast %355 : f32 to vector<2x128xf32>
    %472 = arith.mulf %464, %471 : vector<2x128xf32>
    %473 = arith.addf %470, %472 : vector<2x128xf32>
    %474 = vector.broadcast %359 : f32 to vector<2x128xf32>
    %475 = arith.mulf %466, %474 : vector<2x128xf32>
    %476 = arith.addf %473, %475 : vector<2x128xf32>
    %477 = vector.broadcast %363 : f32 to vector<2x128xf32>
    %478 = arith.mulf %468, %477 : vector<2x128xf32>
    %479 = arith.addf %476, %478 : vector<2x128xf32>
    %480 = vector.broadcast %398 : f32 to vector<2x128xf32>
    %481 = arith.addf %479, %480 : vector<2x128xf32>
    %c2_275 = arith.constant 2 : index
    %c1_276 = arith.constant 1 : index
    %c0_277 = arith.constant 0 : index
    %c0_278 = arith.constant 0 : index
    %c0_279 = arith.constant 0 : index
    %482 = vector.load %arg5[%c2_275, %c1_276, %c0_277, %c0_278, %c0_279] : memref<8x2x3x2x128xf32, #tpu.memory_space<vmem>>, vector<1x1x1x2x128xf32>
    %483 = vector.shape_cast %482 : vector<1x1x1x2x128xf32> to vector<2x128xf32>
    %484 = vector.shape_cast %481 : vector<2x128xf32> to vector<1x1x1x2x128xf32>
    tpu.vector_store %arg5[%c2_275, %c1_276, %c0_277, %c0_278, %c0_279], %484 {strides = array<i32>} : memref<8x2x3x2x128xf32, #tpu.memory_space<vmem>>, vector<1x1x1x2x128xf32>,
    %485 = vector.broadcast %367 : f32 to vector<2x128xf32>
    %486 = arith.mulf %462, %485 : vector<2x128xf32>
    %487 = vector.broadcast %371 : f32 to vector<2x128xf32>
    %488 = arith.mulf %464, %487 : vector<2x128xf32>
    %489 = arith.addf %486, %488 : vector<2x128xf32>
    %490 = vector.broadcast %375 : f32 to vector<2x128xf32>
    %491 = arith.mulf %466, %490 : vector<2x128xf32>
    %492 = arith.addf %489, %491 : vector<2x128xf32>
    %493 = vector.broadcast %379 : f32 to vector<2x128xf32>
    %494 = arith.mulf %468, %493 : vector<2x128xf32>
    %495 = arith.addf %492, %494 : vector<2x128xf32>
    %496 = vector.broadcast %401 : f32 to vector<2x128xf32>
    %497 = arith.addf %495, %496 : vector<2x128xf32>
    %c2_280 = arith.constant 2 : index
    %c1_281 = arith.constant 1 : index
    %c1_282 = arith.constant 1 : index
    %c0_283 = arith.constant 0 : index
    %c0_284 = arith.constant 0 : index
    %498 = vector.load %arg5[%c2_280, %c1_281, %c1_282, %c0_283, %c0_284] : memref<8x2x3x2x128xf32, #tpu.memory_space<vmem>>, vector<1x1x1x2x128xf32>
    %499 = vector.shape_cast %498 : vector<1x1x1x2x128xf32> to vector<2x128xf32>
    %500 = vector.shape_cast %497 : vector<2x128xf32> to vector<1x1x1x2x128xf32>
    tpu.vector_store %arg5[%c2_280, %c1_281, %c1_282, %c0_283, %c0_284], %500 {strides = array<i32>} : memref<8x2x3x2x128xf32, #tpu.memory_space<vmem>>, vector<1x1x1x2x128xf32>,
    %501 = vector.broadcast %383 : f32 to vector<2x128xf32>
    %502 = arith.mulf %462, %501 : vector<2x128xf32>
    %503 = vector.broadcast %387 : f32 to vector<2x128xf32>
    %504 = arith.mulf %464, %503 : vector<2x128xf32>
    %505 = arith.addf %502, %504 : vector<2x128xf32>
    %506 = vector.broadcast %391 : f32 to vector<2x128xf32>
    %507 = arith.mulf %466, %506 : vector<2x128xf32>
    %508 = arith.addf %505, %507 : vector<2x128xf32>
    %509 = vector.broadcast %395 : f32 to vector<2x128xf32>
    %510 = arith.mulf %468, %509 : vector<2x128xf32>
    %511 = arith.addf %508, %510 : vector<2x128xf32>
    %512 = vector.broadcast %404 : f32 to vector<2x128xf32>
    %513 = arith.addf %511, %512 : vector<2x128xf32>
    %c2_285 = arith.constant 2 : index
    %c1_286 = arith.constant 1 : index
    %c2_287 = arith.constant 2 : index
    %c0_288 = arith.constant 0 : index
    %c0_289 = arith.constant 0 : index
    %514 = vector.load %arg5[%c2_285, %c1_286, %c2_287, %c0_288, %c0_289] : memref<8x2x3x2x128xf32, #tpu.memory_space<vmem>>, vector<1x1x1x2x128xf32>
    %515 = vector.shape_cast %514 : vector<1x1x1x2x128xf32> to vector<2x128xf32>
    %516 = vector.shape_cast %513 : vector<2x128xf32> to vector<1x1x1x2x128xf32>
    tpu.vector_store %arg5[%c2_285, %c1_286, %c2_287, %c0_288, %c0_289], %516 {strides = array<i32>} : memref<8x2x3x2x128xf32, #tpu.memory_space<vmem>>, vector<1x1x1x2x128xf32>,
    %c3_i32_290 = arith.constant 3 : i32
    %517 = arith.addi %0, %c3_i32_290 : i32
    %c12_i32_291 = arith.constant 12 : i32
    %518 = arith.muli %517, %c12_i32_291 : i32
    %c3_i32_292 = arith.constant 3 : i32
    %519 = arith.muli %517, %c3_i32_292 : i32
    %c0_i32_293 = arith.constant 0 : i32
    %520 = arith.addi %518, %c0_i32_293 : i32
    %c0_i32_294 = arith.constant 0 : i32
    %521 = arith.addi %520, %c0_i32_294 : i32
    %522 = arith.index_cast %521 : i32 to index
    %523 = memref.load %arg3[%522] : memref<96xf32, #tpu.memory_space<smem>>
    %c0_i32_295 = arith.constant 0 : i32
    %524 = arith.addi %518, %c0_i32_295 : i32
    %c1_i32_296 = arith.constant 1 : i32
    %525 = arith.addi %524, %c1_i32_296 : i32
    %526 = arith.index_cast %525 : i32 to index
    %527 = memref.load %arg3[%526] : memref<96xf32, #tpu.memory_space<smem>>
    %c0_i32_297 = arith.constant 0 : i32
    %528 = arith.addi %518, %c0_i32_297 : i32
    %c2_i32_298 = arith.constant 2 : i32
    %529 = arith.addi %528, %c2_i32_298 : i32
    %530 = arith.index_cast %529 : i32 to index
    %531 = memref.load %arg3[%530] : memref<96xf32, #tpu.memory_space<smem>>
    %c0_i32_299 = arith.constant 0 : i32
    %532 = arith.addi %518, %c0_i32_299 : i32
    %c3_i32_300 = arith.constant 3 : i32
    %533 = arith.addi %532, %c3_i32_300 : i32
    %534 = arith.index_cast %533 : i32 to index
    %535 = memref.load %arg3[%534] : memref<96xf32, #tpu.memory_space<smem>>
    %c4_i32_301 = arith.constant 4 : i32
    %536 = arith.addi %518, %c4_i32_301 : i32
    %c0_i32_302 = arith.constant 0 : i32
    %537 = arith.addi %536, %c0_i32_302 : i32
    %538 = arith.index_cast %537 : i32 to index
    %539 = memref.load %arg3[%538] : memref<96xf32, #tpu.memory_space<smem>>
    %c4_i32_303 = arith.constant 4 : i32
    %540 = arith.addi %518, %c4_i32_303 : i32
    %c1_i32_304 = arith.constant 1 : i32
    %541 = arith.addi %540, %c1_i32_304 : i32
    %542 = arith.index_cast %541 : i32 to index
    %543 = memref.load %arg3[%542] : memref<96xf32, #tpu.memory_space<smem>>
    %c4_i32_305 = arith.constant 4 : i32
    %544 = arith.addi %518, %c4_i32_305 : i32
    %c2_i32_306 = arith.constant 2 : i32
    %545 = arith.addi %544, %c2_i32_306 : i32
    %546 = arith.index_cast %545 : i32 to index
    %547 = memref.load %arg3[%546] : memref<96xf32, #tpu.memory_space<smem>>
    %c4_i32_307 = arith.constant 4 : i32
    %548 = arith.addi %518, %c4_i32_307 : i32
    %c3_i32_308 = arith.constant 3 : i32
    %549 = arith.addi %548, %c3_i32_308 : i32
    %550 = arith.index_cast %549 : i32 to index
    %551 = memref.load %arg3[%550] : memref<96xf32, #tpu.memory_space<smem>>
    %c8_i32_309 = arith.constant 8 : i32
    %552 = arith.addi %518, %c8_i32_309 : i32
    %c0_i32_310 = arith.constant 0 : i32
    %553 = arith.addi %552, %c0_i32_310 : i32
    %554 = arith.index_cast %553 : i32 to index
    %555 = memref.load %arg3[%554] : memref<96xf32, #tpu.memory_space<smem>>
    %c8_i32_311 = arith.constant 8 : i32
    %556 = arith.addi %518, %c8_i32_311 : i32
    %c1_i32_312 = arith.constant 1 : i32
    %557 = arith.addi %556, %c1_i32_312 : i32
    %558 = arith.index_cast %557 : i32 to index
    %559 = memref.load %arg3[%558] : memref<96xf32, #tpu.memory_space<smem>>
    %c8_i32_313 = arith.constant 8 : i32
    %560 = arith.addi %518, %c8_i32_313 : i32
    %c2_i32_314 = arith.constant 2 : i32
    %561 = arith.addi %560, %c2_i32_314 : i32
    %562 = arith.index_cast %561 : i32 to index
    %563 = memref.load %arg3[%562] : memref<96xf32, #tpu.memory_space<smem>>
    %c8_i32_315 = arith.constant 8 : i32
    %564 = arith.addi %518, %c8_i32_315 : i32
    %c3_i32_316 = arith.constant 3 : i32
    %565 = arith.addi %564, %c3_i32_316 : i32
    %566 = arith.index_cast %565 : i32 to index
    %567 = memref.load %arg3[%566] : memref<96xf32, #tpu.memory_space<smem>>
    %c0_i32_317 = arith.constant 0 : i32
    %568 = arith.addi %519, %c0_i32_317 : i32
    %569 = arith.index_cast %568 : i32 to index
    %570 = memref.load %arg4[%569] : memref<24xf32, #tpu.memory_space<smem>>
    %c1_i32_318 = arith.constant 1 : i32
    %571 = arith.addi %519, %c1_i32_318 : i32
    %572 = arith.index_cast %571 : i32 to index
    %573 = memref.load %arg4[%572] : memref<24xf32, #tpu.memory_space<smem>>
    %c2_i32_319 = arith.constant 2 : i32
    %574 = arith.addi %519, %c2_i32_319 : i32
    %575 = arith.index_cast %574 : i32 to index
    %576 = memref.load %arg4[%575] : memref<24xf32, #tpu.memory_space<smem>>
    %c3_320 = arith.constant 3 : index
    %c0_321 = arith.constant 0 : index
    %c0_322 = arith.constant 0 : index
    %c0_323 = arith.constant 0 : index
    %c0_324 = arith.constant 0 : index
    %577 = vector.load %arg2[%c3_320, %c0_321, %c0_322, %c0_323, %c0_324] : memref<8x2x4x2x128xf32, #tpu.memory_space<vmem>>, vector<1x1x1x2x128xf32>
    %578 = vector.shape_cast %577 : vector<1x1x1x2x128xf32> to vector<2x128xf32>
    %c3_325 = arith.constant 3 : index
    %c0_326 = arith.constant 0 : index
    %c1_327 = arith.constant 1 : index
    %c0_328 = arith.constant 0 : index
    %c0_329 = arith.constant 0 : index
    %579 = vector.load %arg2[%c3_325, %c0_326, %c1_327, %c0_328, %c0_329] : memref<8x2x4x2x128xf32, #tpu.memory_space<vmem>>, vector<1x1x1x2x128xf32>
    %580 = vector.shape_cast %579 : vector<1x1x1x2x128xf32> to vector<2x128xf32>
    %c3_330 = arith.constant 3 : index
    %c0_331 = arith.constant 0 : index
    %c2_332 = arith.constant 2 : index
    %c0_333 = arith.constant 0 : index
    %c0_334 = arith.constant 0 : index
    %581 = vector.load %arg2[%c3_330, %c0_331, %c2_332, %c0_333, %c0_334] : memref<8x2x4x2x128xf32, #tpu.memory_space<vmem>>, vector<1x1x1x2x128xf32>
    %582 = vector.shape_cast %581 : vector<1x1x1x2x128xf32> to vector<2x128xf32>
    %c3_335 = arith.constant 3 : index
    %c0_336 = arith.constant 0 : index
    %c3_337 = arith.constant 3 : index
    %c0_338 = arith.constant 0 : index
    %c0_339 = arith.constant 0 : index
    %583 = vector.load %arg2[%c3_335, %c0_336, %c3_337, %c0_338, %c0_339] : memref<8x2x4x2x128xf32, #tpu.memory_space<vmem>>, vector<1x1x1x2x128xf32>
    %584 = vector.shape_cast %583 : vector<1x1x1x2x128xf32> to vector<2x128xf32>
    %585 = vector.broadcast %523 : f32 to vector<2x128xf32>
    %586 = arith.mulf %578, %585 : vector<2x128xf32>
    %587 = vector.broadcast %527 : f32 to vector<2x128xf32>
    %588 = arith.mulf %580, %587 : vector<2x128xf32>
    %589 = arith.addf %586, %588 : vector<2x128xf32>
    %590 = vector.broadcast %531 : f32 to vector<2x128xf32>
    %591 = arith.mulf %582, %590 : vector<2x128xf32>
    %592 = arith.addf %589, %591 : vector<2x128xf32>
    %593 = vector.broadcast %535 : f32 to vector<2x128xf32>
    %594 = arith.mulf %584, %593 : vector<2x128xf32>
    %595 = arith.addf %592, %594 : vector<2x128xf32>
    %596 = vector.broadcast %570 : f32 to vector<2x128xf32>
    %597 = arith.addf %595, %596 : vector<2x128xf32>
    %c3_340 = arith.constant 3 : index
    %c0_341 = arith.constant 0 : index
    %c0_342 = arith.constant 0 : index
    %c0_343 = arith.constant 0 : index
    %c0_344 = arith.constant 0 : index
    %598 = vector.load %arg5[%c3_340, %c0_341, %c0_342, %c0_343, %c0_344] : memref<8x2x3x2x128xf32, #tpu.memory_space<vmem>>, vector<1x1x1x2x128xf32>
    %599 = vector.shape_cast %598 : vector<1x1x1x2x128xf32> to vector<2x128xf32>
    %600 = vector.shape_cast %597 : vector<2x128xf32> to vector<1x1x1x2x128xf32>
    tpu.vector_store %arg5[%c3_340, %c0_341, %c0_342, %c0_343, %c0_344], %600 {strides = array<i32>} : memref<8x2x3x2x128xf32, #tpu.memory_space<vmem>>, vector<1x1x1x2x128xf32>,
    %601 = vector.broadcast %539 : f32 to vector<2x128xf32>
    %602 = arith.mulf %578, %601 : vector<2x128xf32>
    %603 = vector.broadcast %543 : f32 to vector<2x128xf32>
    %604 = arith.mulf %580, %603 : vector<2x128xf32>
    %605 = arith.addf %602, %604 : vector<2x128xf32>
    %606 = vector.broadcast %547 : f32 to vector<2x128xf32>
    %607 = arith.mulf %582, %606 : vector<2x128xf32>
    %608 = arith.addf %605, %607 : vector<2x128xf32>
    %609 = vector.broadcast %551 : f32 to vector<2x128xf32>
    %610 = arith.mulf %584, %609 : vector<2x128xf32>
    %611 = arith.addf %608, %610 : vector<2x128xf32>
    %612 = vector.broadcast %573 : f32 to vector<2x128xf32>
    %613 = arith.addf %611, %612 : vector<2x128xf32>
    %c3_345 = arith.constant 3 : index
    %c0_346 = arith.constant 0 : index
    %c1_347 = arith.constant 1 : index
    %c0_348 = arith.constant 0 : index
    %c0_349 = arith.constant 0 : index
    %614 = vector.load %arg5[%c3_345, %c0_346, %c1_347, %c0_348, %c0_349] : memref<8x2x3x2x128xf32, #tpu.memory_space<vmem>>, vector<1x1x1x2x128xf32>
    %615 = vector.shape_cast %614 : vector<1x1x1x2x128xf32> to vector<2x128xf32>
    %616 = vector.shape_cast %613 : vector<2x128xf32> to vector<1x1x1x2x128xf32>
    tpu.vector_store %arg5[%c3_345, %c0_346, %c1_347, %c0_348, %c0_349], %616 {strides = array<i32>} : memref<8x2x3x2x128xf32, #tpu.memory_space<vmem>>, vector<1x1x1x2x128xf32>,
    %617 = vector.broadcast %555 : f32 to vector<2x128xf32>
    %618 = arith.mulf %578, %617 : vector<2x128xf32>
    %619 = vector.broadcast %559 : f32 to vector<2x128xf32>
    %620 = arith.mulf %580, %619 : vector<2x128xf32>
    %621 = arith.addf %618, %620 : vector<2x128xf32>
    %622 = vector.broadcast %563 : f32 to vector<2x128xf32>
    %623 = arith.mulf %582, %622 : vector<2x128xf32>
    %624 = arith.addf %621, %623 : vector<2x128xf32>
    %625 = vector.broadcast %567 : f32 to vector<2x128xf32>
    %626 = arith.mulf %584, %625 : vector<2x128xf32>
    %627 = arith.addf %624, %626 : vector<2x128xf32>
    %628 = vector.broadcast %576 : f32 to vector<2x128xf32>
    %629 = arith.addf %627, %628 : vector<2x128xf32>
    %c3_350 = arith.constant 3 : index
    %c0_351 = arith.constant 0 : index
    %c2_352 = arith.constant 2 : index
    %c0_353 = arith.constant 0 : index
    %c0_354 = arith.constant 0 : index
    %630 = vector.load %arg5[%c3_350, %c0_351, %c2_352, %c0_353, %c0_354] : memref<8x2x3x2x128xf32, #tpu.memory_space<vmem>>, vector<1x1x1x2x128xf32>
    %631 = vector.shape_cast %630 : vector<1x1x1x2x128xf32> to vector<2x128xf32>
    %632 = vector.shape_cast %629 : vector<2x128xf32> to vector<1x1x1x2x128xf32>
    tpu.vector_store %arg5[%c3_350, %c0_351, %c2_352, %c0_353, %c0_354], %632 {strides = array<i32>} : memref<8x2x3x2x128xf32, #tpu.memory_space<vmem>>, vector<1x1x1x2x128xf32>,
    %c3_355 = arith.constant 3 : index
    %c1_356 = arith.constant 1 : index
    %c0_357 = arith.constant 0 : index
    %c0_358 = arith.constant 0 : index
    %c0_359 = arith.constant 0 : index
    %633 = vector.load %arg2[%c3_355, %c1_356, %c0_357, %c0_358, %c0_359] : memref<8x2x4x2x128xf32, #tpu.memory_space<vmem>>, vector<1x1x1x2x128xf32>
    %634 = vector.shape_cast %633 : vector<1x1x1x2x128xf32> to vector<2x128xf32>
    %c3_360 = arith.constant 3 : index
    %c1_361 = arith.constant 1 : index
    %c1_362 = arith.constant 1 : index
    %c0_363 = arith.constant 0 : index
    %c0_364 = arith.constant 0 : index
    %635 = vector.load %arg2[%c3_360, %c1_361, %c1_362, %c0_363, %c0_364] : memref<8x2x4x2x128xf32, #tpu.memory_space<vmem>>, vector<1x1x1x2x128xf32>
    %636 = vector.shape_cast %635 : vector<1x1x1x2x128xf32> to vector<2x128xf32>
    %c3_365 = arith.constant 3 : index
    %c1_366 = arith.constant 1 : index
    %c2_367 = arith.constant 2 : index
    %c0_368 = arith.constant 0 : index
    %c0_369 = arith.constant 0 : index
    %637 = vector.load %arg2[%c3_365, %c1_366, %c2_367, %c0_368, %c0_369] : memref<8x2x4x2x128xf32, #tpu.memory_space<vmem>>, vector<1x1x1x2x128xf32>
    %638 = vector.shape_cast %637 : vector<1x1x1x2x128xf32> to vector<2x128xf32>
    %c3_370 = arith.constant 3 : index
    %c1_371 = arith.constant 1 : index
    %c3_372 = arith.constant 3 : index
    %c0_373 = arith.constant 0 : index
    %c0_374 = arith.constant 0 : index
    %639 = vector.load %arg2[%c3_370, %c1_371, %c3_372, %c0_373, %c0_374] : memref<8x2x4x2x128xf32, #tpu.memory_space<vmem>>, vector<1x1x1x2x128xf32>
    %640 = vector.shape_cast %639 : vector<1x1x1x2x128xf32> to vector<2x128xf32>
    %641 = vector.broadcast %523 : f32 to vector<2x128xf32>
    %642 = arith.mulf %634, %641 : vector<2x128xf32>
    %643 = vector.broadcast %527 : f32 to vector<2x128xf32>
    %644 = arith.mulf %636, %643 : vector<2x128xf32>
    %645 = arith.addf %642, %644 : vector<2x128xf32>
    %646 = vector.broadcast %531 : f32 to vector<2x128xf32>
    %647 = arith.mulf %638, %646 : vector<2x128xf32>
    %648 = arith.addf %645, %647 : vector<2x128xf32>
    %649 = vector.broadcast %535 : f32 to vector<2x128xf32>
    %650 = arith.mulf %640, %649 : vector<2x128xf32>
    %651 = arith.addf %648, %650 : vector<2x128xf32>
    %652 = vector.broadcast %570 : f32 to vector<2x128xf32>
    %653 = arith.addf %651, %652 : vector<2x128xf32>
    %c3_375 = arith.constant 3 : index
    %c1_376 = arith.constant 1 : index
    %c0_377 = arith.constant 0 : index
    %c0_378 = arith.constant 0 : index
    %c0_379 = arith.constant 0 : index
    %654 = vector.load %arg5[%c3_375, %c1_376, %c0_377, %c0_378, %c0_379] : memref<8x2x3x2x128xf32, #tpu.memory_space<vmem>>, vector<1x1x1x2x128xf32>
    %655 = vector.shape_cast %654 : vector<1x1x1x2x128xf32> to vector<2x128xf32>
    %656 = vector.shape_cast %653 : vector<2x128xf32> to vector<1x1x1x2x128xf32>
    tpu.vector_store %arg5[%c3_375, %c1_376, %c0_377, %c0_378, %c0_379], %656 {strides = array<i32>} : memref<8x2x3x2x128xf32, #tpu.memory_space<vmem>>, vector<1x1x1x2x128xf32>,
    %657 = vector.broadcast %539 : f32 to vector<2x128xf32>
    %658 = arith.mulf %634, %657 : vector<2x128xf32>
    %659 = vector.broadcast %543 : f32 to vector<2x128xf32>
    %660 = arith.mulf %636, %659 : vector<2x128xf32>
    %661 = arith.addf %658, %660 : vector<2x128xf32>
    %662 = vector.broadcast %547 : f32 to vector<2x128xf32>
    %663 = arith.mulf %638, %662 : vector<2x128xf32>
    %664 = arith.addf %661, %663 : vector<2x128xf32>
    %665 = vector.broadcast %551 : f32 to vector<2x128xf32>
    %666 = arith.mulf %640, %665 : vector<2x128xf32>
    %667 = arith.addf %664, %666 : vector<2x128xf32>
    %668 = vector.broadcast %573 : f32 to vector<2x128xf32>
    %669 = arith.addf %667, %668 : vector<2x128xf32>
    %c3_380 = arith.constant 3 : index
    %c1_381 = arith.constant 1 : index
    %c1_382 = arith.constant 1 : index
    %c0_383 = arith.constant 0 : index
    %c0_384 = arith.constant 0 : index
    %670 = vector.load %arg5[%c3_380, %c1_381, %c1_382, %c0_383, %c0_384] : memref<8x2x3x2x128xf32, #tpu.memory_space<vmem>>, vector<1x1x1x2x128xf32>
    %671 = vector.shape_cast %670 : vector<1x1x1x2x128xf32> to vector<2x128xf32>
    %672 = vector.shape_cast %669 : vector<2x128xf32> to vector<1x1x1x2x128xf32>
    tpu.vector_store %arg5[%c3_380, %c1_381, %c1_382, %c0_383, %c0_384], %672 {strides = array<i32>} : memref<8x2x3x2x128xf32, #tpu.memory_space<vmem>>, vector<1x1x1x2x128xf32>,
    %673 = vector.broadcast %555 : f32 to vector<2x128xf32>
    %674 = arith.mulf %634, %673 : vector<2x128xf32>
    %675 = vector.broadcast %559 : f32 to vector<2x128xf32>
    %676 = arith.mulf %636, %675 : vector<2x128xf32>
    %677 = arith.addf %674, %676 : vector<2x128xf32>
    %678 = vector.broadcast %563 : f32 to vector<2x128xf32>
    %679 = arith.mulf %638, %678 : vector<2x128xf32>
    %680 = arith.addf %677, %679 : vector<2x128xf32>
    %681 = vector.broadcast %567 : f32 to vector<2x128xf32>
    %682 = arith.mulf %640, %681 : vector<2x128xf32>
    %683 = arith.addf %680, %682 : vector<2x128xf32>
    %684 = vector.broadcast %576 : f32 to vector<2x128xf32>
    %685 = arith.addf %683, %684 : vector<2x128xf32>
    %c3_385 = arith.constant 3 : index
    %c1_386 = arith.constant 1 : index
    %c2_387 = arith.constant 2 : index
    %c0_388 = arith.constant 0 : index
    %c0_389 = arith.constant 0 : index
    %686 = vector.load %arg5[%c3_385, %c1_386, %c2_387, %c0_388, %c0_389] : memref<8x2x3x2x128xf32, #tpu.memory_space<vmem>>, vector<1x1x1x2x128xf32>
    %687 = vector.shape_cast %686 : vector<1x1x1x2x128xf32> to vector<2x128xf32>
    %688 = vector.shape_cast %685 : vector<2x128xf32> to vector<1x1x1x2x128xf32>
    tpu.vector_store %arg5[%c3_385, %c1_386, %c2_387, %c0_388, %c0_389], %688 {strides = array<i32>} : memref<8x2x3x2x128xf32, #tpu.memory_space<vmem>>, vector<1x1x1x2x128xf32>,
    %c4_i32_390 = arith.constant 4 : i32
    %689 = arith.addi %0, %c4_i32_390 : i32
    %c12_i32_391 = arith.constant 12 : i32
    %690 = arith.muli %689, %c12_i32_391 : i32
    %c3_i32_392 = arith.constant 3 : i32
    %691 = arith.muli %689, %c3_i32_392 : i32
    %c0_i32_393 = arith.constant 0 : i32
    %692 = arith.addi %690, %c0_i32_393 : i32
    %c0_i32_394 = arith.constant 0 : i32
    %693 = arith.addi %692, %c0_i32_394 : i32
    %694 = arith.index_cast %693 : i32 to index
    %695 = memref.load %arg3[%694] : memref<96xf32, #tpu.memory_space<smem>>
    %c0_i32_395 = arith.constant 0 : i32
    %696 = arith.addi %690, %c0_i32_395 : i32
    %c1_i32_396 = arith.constant 1 : i32
    %697 = arith.addi %696, %c1_i32_396 : i32
    %698 = arith.index_cast %697 : i32 to index
    %699 = memref.load %arg3[%698] : memref<96xf32, #tpu.memory_space<smem>>
    %c0_i32_397 = arith.constant 0 : i32
    %700 = arith.addi %690, %c0_i32_397 : i32
    %c2_i32_398 = arith.constant 2 : i32
    %701 = arith.addi %700, %c2_i32_398 : i32
    %702 = arith.index_cast %701 : i32 to index
    %703 = memref.load %arg3[%702] : memref<96xf32, #tpu.memory_space<smem>>
    %c0_i32_399 = arith.constant 0 : i32
    %704 = arith.addi %690, %c0_i32_399 : i32
    %c3_i32_400 = arith.constant 3 : i32
    %705 = arith.addi %704, %c3_i32_400 : i32
    %706 = arith.index_cast %705 : i32 to index
    %707 = memref.load %arg3[%706] : memref<96xf32, #tpu.memory_space<smem>>
    %c4_i32_401 = arith.constant 4 : i32
    %708 = arith.addi %690, %c4_i32_401 : i32
    %c0_i32_402 = arith.constant 0 : i32
    %709 = arith.addi %708, %c0_i32_402 : i32
    %710 = arith.index_cast %709 : i32 to index
    %711 = memref.load %arg3[%710] : memref<96xf32, #tpu.memory_space<smem>>
    %c4_i32_403 = arith.constant 4 : i32
    %712 = arith.addi %690, %c4_i32_403 : i32
    %c1_i32_404 = arith.constant 1 : i32
    %713 = arith.addi %712, %c1_i32_404 : i32
    %714 = arith.index_cast %713 : i32 to index
    %715 = memref.load %arg3[%714] : memref<96xf32, #tpu.memory_space<smem>>
    %c4_i32_405 = arith.constant 4 : i32
    %716 = arith.addi %690, %c4_i32_405 : i32
    %c2_i32_406 = arith.constant 2 : i32
    %717 = arith.addi %716, %c2_i32_406 : i32
    %718 = arith.index_cast %717 : i32 to index
    %719 = memref.load %arg3[%718] : memref<96xf32, #tpu.memory_space<smem>>
    %c4_i32_407 = arith.constant 4 : i32
    %720 = arith.addi %690, %c4_i32_407 : i32
    %c3_i32_408 = arith.constant 3 : i32
    %721 = arith.addi %720, %c3_i32_408 : i32
    %722 = arith.index_cast %721 : i32 to index
    %723 = memref.load %arg3[%722] : memref<96xf32, #tpu.memory_space<smem>>
    %c8_i32_409 = arith.constant 8 : i32
    %724 = arith.addi %690, %c8_i32_409 : i32
    %c0_i32_410 = arith.constant 0 : i32
    %725 = arith.addi %724, %c0_i32_410 : i32
    %726 = arith.index_cast %725 : i32 to index
    %727 = memref.load %arg3[%726] : memref<96xf32, #tpu.memory_space<smem>>
    %c8_i32_411 = arith.constant 8 : i32
    %728 = arith.addi %690, %c8_i32_411 : i32
    %c1_i32_412 = arith.constant 1 : i32
    %729 = arith.addi %728, %c1_i32_412 : i32
    %730 = arith.index_cast %729 : i32 to index
    %731 = memref.load %arg3[%730] : memref<96xf32, #tpu.memory_space<smem>>
    %c8_i32_413 = arith.constant 8 : i32
    %732 = arith.addi %690, %c8_i32_413 : i32
    %c2_i32_414 = arith.constant 2 : i32
    %733 = arith.addi %732, %c2_i32_414 : i32
    %734 = arith.index_cast %733 : i32 to index
    %735 = memref.load %arg3[%734] : memref<96xf32, #tpu.memory_space<smem>>
    %c8_i32_415 = arith.constant 8 : i32
    %736 = arith.addi %690, %c8_i32_415 : i32
    %c3_i32_416 = arith.constant 3 : i32
    %737 = arith.addi %736, %c3_i32_416 : i32
    %738 = arith.index_cast %737 : i32 to index
    %739 = memref.load %arg3[%738] : memref<96xf32, #tpu.memory_space<smem>>
    %c0_i32_417 = arith.constant 0 : i32
    %740 = arith.addi %691, %c0_i32_417 : i32
    %741 = arith.index_cast %740 : i32 to index
    %742 = memref.load %arg4[%741] : memref<24xf32, #tpu.memory_space<smem>>
    %c1_i32_418 = arith.constant 1 : i32
    %743 = arith.addi %691, %c1_i32_418 : i32
    %744 = arith.index_cast %743 : i32 to index
    %745 = memref.load %arg4[%744] : memref<24xf32, #tpu.memory_space<smem>>
    %c2_i32_419 = arith.constant 2 : i32
    %746 = arith.addi %691, %c2_i32_419 : i32
    %747 = arith.index_cast %746 : i32 to index
    %748 = memref.load %arg4[%747] : memref<24xf32, #tpu.memory_space<smem>>
    %c4 = arith.constant 4 : index
    %c0_420 = arith.constant 0 : index
    %c0_421 = arith.constant 0 : index
    %c0_422 = arith.constant 0 : index
    %c0_423 = arith.constant 0 : index
    %749 = vector.load %arg2[%c4, %c0_420, %c0_421, %c0_422, %c0_423] : memref<8x2x4x2x128xf32, #tpu.memory_space<vmem>>, vector<1x1x1x2x128xf32>
    %750 = vector.shape_cast %749 : vector<1x1x1x2x128xf32> to vector<2x128xf32>
    %c4_424 = arith.constant 4 : index
    %c0_425 = arith.constant 0 : index
    %c1_426 = arith.constant 1 : index
    %c0_427 = arith.constant 0 : index
    %c0_428 = arith.constant 0 : index
    %751 = vector.load %arg2[%c4_424, %c0_425, %c1_426, %c0_427, %c0_428] : memref<8x2x4x2x128xf32, #tpu.memory_space<vmem>>, vector<1x1x1x2x128xf32>
    %752 = vector.shape_cast %751 : vector<1x1x1x2x128xf32> to vector<2x128xf32>
    %c4_429 = arith.constant 4 : index
    %c0_430 = arith.constant 0 : index
    %c2_431 = arith.constant 2 : index
    %c0_432 = arith.constant 0 : index
    %c0_433 = arith.constant 0 : index
    %753 = vector.load %arg2[%c4_429, %c0_430, %c2_431, %c0_432, %c0_433] : memref<8x2x4x2x128xf32, #tpu.memory_space<vmem>>, vector<1x1x1x2x128xf32>
    %754 = vector.shape_cast %753 : vector<1x1x1x2x128xf32> to vector<2x128xf32>
    %c4_434 = arith.constant 4 : index
    %c0_435 = arith.constant 0 : index
    %c3_436 = arith.constant 3 : index
    %c0_437 = arith.constant 0 : index
    %c0_438 = arith.constant 0 : index
    %755 = vector.load %arg2[%c4_434, %c0_435, %c3_436, %c0_437, %c0_438] : memref<8x2x4x2x128xf32, #tpu.memory_space<vmem>>, vector<1x1x1x2x128xf32>
    %756 = vector.shape_cast %755 : vector<1x1x1x2x128xf32> to vector<2x128xf32>
    %757 = vector.broadcast %695 : f32 to vector<2x128xf32>
    %758 = arith.mulf %750, %757 : vector<2x128xf32>
    %759 = vector.broadcast %699 : f32 to vector<2x128xf32>
    %760 = arith.mulf %752, %759 : vector<2x128xf32>
    %761 = arith.addf %758, %760 : vector<2x128xf32>
    %762 = vector.broadcast %703 : f32 to vector<2x128xf32>
    %763 = arith.mulf %754, %762 : vector<2x128xf32>
    %764 = arith.addf %761, %763 : vector<2x128xf32>
    %765 = vector.broadcast %707 : f32 to vector<2x128xf32>
    %766 = arith.mulf %756, %765 : vector<2x128xf32>
    %767 = arith.addf %764, %766 : vector<2x128xf32>
    %768 = vector.broadcast %742 : f32 to vector<2x128xf32>
    %769 = arith.addf %767, %768 : vector<2x128xf32>
    %c4_439 = arith.constant 4 : index
    %c0_440 = arith.constant 0 : index
    %c0_441 = arith.constant 0 : index
    %c0_442 = arith.constant 0 : index
    %c0_443 = arith.constant 0 : index
    %770 = vector.load %arg5[%c4_439, %c0_440, %c0_441, %c0_442, %c0_443] : memref<8x2x3x2x128xf32, #tpu.memory_space<vmem>>, vector<1x1x1x2x128xf32>
    %771 = vector.shape_cast %770 : vector<1x1x1x2x128xf32> to vector<2x128xf32>
    %772 = vector.shape_cast %769 : vector<2x128xf32> to vector<1x1x1x2x128xf32>
    tpu.vector_store %arg5[%c4_439, %c0_440, %c0_441, %c0_442, %c0_443], %772 {strides = array<i32>} : memref<8x2x3x2x128xf32, #tpu.memory_space<vmem>>, vector<1x1x1x2x128xf32>,
    %773 = vector.broadcast %711 : f32 to vector<2x128xf32>
    %774 = arith.mulf %750, %773 : vector<2x128xf32>
    %775 = vector.broadcast %715 : f32 to vector<2x128xf32>
    %776 = arith.mulf %752, %775 : vector<2x128xf32>
    %777 = arith.addf %774, %776 : vector<2x128xf32>
    %778 = vector.broadcast %719 : f32 to vector<2x128xf32>
    %779 = arith.mulf %754, %778 : vector<2x128xf32>
    %780 = arith.addf %777, %779 : vector<2x128xf32>
    %781 = vector.broadcast %723 : f32 to vector<2x128xf32>
    %782 = arith.mulf %756, %781 : vector<2x128xf32>
    %783 = arith.addf %780, %782 : vector<2x128xf32>
    %784 = vector.broadcast %745 : f32 to vector<2x128xf32>
    %785 = arith.addf %783, %784 : vector<2x128xf32>
    %c4_444 = arith.constant 4 : index
    %c0_445 = arith.constant 0 : index
    %c1_446 = arith.constant 1 : index
    %c0_447 = arith.constant 0 : index
    %c0_448 = arith.constant 0 : index
    %786 = vector.load %arg5[%c4_444, %c0_445, %c1_446, %c0_447, %c0_448] : memref<8x2x3x2x128xf32, #tpu.memory_space<vmem>>, vector<1x1x1x2x128xf32>
    %787 = vector.shape_cast %786 : vector<1x1x1x2x128xf32> to vector<2x128xf32>
    %788 = vector.shape_cast %785 : vector<2x128xf32> to vector<1x1x1x2x128xf32>
    tpu.vector_store %arg5[%c4_444, %c0_445, %c1_446, %c0_447, %c0_448], %788 {strides = array<i32>} : memref<8x2x3x2x128xf32, #tpu.memory_space<vmem>>, vector<1x1x1x2x128xf32>,
    %789 = vector.broadcast %727 : f32 to vector<2x128xf32>
    %790 = arith.mulf %750, %789 : vector<2x128xf32>
    %791 = vector.broadcast %731 : f32 to vector<2x128xf32>
    %792 = arith.mulf %752, %791 : vector<2x128xf32>
    %793 = arith.addf %790, %792 : vector<2x128xf32>
    %794 = vector.broadcast %735 : f32 to vector<2x128xf32>
    %795 = arith.mulf %754, %794 : vector<2x128xf32>
    %796 = arith.addf %793, %795 : vector<2x128xf32>
    %797 = vector.broadcast %739 : f32 to vector<2x128xf32>
    %798 = arith.mulf %756, %797 : vector<2x128xf32>
    %799 = arith.addf %796, %798 : vector<2x128xf32>
    %800 = vector.broadcast %748 : f32 to vector<2x128xf32>
    %801 = arith.addf %799, %800 : vector<2x128xf32>
    %c4_449 = arith.constant 4 : index
    %c0_450 = arith.constant 0 : index
    %c2_451 = arith.constant 2 : index
    %c0_452 = arith.constant 0 : index
    %c0_453 = arith.constant 0 : index
    %802 = vector.load %arg5[%c4_449, %c0_450, %c2_451, %c0_452, %c0_453] : memref<8x2x3x2x128xf32, #tpu.memory_space<vmem>>, vector<1x1x1x2x128xf32>
    %803 = vector.shape_cast %802 : vector<1x1x1x2x128xf32> to vector<2x128xf32>
    %804 = vector.shape_cast %801 : vector<2x128xf32> to vector<1x1x1x2x128xf32>
    tpu.vector_store %arg5[%c4_449, %c0_450, %c2_451, %c0_452, %c0_453], %804 {strides = array<i32>} : memref<8x2x3x2x128xf32, #tpu.memory_space<vmem>>, vector<1x1x1x2x128xf32>,
    %c4_454 = arith.constant 4 : index
    %c1_455 = arith.constant 1 : index
    %c0_456 = arith.constant 0 : index
    %c0_457 = arith.constant 0 : index
    %c0_458 = arith.constant 0 : index
    %805 = vector.load %arg2[%c4_454, %c1_455, %c0_456, %c0_457, %c0_458] : memref<8x2x4x2x128xf32, #tpu.memory_space<vmem>>, vector<1x1x1x2x128xf32>
    %806 = vector.shape_cast %805 : vector<1x1x1x2x128xf32> to vector<2x128xf32>
    %c4_459 = arith.constant 4 : index
    %c1_460 = arith.constant 1 : index
    %c1_461 = arith.constant 1 : index
    %c0_462 = arith.constant 0 : index
    %c0_463 = arith.constant 0 : index
    %807 = vector.load %arg2[%c4_459, %c1_460, %c1_461, %c0_462, %c0_463] : memref<8x2x4x2x128xf32, #tpu.memory_space<vmem>>, vector<1x1x1x2x128xf32>
    %808 = vector.shape_cast %807 : vector<1x1x1x2x128xf32> to vector<2x128xf32>
    %c4_464 = arith.constant 4 : index
    %c1_465 = arith.constant 1 : index
    %c2_466 = arith.constant 2 : index
    %c0_467 = arith.constant 0 : index
    %c0_468 = arith.constant 0 : index
    %809 = vector.load %arg2[%c4_464, %c1_465, %c2_466, %c0_467, %c0_468] : memref<8x2x4x2x128xf32, #tpu.memory_space<vmem>>, vector<1x1x1x2x128xf32>
    %810 = vector.shape_cast %809 : vector<1x1x1x2x128xf32> to vector<2x128xf32>
    %c4_469 = arith.constant 4 : index
    %c1_470 = arith.constant 1 : index
    %c3_471 = arith.constant 3 : index
    %c0_472 = arith.constant 0 : index
    %c0_473 = arith.constant 0 : index
    %811 = vector.load %arg2[%c4_469, %c1_470, %c3_471, %c0_472, %c0_473] : memref<8x2x4x2x128xf32, #tpu.memory_space<vmem>>, vector<1x1x1x2x128xf32>
    %812 = vector.shape_cast %811 : vector<1x1x1x2x128xf32> to vector<2x128xf32>
    %813 = vector.broadcast %695 : f32 to vector<2x128xf32>
    %814 = arith.mulf %806, %813 : vector<2x128xf32>
    %815 = vector.broadcast %699 : f32 to vector<2x128xf32>
    %816 = arith.mulf %808, %815 : vector<2x128xf32>
    %817 = arith.addf %814, %816 : vector<2x128xf32>
    %818 = vector.broadcast %703 : f32 to vector<2x128xf32>
    %819 = arith.mulf %810, %818 : vector<2x128xf32>
    %820 = arith.addf %817, %819 : vector<2x128xf32>
    %821 = vector.broadcast %707 : f32 to vector<2x128xf32>
    %822 = arith.mulf %812, %821 : vector<2x128xf32>
    %823 = arith.addf %820, %822 : vector<2x128xf32>
    %824 = vector.broadcast %742 : f32 to vector<2x128xf32>
    %825 = arith.addf %823, %824 : vector<2x128xf32>
    %c4_474 = arith.constant 4 : index
    %c1_475 = arith.constant 1 : index
    %c0_476 = arith.constant 0 : index
    %c0_477 = arith.constant 0 : index
    %c0_478 = arith.constant 0 : index
    %826 = vector.load %arg5[%c4_474, %c1_475, %c0_476, %c0_477, %c0_478] : memref<8x2x3x2x128xf32, #tpu.memory_space<vmem>>, vector<1x1x1x2x128xf32>
    %827 = vector.shape_cast %826 : vector<1x1x1x2x128xf32> to vector<2x128xf32>
    %828 = vector.shape_cast %825 : vector<2x128xf32> to vector<1x1x1x2x128xf32>
    tpu.vector_store %arg5[%c4_474, %c1_475, %c0_476, %c0_477, %c0_478], %828 {strides = array<i32>} : memref<8x2x3x2x128xf32, #tpu.memory_space<vmem>>, vector<1x1x1x2x128xf32>,
    %829 = vector.broadcast %711 : f32 to vector<2x128xf32>
    %830 = arith.mulf %806, %829 : vector<2x128xf32>
    %831 = vector.broadcast %715 : f32 to vector<2x128xf32>
    %832 = arith.mulf %808, %831 : vector<2x128xf32>
    %833 = arith.addf %830, %832 : vector<2x128xf32>
    %834 = vector.broadcast %719 : f32 to vector<2x128xf32>
    %835 = arith.mulf %810, %834 : vector<2x128xf32>
    %836 = arith.addf %833, %835 : vector<2x128xf32>
    %837 = vector.broadcast %723 : f32 to vector<2x128xf32>
    %838 = arith.mulf %812, %837 : vector<2x128xf32>
    %839 = arith.addf %836, %838 : vector<2x128xf32>
    %840 = vector.broadcast %745 : f32 to vector<2x128xf32>
    %841 = arith.addf %839, %840 : vector<2x128xf32>
    %c4_479 = arith.constant 4 : index
    %c1_480 = arith.constant 1 : index
    %c1_481 = arith.constant 1 : index
    %c0_482 = arith.constant 0 : index
    %c0_483 = arith.constant 0 : index
    %842 = vector.load %arg5[%c4_479, %c1_480, %c1_481, %c0_482, %c0_483] : memref<8x2x3x2x128xf32, #tpu.memory_space<vmem>>, vector<1x1x1x2x128xf32>
    %843 = vector.shape_cast %842 : vector<1x1x1x2x128xf32> to vector<2x128xf32>
    %844 = vector.shape_cast %841 : vector<2x128xf32> to vector<1x1x1x2x128xf32>
    tpu.vector_store %arg5[%c4_479, %c1_480, %c1_481, %c0_482, %c0_483], %844 {strides = array<i32>} : memref<8x2x3x2x128xf32, #tpu.memory_space<vmem>>, vector<1x1x1x2x128xf32>,
    %845 = vector.broadcast %727 : f32 to vector<2x128xf32>
    %846 = arith.mulf %806, %845 : vector<2x128xf32>
    %847 = vector.broadcast %731 : f32 to vector<2x128xf32>
    %848 = arith.mulf %808, %847 : vector<2x128xf32>
    %849 = arith.addf %846, %848 : vector<2x128xf32>
    %850 = vector.broadcast %735 : f32 to vector<2x128xf32>
    %851 = arith.mulf %810, %850 : vector<2x128xf32>
    %852 = arith.addf %849, %851 : vector<2x128xf32>
    %853 = vector.broadcast %739 : f32 to vector<2x128xf32>
    %854 = arith.mulf %812, %853 : vector<2x128xf32>
    %855 = arith.addf %852, %854 : vector<2x128xf32>
    %856 = vector.broadcast %748 : f32 to vector<2x128xf32>
    %857 = arith.addf %855, %856 : vector<2x128xf32>
    %c4_484 = arith.constant 4 : index
    %c1_485 = arith.constant 1 : index
    %c2_486 = arith.constant 2 : index
    %c0_487 = arith.constant 0 : index
    %c0_488 = arith.constant 0 : index
    %858 = vector.load %arg5[%c4_484, %c1_485, %c2_486, %c0_487, %c0_488] : memref<8x2x3x2x128xf32, #tpu.memory_space<vmem>>, vector<1x1x1x2x128xf32>
    %859 = vector.shape_cast %858 : vector<1x1x1x2x128xf32> to vector<2x128xf32>
    %860 = vector.shape_cast %857 : vector<2x128xf32> to vector<1x1x1x2x128xf32>
    tpu.vector_store %arg5[%c4_484, %c1_485, %c2_486, %c0_487, %c0_488], %860 {strides = array<i32>} : memref<8x2x3x2x128xf32, #tpu.memory_space<vmem>>, vector<1x1x1x2x128xf32>,
    %c5_i32 = arith.constant 5 : i32
    %861 = arith.addi %0, %c5_i32 : i32
    %c12_i32_489 = arith.constant 12 : i32
    %862 = arith.muli %861, %c12_i32_489 : i32
    %c3_i32_490 = arith.constant 3 : i32
    %863 = arith.muli %861, %c3_i32_490 : i32
    %c0_i32_491 = arith.constant 0 : i32
    %864 = arith.addi %862, %c0_i32_491 : i32
    %c0_i32_492 = arith.constant 0 : i32
    %865 = arith.addi %864, %c0_i32_492 : i32
    %866 = arith.index_cast %865 : i32 to index
    %867 = memref.load %arg3[%866] : memref<96xf32, #tpu.memory_space<smem>>
    %c0_i32_493 = arith.constant 0 : i32
    %868 = arith.addi %862, %c0_i32_493 : i32
    %c1_i32_494 = arith.constant 1 : i32
    %869 = arith.addi %868, %c1_i32_494 : i32
    %870 = arith.index_cast %869 : i32 to index
    %871 = memref.load %arg3[%870] : memref<96xf32, #tpu.memory_space<smem>>
    %c0_i32_495 = arith.constant 0 : i32
    %872 = arith.addi %862, %c0_i32_495 : i32
    %c2_i32_496 = arith.constant 2 : i32
    %873 = arith.addi %872, %c2_i32_496 : i32
    %874 = arith.index_cast %873 : i32 to index
    %875 = memref.load %arg3[%874] : memref<96xf32, #tpu.memory_space<smem>>
    %c0_i32_497 = arith.constant 0 : i32
    %876 = arith.addi %862, %c0_i32_497 : i32
    %c3_i32_498 = arith.constant 3 : i32
    %877 = arith.addi %876, %c3_i32_498 : i32
    %878 = arith.index_cast %877 : i32 to index
    %879 = memref.load %arg3[%878] : memref<96xf32, #tpu.memory_space<smem>>
    %c4_i32_499 = arith.constant 4 : i32
    %880 = arith.addi %862, %c4_i32_499 : i32
    %c0_i32_500 = arith.constant 0 : i32
    %881 = arith.addi %880, %c0_i32_500 : i32
    %882 = arith.index_cast %881 : i32 to index
    %883 = memref.load %arg3[%882] : memref<96xf32, #tpu.memory_space<smem>>
    %c4_i32_501 = arith.constant 4 : i32
    %884 = arith.addi %862, %c4_i32_501 : i32
    %c1_i32_502 = arith.constant 1 : i32
    %885 = arith.addi %884, %c1_i32_502 : i32
    %886 = arith.index_cast %885 : i32 to index
    %887 = memref.load %arg3[%886] : memref<96xf32, #tpu.memory_space<smem>>
    %c4_i32_503 = arith.constant 4 : i32
    %888 = arith.addi %862, %c4_i32_503 : i32
    %c2_i32_504 = arith.constant 2 : i32
    %889 = arith.addi %888, %c2_i32_504 : i32
    %890 = arith.index_cast %889 : i32 to index
    %891 = memref.load %arg3[%890] : memref<96xf32, #tpu.memory_space<smem>>
    %c4_i32_505 = arith.constant 4 : i32
    %892 = arith.addi %862, %c4_i32_505 : i32
    %c3_i32_506 = arith.constant 3 : i32
    %893 = arith.addi %892, %c3_i32_506 : i32
    %894 = arith.index_cast %893 : i32 to index
    %895 = memref.load %arg3[%894] : memref<96xf32, #tpu.memory_space<smem>>
    %c8_i32_507 = arith.constant 8 : i32
    %896 = arith.addi %862, %c8_i32_507 : i32
    %c0_i32_508 = arith.constant 0 : i32
    %897 = arith.addi %896, %c0_i32_508 : i32
    %898 = arith.index_cast %897 : i32 to index
    %899 = memref.load %arg3[%898] : memref<96xf32, #tpu.memory_space<smem>>
    %c8_i32_509 = arith.constant 8 : i32
    %900 = arith.addi %862, %c8_i32_509 : i32
    %c1_i32_510 = arith.constant 1 : i32
    %901 = arith.addi %900, %c1_i32_510 : i32
    %902 = arith.index_cast %901 : i32 to index
    %903 = memref.load %arg3[%902] : memref<96xf32, #tpu.memory_space<smem>>
    %c8_i32_511 = arith.constant 8 : i32
    %904 = arith.addi %862, %c8_i32_511 : i32
    %c2_i32_512 = arith.constant 2 : i32
    %905 = arith.addi %904, %c2_i32_512 : i32
    %906 = arith.index_cast %905 : i32 to index
    %907 = memref.load %arg3[%906] : memref<96xf32, #tpu.memory_space<smem>>
    %c8_i32_513 = arith.constant 8 : i32
    %908 = arith.addi %862, %c8_i32_513 : i32
    %c3_i32_514 = arith.constant 3 : i32
    %909 = arith.addi %908, %c3_i32_514 : i32
    %910 = arith.index_cast %909 : i32 to index
    %911 = memref.load %arg3[%910] : memref<96xf32, #tpu.memory_space<smem>>
    %c0_i32_515 = arith.constant 0 : i32
    %912 = arith.addi %863, %c0_i32_515 : i32
    %913 = arith.index_cast %912 : i32 to index
    %914 = memref.load %arg4[%913] : memref<24xf32, #tpu.memory_space<smem>>
    %c1_i32_516 = arith.constant 1 : i32
    %915 = arith.addi %863, %c1_i32_516 : i32
    %916 = arith.index_cast %915 : i32 to index
    %917 = memref.load %arg4[%916] : memref<24xf32, #tpu.memory_space<smem>>
    %c2_i32_517 = arith.constant 2 : i32
    %918 = arith.addi %863, %c2_i32_517 : i32
    %919 = arith.index_cast %918 : i32 to index
    %920 = memref.load %arg4[%919] : memref<24xf32, #tpu.memory_space<smem>>
    %c5 = arith.constant 5 : index
    %c0_518 = arith.constant 0 : index
    %c0_519 = arith.constant 0 : index
    %c0_520 = arith.constant 0 : index
    %c0_521 = arith.constant 0 : index
    %921 = vector.load %arg2[%c5, %c0_518, %c0_519, %c0_520, %c0_521] : memref<8x2x4x2x128xf32, #tpu.memory_space<vmem>>, vector<1x1x1x2x128xf32>
    %922 = vector.shape_cast %921 : vector<1x1x1x2x128xf32> to vector<2x128xf32>
    %c5_522 = arith.constant 5 : index
    %c0_523 = arith.constant 0 : index
    %c1_524 = arith.constant 1 : index
    %c0_525 = arith.constant 0 : index
    %c0_526 = arith.constant 0 : index
    %923 = vector.load %arg2[%c5_522, %c0_523, %c1_524, %c0_525, %c0_526] : memref<8x2x4x2x128xf32, #tpu.memory_space<vmem>>, vector<1x1x1x2x128xf32>
    %924 = vector.shape_cast %923 : vector<1x1x1x2x128xf32> to vector<2x128xf32>
    %c5_527 = arith.constant 5 : index
    %c0_528 = arith.constant 0 : index
    %c2_529 = arith.constant 2 : index
    %c0_530 = arith.constant 0 : index
    %c0_531 = arith.constant 0 : index
    %925 = vector.load %arg2[%c5_527, %c0_528, %c2_529, %c0_530, %c0_531] : memref<8x2x4x2x128xf32, #tpu.memory_space<vmem>>, vector<1x1x1x2x128xf32>
    %926 = vector.shape_cast %925 : vector<1x1x1x2x128xf32> to vector<2x128xf32>
    %c5_532 = arith.constant 5 : index
    %c0_533 = arith.constant 0 : index
    %c3_534 = arith.constant 3 : index
    %c0_535 = arith.constant 0 : index
    %c0_536 = arith.constant 0 : index
    %927 = vector.load %arg2[%c5_532, %c0_533, %c3_534, %c0_535, %c0_536] : memref<8x2x4x2x128xf32, #tpu.memory_space<vmem>>, vector<1x1x1x2x128xf32>
    %928 = vector.shape_cast %927 : vector<1x1x1x2x128xf32> to vector<2x128xf32>
    %929 = vector.broadcast %867 : f32 to vector<2x128xf32>
    %930 = arith.mulf %922, %929 : vector<2x128xf32>
    %931 = vector.broadcast %871 : f32 to vector<2x128xf32>
    %932 = arith.mulf %924, %931 : vector<2x128xf32>
    %933 = arith.addf %930, %932 : vector<2x128xf32>
    %934 = vector.broadcast %875 : f32 to vector<2x128xf32>
    %935 = arith.mulf %926, %934 : vector<2x128xf32>
    %936 = arith.addf %933, %935 : vector<2x128xf32>
    %937 = vector.broadcast %879 : f32 to vector<2x128xf32>
    %938 = arith.mulf %928, %937 : vector<2x128xf32>
    %939 = arith.addf %936, %938 : vector<2x128xf32>
    %940 = vector.broadcast %914 : f32 to vector<2x128xf32>
    %941 = arith.addf %939, %940 : vector<2x128xf32>
    %c5_537 = arith.constant 5 : index
    %c0_538 = arith.constant 0 : index
    %c0_539 = arith.constant 0 : index
    %c0_540 = arith.constant 0 : index
    %c0_541 = arith.constant 0 : index
    %942 = vector.load %arg5[%c5_537, %c0_538, %c0_539, %c0_540, %c0_541] : memref<8x2x3x2x128xf32, #tpu.memory_space<vmem>>, vector<1x1x1x2x128xf32>
    %943 = vector.shape_cast %942 : vector<1x1x1x2x128xf32> to vector<2x128xf32>
    %944 = vector.shape_cast %941 : vector<2x128xf32> to vector<1x1x1x2x128xf32>
    tpu.vector_store %arg5[%c5_537, %c0_538, %c0_539, %c0_540, %c0_541], %944 {strides = array<i32>} : memref<8x2x3x2x128xf32, #tpu.memory_space<vmem>>, vector<1x1x1x2x128xf32>,
    %945 = vector.broadcast %883 : f32 to vector<2x128xf32>
    %946 = arith.mulf %922, %945 : vector<2x128xf32>
    %947 = vector.broadcast %887 : f32 to vector<2x128xf32>
    %948 = arith.mulf %924, %947 : vector<2x128xf32>
    %949 = arith.addf %946, %948 : vector<2x128xf32>
    %950 = vector.broadcast %891 : f32 to vector<2x128xf32>
    %951 = arith.mulf %926, %950 : vector<2x128xf32>
    %952 = arith.addf %949, %951 : vector<2x128xf32>
    %953 = vector.broadcast %895 : f32 to vector<2x128xf32>
    %954 = arith.mulf %928, %953 : vector<2x128xf32>
    %955 = arith.addf %952, %954 : vector<2x128xf32>
    %956 = vector.broadcast %917 : f32 to vector<2x128xf32>
    %957 = arith.addf %955, %956 : vector<2x128xf32>
    %c5_542 = arith.constant 5 : index
    %c0_543 = arith.constant 0 : index
    %c1_544 = arith.constant 1 : index
    %c0_545 = arith.constant 0 : index
    %c0_546 = arith.constant 0 : index
    %958 = vector.load %arg5[%c5_542, %c0_543, %c1_544, %c0_545, %c0_546] : memref<8x2x3x2x128xf32, #tpu.memory_space<vmem>>, vector<1x1x1x2x128xf32>
    %959 = vector.shape_cast %958 : vector<1x1x1x2x128xf32> to vector<2x128xf32>
    %960 = vector.shape_cast %957 : vector<2x128xf32> to vector<1x1x1x2x128xf32>
    tpu.vector_store %arg5[%c5_542, %c0_543, %c1_544, %c0_545, %c0_546], %960 {strides = array<i32>} : memref<8x2x3x2x128xf32, #tpu.memory_space<vmem>>, vector<1x1x1x2x128xf32>,
    %961 = vector.broadcast %899 : f32 to vector<2x128xf32>
    %962 = arith.mulf %922, %961 : vector<2x128xf32>
    %963 = vector.broadcast %903 : f32 to vector<2x128xf32>
    %964 = arith.mulf %924, %963 : vector<2x128xf32>
    %965 = arith.addf %962, %964 : vector<2x128xf32>
    %966 = vector.broadcast %907 : f32 to vector<2x128xf32>
    %967 = arith.mulf %926, %966 : vector<2x128xf32>
    %968 = arith.addf %965, %967 : vector<2x128xf32>
    %969 = vector.broadcast %911 : f32 to vector<2x128xf32>
    %970 = arith.mulf %928, %969 : vector<2x128xf32>
    %971 = arith.addf %968, %970 : vector<2x128xf32>
    %972 = vector.broadcast %920 : f32 to vector<2x128xf32>
    %973 = arith.addf %971, %972 : vector<2x128xf32>
    %c5_547 = arith.constant 5 : index
    %c0_548 = arith.constant 0 : index
    %c2_549 = arith.constant 2 : index
    %c0_550 = arith.constant 0 : index
    %c0_551 = arith.constant 0 : index
    %974 = vector.load %arg5[%c5_547, %c0_548, %c2_549, %c0_550, %c0_551] : memref<8x2x3x2x128xf32, #tpu.memory_space<vmem>>, vector<1x1x1x2x128xf32>
    %975 = vector.shape_cast %974 : vector<1x1x1x2x128xf32> to vector<2x128xf32>
    %976 = vector.shape_cast %973 : vector<2x128xf32> to vector<1x1x1x2x128xf32>
    tpu.vector_store %arg5[%c5_547, %c0_548, %c2_549, %c0_550, %c0_551], %976 {strides = array<i32>} : memref<8x2x3x2x128xf32, #tpu.memory_space<vmem>>, vector<1x1x1x2x128xf32>,
    %c5_552 = arith.constant 5 : index
    %c1_553 = arith.constant 1 : index
    %c0_554 = arith.constant 0 : index
    %c0_555 = arith.constant 0 : index
    %c0_556 = arith.constant 0 : index
    %977 = vector.load %arg2[%c5_552, %c1_553, %c0_554, %c0_555, %c0_556] : memref<8x2x4x2x128xf32, #tpu.memory_space<vmem>>, vector<1x1x1x2x128xf32>
    %978 = vector.shape_cast %977 : vector<1x1x1x2x128xf32> to vector<2x128xf32>
    %c5_557 = arith.constant 5 : index
    %c1_558 = arith.constant 1 : index
    %c1_559 = arith.constant 1 : index
    %c0_560 = arith.constant 0 : index
    %c0_561 = arith.constant 0 : index
    %979 = vector.load %arg2[%c5_557, %c1_558, %c1_559, %c0_560, %c0_561] : memref<8x2x4x2x128xf32, #tpu.memory_space<vmem>>, vector<1x1x1x2x128xf32>
    %980 = vector.shape_cast %979 : vector<1x1x1x2x128xf32> to vector<2x128xf32>
    %c5_562 = arith.constant 5 : index
    %c1_563 = arith.constant 1 : index
    %c2_564 = arith.constant 2 : index
    %c0_565 = arith.constant 0 : index
    %c0_566 = arith.constant 0 : index
    %981 = vector.load %arg2[%c5_562, %c1_563, %c2_564, %c0_565, %c0_566] : memref<8x2x4x2x128xf32, #tpu.memory_space<vmem>>, vector<1x1x1x2x128xf32>
    %982 = vector.shape_cast %981 : vector<1x1x1x2x128xf32> to vector<2x128xf32>
    %c5_567 = arith.constant 5 : index
    %c1_568 = arith.constant 1 : index
    %c3_569 = arith.constant 3 : index
    %c0_570 = arith.constant 0 : index
    %c0_571 = arith.constant 0 : index
    %983 = vector.load %arg2[%c5_567, %c1_568, %c3_569, %c0_570, %c0_571] : memref<8x2x4x2x128xf32, #tpu.memory_space<vmem>>, vector<1x1x1x2x128xf32>
    %984 = vector.shape_cast %983 : vector<1x1x1x2x128xf32> to vector<2x128xf32>
    %985 = vector.broadcast %867 : f32 to vector<2x128xf32>
    %986 = arith.mulf %978, %985 : vector<2x128xf32>
    %987 = vector.broadcast %871 : f32 to vector<2x128xf32>
    %988 = arith.mulf %980, %987 : vector<2x128xf32>
    %989 = arith.addf %986, %988 : vector<2x128xf32>
    %990 = vector.broadcast %875 : f32 to vector<2x128xf32>
    %991 = arith.mulf %982, %990 : vector<2x128xf32>
    %992 = arith.addf %989, %991 : vector<2x128xf32>
    %993 = vector.broadcast %879 : f32 to vector<2x128xf32>
    %994 = arith.mulf %984, %993 : vector<2x128xf32>
    %995 = arith.addf %992, %994 : vector<2x128xf32>
    %996 = vector.broadcast %914 : f32 to vector<2x128xf32>
    %997 = arith.addf %995, %996 : vector<2x128xf32>
    %c5_572 = arith.constant 5 : index
    %c1_573 = arith.constant 1 : index
    %c0_574 = arith.constant 0 : index
    %c0_575 = arith.constant 0 : index
    %c0_576 = arith.constant 0 : index
    %998 = vector.load %arg5[%c5_572, %c1_573, %c0_574, %c0_575, %c0_576] : memref<8x2x3x2x128xf32, #tpu.memory_space<vmem>>, vector<1x1x1x2x128xf32>
    %999 = vector.shape_cast %998 : vector<1x1x1x2x128xf32> to vector<2x128xf32>
    %1000 = vector.shape_cast %997 : vector<2x128xf32> to vector<1x1x1x2x128xf32>
    tpu.vector_store %arg5[%c5_572, %c1_573, %c0_574, %c0_575, %c0_576], %1000 {strides = array<i32>} : memref<8x2x3x2x128xf32, #tpu.memory_space<vmem>>, vector<1x1x1x2x128xf32>,
    %1001 = vector.broadcast %883 : f32 to vector<2x128xf32>
    %1002 = arith.mulf %978, %1001 : vector<2x128xf32>
    %1003 = vector.broadcast %887 : f32 to vector<2x128xf32>
    %1004 = arith.mulf %980, %1003 : vector<2x128xf32>
    %1005 = arith.addf %1002, %1004 : vector<2x128xf32>
    %1006 = vector.broadcast %891 : f32 to vector<2x128xf32>
    %1007 = arith.mulf %982, %1006 : vector<2x128xf32>
    %1008 = arith.addf %1005, %1007 : vector<2x128xf32>
    %1009 = vector.broadcast %895 : f32 to vector<2x128xf32>
    %1010 = arith.mulf %984, %1009 : vector<2x128xf32>
    %1011 = arith.addf %1008, %1010 : vector<2x128xf32>
    %1012 = vector.broadcast %917 : f32 to vector<2x128xf32>
    %1013 = arith.addf %1011, %1012 : vector<2x128xf32>
    %c5_577 = arith.constant 5 : index
    %c1_578 = arith.constant 1 : index
    %c1_579 = arith.constant 1 : index
    %c0_580 = arith.constant 0 : index
    %c0_581 = arith.constant 0 : index
    %1014 = vector.load %arg5[%c5_577, %c1_578, %c1_579, %c0_580, %c0_581] : memref<8x2x3x2x128xf32, #tpu.memory_space<vmem>>, vector<1x1x1x2x128xf32>
    %1015 = vector.shape_cast %1014 : vector<1x1x1x2x128xf32> to vector<2x128xf32>
    %1016 = vector.shape_cast %1013 : vector<2x128xf32> to vector<1x1x1x2x128xf32>
    tpu.vector_store %arg5[%c5_577, %c1_578, %c1_579, %c0_580, %c0_581], %1016 {strides = array<i32>} : memref<8x2x3x2x128xf32, #tpu.memory_space<vmem>>, vector<1x1x1x2x128xf32>,
    %1017 = vector.broadcast %899 : f32 to vector<2x128xf32>
    %1018 = arith.mulf %978, %1017 : vector<2x128xf32>
    %1019 = vector.broadcast %903 : f32 to vector<2x128xf32>
    %1020 = arith.mulf %980, %1019 : vector<2x128xf32>
    %1021 = arith.addf %1018, %1020 : vector<2x128xf32>
    %1022 = vector.broadcast %907 : f32 to vector<2x128xf32>
    %1023 = arith.mulf %982, %1022 : vector<2x128xf32>
    %1024 = arith.addf %1021, %1023 : vector<2x128xf32>
    %1025 = vector.broadcast %911 : f32 to vector<2x128xf32>
    %1026 = arith.mulf %984, %1025 : vector<2x128xf32>
    %1027 = arith.addf %1024, %1026 : vector<2x128xf32>
    %1028 = vector.broadcast %920 : f32 to vector<2x128xf32>
    %1029 = arith.addf %1027, %1028 : vector<2x128xf32>
    %c5_582 = arith.constant 5 : index
    %c1_583 = arith.constant 1 : index
    %c2_584 = arith.constant 2 : index
    %c0_585 = arith.constant 0 : index
    %c0_586 = arith.constant 0 : index
    %1030 = vector.load %arg5[%c5_582, %c1_583, %c2_584, %c0_585, %c0_586] : memref<8x2x3x2x128xf32, #tpu.memory_space<vmem>>, vector<1x1x1x2x128xf32>
    %1031 = vector.shape_cast %1030 : vector<1x1x1x2x128xf32> to vector<2x128xf32>
    %1032 = vector.shape_cast %1029 : vector<2x128xf32> to vector<1x1x1x2x128xf32>
    tpu.vector_store %arg5[%c5_582, %c1_583, %c2_584, %c0_585, %c0_586], %1032 {strides = array<i32>} : memref<8x2x3x2x128xf32, #tpu.memory_space<vmem>>, vector<1x1x1x2x128xf32>,
    %c6_i32 = arith.constant 6 : i32
    %1033 = arith.addi %0, %c6_i32 : i32
    %c12_i32_587 = arith.constant 12 : i32
    %1034 = arith.muli %1033, %c12_i32_587 : i32
    %c3_i32_588 = arith.constant 3 : i32
    %1035 = arith.muli %1033, %c3_i32_588 : i32
    %c0_i32_589 = arith.constant 0 : i32
    %1036 = arith.addi %1034, %c0_i32_589 : i32
    %c0_i32_590 = arith.constant 0 : i32
    %1037 = arith.addi %1036, %c0_i32_590 : i32
    %1038 = arith.index_cast %1037 : i32 to index
    %1039 = memref.load %arg3[%1038] : memref<96xf32, #tpu.memory_space<smem>>
    %c0_i32_591 = arith.constant 0 : i32
    %1040 = arith.addi %1034, %c0_i32_591 : i32
    %c1_i32_592 = arith.constant 1 : i32
    %1041 = arith.addi %1040, %c1_i32_592 : i32
    %1042 = arith.index_cast %1041 : i32 to index
    %1043 = memref.load %arg3[%1042] : memref<96xf32, #tpu.memory_space<smem>>
    %c0_i32_593 = arith.constant 0 : i32
    %1044 = arith.addi %1034, %c0_i32_593 : i32
    %c2_i32_594 = arith.constant 2 : i32
    %1045 = arith.addi %1044, %c2_i32_594 : i32
    %1046 = arith.index_cast %1045 : i32 to index
    %1047 = memref.load %arg3[%1046] : memref<96xf32, #tpu.memory_space<smem>>
    %c0_i32_595 = arith.constant 0 : i32
    %1048 = arith.addi %1034, %c0_i32_595 : i32
    %c3_i32_596 = arith.constant 3 : i32
    %1049 = arith.addi %1048, %c3_i32_596 : i32
    %1050 = arith.index_cast %1049 : i32 to index
    %1051 = memref.load %arg3[%1050] : memref<96xf32, #tpu.memory_space<smem>>
    %c4_i32_597 = arith.constant 4 : i32
    %1052 = arith.addi %1034, %c4_i32_597 : i32
    %c0_i32_598 = arith.constant 0 : i32
    %1053 = arith.addi %1052, %c0_i32_598 : i32
    %1054 = arith.index_cast %1053 : i32 to index
    %1055 = memref.load %arg3[%1054] : memref<96xf32, #tpu.memory_space<smem>>
    %c4_i32_599 = arith.constant 4 : i32
    %1056 = arith.addi %1034, %c4_i32_599 : i32
    %c1_i32_600 = arith.constant 1 : i32
    %1057 = arith.addi %1056, %c1_i32_600 : i32
    %1058 = arith.index_cast %1057 : i32 to index
    %1059 = memref.load %arg3[%1058] : memref<96xf32, #tpu.memory_space<smem>>
    %c4_i32_601 = arith.constant 4 : i32
    %1060 = arith.addi %1034, %c4_i32_601 : i32
    %c2_i32_602 = arith.constant 2 : i32
    %1061 = arith.addi %1060, %c2_i32_602 : i32
    %1062 = arith.index_cast %1061 : i32 to index
    %1063 = memref.load %arg3[%1062] : memref<96xf32, #tpu.memory_space<smem>>
    %c4_i32_603 = arith.constant 4 : i32
    %1064 = arith.addi %1034, %c4_i32_603 : i32
    %c3_i32_604 = arith.constant 3 : i32
    %1065 = arith.addi %1064, %c3_i32_604 : i32
    %1066 = arith.index_cast %1065 : i32 to index
    %1067 = memref.load %arg3[%1066] : memref<96xf32, #tpu.memory_space<smem>>
    %c8_i32_605 = arith.constant 8 : i32
    %1068 = arith.addi %1034, %c8_i32_605 : i32
    %c0_i32_606 = arith.constant 0 : i32
    %1069 = arith.addi %1068, %c0_i32_606 : i32
    %1070 = arith.index_cast %1069 : i32 to index
    %1071 = memref.load %arg3[%1070] : memref<96xf32, #tpu.memory_space<smem>>
    %c8_i32_607 = arith.constant 8 : i32
    %1072 = arith.addi %1034, %c8_i32_607 : i32
    %c1_i32_608 = arith.constant 1 : i32
    %1073 = arith.addi %1072, %c1_i32_608 : i32
    %1074 = arith.index_cast %1073 : i32 to index
    %1075 = memref.load %arg3[%1074] : memref<96xf32, #tpu.memory_space<smem>>
    %c8_i32_609 = arith.constant 8 : i32
    %1076 = arith.addi %1034, %c8_i32_609 : i32
    %c2_i32_610 = arith.constant 2 : i32
    %1077 = arith.addi %1076, %c2_i32_610 : i32
    %1078 = arith.index_cast %1077 : i32 to index
    %1079 = memref.load %arg3[%1078] : memref<96xf32, #tpu.memory_space<smem>>
    %c8_i32_611 = arith.constant 8 : i32
    %1080 = arith.addi %1034, %c8_i32_611 : i32
    %c3_i32_612 = arith.constant 3 : i32
    %1081 = arith.addi %1080, %c3_i32_612 : i32
    %1082 = arith.index_cast %1081 : i32 to index
    %1083 = memref.load %arg3[%1082] : memref<96xf32, #tpu.memory_space<smem>>
    %c0_i32_613 = arith.constant 0 : i32
    %1084 = arith.addi %1035, %c0_i32_613 : i32
    %1085 = arith.index_cast %1084 : i32 to index
    %1086 = memref.load %arg4[%1085] : memref<24xf32, #tpu.memory_space<smem>>
    %c1_i32_614 = arith.constant 1 : i32
    %1087 = arith.addi %1035, %c1_i32_614 : i32
    %1088 = arith.index_cast %1087 : i32 to index
    %1089 = memref.load %arg4[%1088] : memref<24xf32, #tpu.memory_space<smem>>
    %c2_i32_615 = arith.constant 2 : i32
    %1090 = arith.addi %1035, %c2_i32_615 : i32
    %1091 = arith.index_cast %1090 : i32 to index
    %1092 = memref.load %arg4[%1091] : memref<24xf32, #tpu.memory_space<smem>>
    %c6 = arith.constant 6 : index
    %c0_616 = arith.constant 0 : index
    %c0_617 = arith.constant 0 : index
    %c0_618 = arith.constant 0 : index
    %c0_619 = arith.constant 0 : index
    %1093 = vector.load %arg2[%c6, %c0_616, %c0_617, %c0_618, %c0_619] : memref<8x2x4x2x128xf32, #tpu.memory_space<vmem>>, vector<1x1x1x2x128xf32>
    %1094 = vector.shape_cast %1093 : vector<1x1x1x2x128xf32> to vector<2x128xf32>
    %c6_620 = arith.constant 6 : index
    %c0_621 = arith.constant 0 : index
    %c1_622 = arith.constant 1 : index
    %c0_623 = arith.constant 0 : index
    %c0_624 = arith.constant 0 : index
    %1095 = vector.load %arg2[%c6_620, %c0_621, %c1_622, %c0_623, %c0_624] : memref<8x2x4x2x128xf32, #tpu.memory_space<vmem>>, vector<1x1x1x2x128xf32>
    %1096 = vector.shape_cast %1095 : vector<1x1x1x2x128xf32> to vector<2x128xf32>
    %c6_625 = arith.constant 6 : index
    %c0_626 = arith.constant 0 : index
    %c2_627 = arith.constant 2 : index
    %c0_628 = arith.constant 0 : index
    %c0_629 = arith.constant 0 : index
    %1097 = vector.load %arg2[%c6_625, %c0_626, %c2_627, %c0_628, %c0_629] : memref<8x2x4x2x128xf32, #tpu.memory_space<vmem>>, vector<1x1x1x2x128xf32>
    %1098 = vector.shape_cast %1097 : vector<1x1x1x2x128xf32> to vector<2x128xf32>
    %c6_630 = arith.constant 6 : index
    %c0_631 = arith.constant 0 : index
    %c3_632 = arith.constant 3 : index
    %c0_633 = arith.constant 0 : index
    %c0_634 = arith.constant 0 : index
    %1099 = vector.load %arg2[%c6_630, %c0_631, %c3_632, %c0_633, %c0_634] : memref<8x2x4x2x128xf32, #tpu.memory_space<vmem>>, vector<1x1x1x2x128xf32>
    %1100 = vector.shape_cast %1099 : vector<1x1x1x2x128xf32> to vector<2x128xf32>
    %1101 = vector.broadcast %1039 : f32 to vector<2x128xf32>
    %1102 = arith.mulf %1094, %1101 : vector<2x128xf32>
    %1103 = vector.broadcast %1043 : f32 to vector<2x128xf32>
    %1104 = arith.mulf %1096, %1103 : vector<2x128xf32>
    %1105 = arith.addf %1102, %1104 : vector<2x128xf32>
    %1106 = vector.broadcast %1047 : f32 to vector<2x128xf32>
    %1107 = arith.mulf %1098, %1106 : vector<2x128xf32>
    %1108 = arith.addf %1105, %1107 : vector<2x128xf32>
    %1109 = vector.broadcast %1051 : f32 to vector<2x128xf32>
    %1110 = arith.mulf %1100, %1109 : vector<2x128xf32>
    %1111 = arith.addf %1108, %1110 : vector<2x128xf32>
    %1112 = vector.broadcast %1086 : f32 to vector<2x128xf32>
    %1113 = arith.addf %1111, %1112 : vector<2x128xf32>
    %c6_635 = arith.constant 6 : index
    %c0_636 = arith.constant 0 : index
    %c0_637 = arith.constant 0 : index
    %c0_638 = arith.constant 0 : index
    %c0_639 = arith.constant 0 : index
    %1114 = vector.load %arg5[%c6_635, %c0_636, %c0_637, %c0_638, %c0_639] : memref<8x2x3x2x128xf32, #tpu.memory_space<vmem>>, vector<1x1x1x2x128xf32>
    %1115 = vector.shape_cast %1114 : vector<1x1x1x2x128xf32> to vector<2x128xf32>
    %1116 = vector.shape_cast %1113 : vector<2x128xf32> to vector<1x1x1x2x128xf32>
    tpu.vector_store %arg5[%c6_635, %c0_636, %c0_637, %c0_638, %c0_639], %1116 {strides = array<i32>} : memref<8x2x3x2x128xf32, #tpu.memory_space<vmem>>, vector<1x1x1x2x128xf32>,
    %1117 = vector.broadcast %1055 : f32 to vector<2x128xf32>
    %1118 = arith.mulf %1094, %1117 : vector<2x128xf32>
    %1119 = vector.broadcast %1059 : f32 to vector<2x128xf32>
    %1120 = arith.mulf %1096, %1119 : vector<2x128xf32>
    %1121 = arith.addf %1118, %1120 : vector<2x128xf32>
    %1122 = vector.broadcast %1063 : f32 to vector<2x128xf32>
    %1123 = arith.mulf %1098, %1122 : vector<2x128xf32>
    %1124 = arith.addf %1121, %1123 : vector<2x128xf32>
    %1125 = vector.broadcast %1067 : f32 to vector<2x128xf32>
    %1126 = arith.mulf %1100, %1125 : vector<2x128xf32>
    %1127 = arith.addf %1124, %1126 : vector<2x128xf32>
    %1128 = vector.broadcast %1089 : f32 to vector<2x128xf32>
    %1129 = arith.addf %1127, %1128 : vector<2x128xf32>
    %c6_640 = arith.constant 6 : index
    %c0_641 = arith.constant 0 : index
    %c1_642 = arith.constant 1 : index
    %c0_643 = arith.constant 0 : index
    %c0_644 = arith.constant 0 : index
    %1130 = vector.load %arg5[%c6_640, %c0_641, %c1_642, %c0_643, %c0_644] : memref<8x2x3x2x128xf32, #tpu.memory_space<vmem>>, vector<1x1x1x2x128xf32>
    %1131 = vector.shape_cast %1130 : vector<1x1x1x2x128xf32> to vector<2x128xf32>
    %1132 = vector.shape_cast %1129 : vector<2x128xf32> to vector<1x1x1x2x128xf32>
    tpu.vector_store %arg5[%c6_640, %c0_641, %c1_642, %c0_643, %c0_644], %1132 {strides = array<i32>} : memref<8x2x3x2x128xf32, #tpu.memory_space<vmem>>, vector<1x1x1x2x128xf32>,
    %1133 = vector.broadcast %1071 : f32 to vector<2x128xf32>
    %1134 = arith.mulf %1094, %1133 : vector<2x128xf32>
    %1135 = vector.broadcast %1075 : f32 to vector<2x128xf32>
    %1136 = arith.mulf %1096, %1135 : vector<2x128xf32>
    %1137 = arith.addf %1134, %1136 : vector<2x128xf32>
    %1138 = vector.broadcast %1079 : f32 to vector<2x128xf32>
    %1139 = arith.mulf %1098, %1138 : vector<2x128xf32>
    %1140 = arith.addf %1137, %1139 : vector<2x128xf32>
    %1141 = vector.broadcast %1083 : f32 to vector<2x128xf32>
    %1142 = arith.mulf %1100, %1141 : vector<2x128xf32>
    %1143 = arith.addf %1140, %1142 : vector<2x128xf32>
    %1144 = vector.broadcast %1092 : f32 to vector<2x128xf32>
    %1145 = arith.addf %1143, %1144 : vector<2x128xf32>
    %c6_645 = arith.constant 6 : index
    %c0_646 = arith.constant 0 : index
    %c2_647 = arith.constant 2 : index
    %c0_648 = arith.constant 0 : index
    %c0_649 = arith.constant 0 : index
    %1146 = vector.load %arg5[%c6_645, %c0_646, %c2_647, %c0_648, %c0_649] : memref<8x2x3x2x128xf32, #tpu.memory_space<vmem>>, vector<1x1x1x2x128xf32>
    %1147 = vector.shape_cast %1146 : vector<1x1x1x2x128xf32> to vector<2x128xf32>
    %1148 = vector.shape_cast %1145 : vector<2x128xf32> to vector<1x1x1x2x128xf32>
    tpu.vector_store %arg5[%c6_645, %c0_646, %c2_647, %c0_648, %c0_649], %1148 {strides = array<i32>} : memref<8x2x3x2x128xf32, #tpu.memory_space<vmem>>, vector<1x1x1x2x128xf32>,
    %c6_650 = arith.constant 6 : index
    %c1_651 = arith.constant 1 : index
    %c0_652 = arith.constant 0 : index
    %c0_653 = arith.constant 0 : index
    %c0_654 = arith.constant 0 : index
    %1149 = vector.load %arg2[%c6_650, %c1_651, %c0_652, %c0_653, %c0_654] : memref<8x2x4x2x128xf32, #tpu.memory_space<vmem>>, vector<1x1x1x2x128xf32>
    %1150 = vector.shape_cast %1149 : vector<1x1x1x2x128xf32> to vector<2x128xf32>
    %c6_655 = arith.constant 6 : index
    %c1_656 = arith.constant 1 : index
    %c1_657 = arith.constant 1 : index
    %c0_658 = arith.constant 0 : index
    %c0_659 = arith.constant 0 : index
    %1151 = vector.load %arg2[%c6_655, %c1_656, %c1_657, %c0_658, %c0_659] : memref<8x2x4x2x128xf32, #tpu.memory_space<vmem>>, vector<1x1x1x2x128xf32>
    %1152 = vector.shape_cast %1151 : vector<1x1x1x2x128xf32> to vector<2x128xf32>
    %c6_660 = arith.constant 6 : index
    %c1_661 = arith.constant 1 : index
    %c2_662 = arith.constant 2 : index
    %c0_663 = arith.constant 0 : index
    %c0_664 = arith.constant 0 : index
    %1153 = vector.load %arg2[%c6_660, %c1_661, %c2_662, %c0_663, %c0_664] : memref<8x2x4x2x128xf32, #tpu.memory_space<vmem>>, vector<1x1x1x2x128xf32>
    %1154 = vector.shape_cast %1153 : vector<1x1x1x2x128xf32> to vector<2x128xf32>
    %c6_665 = arith.constant 6 : index
    %c1_666 = arith.constant 1 : index
    %c3_667 = arith.constant 3 : index
    %c0_668 = arith.constant 0 : index
    %c0_669 = arith.constant 0 : index
    %1155 = vector.load %arg2[%c6_665, %c1_666, %c3_667, %c0_668, %c0_669] : memref<8x2x4x2x128xf32, #tpu.memory_space<vmem>>, vector<1x1x1x2x128xf32>
    %1156 = vector.shape_cast %1155 : vector<1x1x1x2x128xf32> to vector<2x128xf32>
    %1157 = vector.broadcast %1039 : f32 to vector<2x128xf32>
    %1158 = arith.mulf %1150, %1157 : vector<2x128xf32>
    %1159 = vector.broadcast %1043 : f32 to vector<2x128xf32>
    %1160 = arith.mulf %1152, %1159 : vector<2x128xf32>
    %1161 = arith.addf %1158, %1160 : vector<2x128xf32>
    %1162 = vector.broadcast %1047 : f32 to vector<2x128xf32>
    %1163 = arith.mulf %1154, %1162 : vector<2x128xf32>
    %1164 = arith.addf %1161, %1163 : vector<2x128xf32>
    %1165 = vector.broadcast %1051 : f32 to vector<2x128xf32>
    %1166 = arith.mulf %1156, %1165 : vector<2x128xf32>
    %1167 = arith.addf %1164, %1166 : vector<2x128xf32>
    %1168 = vector.broadcast %1086 : f32 to vector<2x128xf32>
    %1169 = arith.addf %1167, %1168 : vector<2x128xf32>
    %c6_670 = arith.constant 6 : index
    %c1_671 = arith.constant 1 : index
    %c0_672 = arith.constant 0 : index
    %c0_673 = arith.constant 0 : index
    %c0_674 = arith.constant 0 : index
    %1170 = vector.load %arg5[%c6_670, %c1_671, %c0_672, %c0_673, %c0_674] : memref<8x2x3x2x128xf32, #tpu.memory_space<vmem>>, vector<1x1x1x2x128xf32>
    %1171 = vector.shape_cast %1170 : vector<1x1x1x2x128xf32> to vector<2x128xf32>
    %1172 = vector.shape_cast %1169 : vector<2x128xf32> to vector<1x1x1x2x128xf32>
    tpu.vector_store %arg5[%c6_670, %c1_671, %c0_672, %c0_673, %c0_674], %1172 {strides = array<i32>} : memref<8x2x3x2x128xf32, #tpu.memory_space<vmem>>, vector<1x1x1x2x128xf32>,
    %1173 = vector.broadcast %1055 : f32 to vector<2x128xf32>
    %1174 = arith.mulf %1150, %1173 : vector<2x128xf32>
    %1175 = vector.broadcast %1059 : f32 to vector<2x128xf32>
    %1176 = arith.mulf %1152, %1175 : vector<2x128xf32>
    %1177 = arith.addf %1174, %1176 : vector<2x128xf32>
    %1178 = vector.broadcast %1063 : f32 to vector<2x128xf32>
    %1179 = arith.mulf %1154, %1178 : vector<2x128xf32>
    %1180 = arith.addf %1177, %1179 : vector<2x128xf32>
    %1181 = vector.broadcast %1067 : f32 to vector<2x128xf32>
    %1182 = arith.mulf %1156, %1181 : vector<2x128xf32>
    %1183 = arith.addf %1180, %1182 : vector<2x128xf32>
    %1184 = vector.broadcast %1089 : f32 to vector<2x128xf32>
    %1185 = arith.addf %1183, %1184 : vector<2x128xf32>
    %c6_675 = arith.constant 6 : index
    %c1_676 = arith.constant 1 : index
    %c1_677 = arith.constant 1 : index
    %c0_678 = arith.constant 0 : index
    %c0_679 = arith.constant 0 : index
    %1186 = vector.load %arg5[%c6_675, %c1_676, %c1_677, %c0_678, %c0_679] : memref<8x2x3x2x128xf32, #tpu.memory_space<vmem>>, vector<1x1x1x2x128xf32>
    %1187 = vector.shape_cast %1186 : vector<1x1x1x2x128xf32> to vector<2x128xf32>
    %1188 = vector.shape_cast %1185 : vector<2x128xf32> to vector<1x1x1x2x128xf32>
    tpu.vector_store %arg5[%c6_675, %c1_676, %c1_677, %c0_678, %c0_679], %1188 {strides = array<i32>} : memref<8x2x3x2x128xf32, #tpu.memory_space<vmem>>, vector<1x1x1x2x128xf32>,
    %1189 = vector.broadcast %1071 : f32 to vector<2x128xf32>
    %1190 = arith.mulf %1150, %1189 : vector<2x128xf32>
    %1191 = vector.broadcast %1075 : f32 to vector<2x128xf32>
    %1192 = arith.mulf %1152, %1191 : vector<2x128xf32>
    %1193 = arith.addf %1190, %1192 : vector<2x128xf32>
    %1194 = vector.broadcast %1079 : f32 to vector<2x128xf32>
    %1195 = arith.mulf %1154, %1194 : vector<2x128xf32>
    %1196 = arith.addf %1193, %1195 : vector<2x128xf32>
    %1197 = vector.broadcast %1083 : f32 to vector<2x128xf32>
    %1198 = arith.mulf %1156, %1197 : vector<2x128xf32>
    %1199 = arith.addf %1196, %1198 : vector<2x128xf32>
    %1200 = vector.broadcast %1092 : f32 to vector<2x128xf32>
    %1201 = arith.addf %1199, %1200 : vector<2x128xf32>
    %c6_680 = arith.constant 6 : index
    %c1_681 = arith.constant 1 : index
    %c2_682 = arith.constant 2 : index
    %c0_683 = arith.constant 0 : index
    %c0_684 = arith.constant 0 : index
    %1202 = vector.load %arg5[%c6_680, %c1_681, %c2_682, %c0_683, %c0_684] : memref<8x2x3x2x128xf32, #tpu.memory_space<vmem>>, vector<1x1x1x2x128xf32>
    %1203 = vector.shape_cast %1202 : vector<1x1x1x2x128xf32> to vector<2x128xf32>
    %1204 = vector.shape_cast %1201 : vector<2x128xf32> to vector<1x1x1x2x128xf32>
    tpu.vector_store %arg5[%c6_680, %c1_681, %c2_682, %c0_683, %c0_684], %1204 {strides = array<i32>} : memref<8x2x3x2x128xf32, #tpu.memory_space<vmem>>, vector<1x1x1x2x128xf32>,
    %c7_i32 = arith.constant 7 : i32
    %1205 = arith.addi %0, %c7_i32 : i32
    %c12_i32_685 = arith.constant 12 : i32
    %1206 = arith.muli %1205, %c12_i32_685 : i32
    %c3_i32_686 = arith.constant 3 : i32
    %1207 = arith.muli %1205, %c3_i32_686 : i32
    %c0_i32_687 = arith.constant 0 : i32
    %1208 = arith.addi %1206, %c0_i32_687 : i32
    %c0_i32_688 = arith.constant 0 : i32
    %1209 = arith.addi %1208, %c0_i32_688 : i32
    %1210 = arith.index_cast %1209 : i32 to index
    %1211 = memref.load %arg3[%1210] : memref<96xf32, #tpu.memory_space<smem>>
    %c0_i32_689 = arith.constant 0 : i32
    %1212 = arith.addi %1206, %c0_i32_689 : i32
    %c1_i32_690 = arith.constant 1 : i32
    %1213 = arith.addi %1212, %c1_i32_690 : i32
    %1214 = arith.index_cast %1213 : i32 to index
    %1215 = memref.load %arg3[%1214] : memref<96xf32, #tpu.memory_space<smem>>
    %c0_i32_691 = arith.constant 0 : i32
    %1216 = arith.addi %1206, %c0_i32_691 : i32
    %c2_i32_692 = arith.constant 2 : i32
    %1217 = arith.addi %1216, %c2_i32_692 : i32
    %1218 = arith.index_cast %1217 : i32 to index
    %1219 = memref.load %arg3[%1218] : memref<96xf32, #tpu.memory_space<smem>>
    %c0_i32_693 = arith.constant 0 : i32
    %1220 = arith.addi %1206, %c0_i32_693 : i32
    %c3_i32_694 = arith.constant 3 : i32
    %1221 = arith.addi %1220, %c3_i32_694 : i32
    %1222 = arith.index_cast %1221 : i32 to index
    %1223 = memref.load %arg3[%1222] : memref<96xf32, #tpu.memory_space<smem>>
    %c4_i32_695 = arith.constant 4 : i32
    %1224 = arith.addi %1206, %c4_i32_695 : i32
    %c0_i32_696 = arith.constant 0 : i32
    %1225 = arith.addi %1224, %c0_i32_696 : i32
    %1226 = arith.index_cast %1225 : i32 to index
    %1227 = memref.load %arg3[%1226] : memref<96xf32, #tpu.memory_space<smem>>
    %c4_i32_697 = arith.constant 4 : i32
    %1228 = arith.addi %1206, %c4_i32_697 : i32
    %c1_i32_698 = arith.constant 1 : i32
    %1229 = arith.addi %1228, %c1_i32_698 : i32
    %1230 = arith.index_cast %1229 : i32 to index
    %1231 = memref.load %arg3[%1230] : memref<96xf32, #tpu.memory_space<smem>>
    %c4_i32_699 = arith.constant 4 : i32
    %1232 = arith.addi %1206, %c4_i32_699 : i32
    %c2_i32_700 = arith.constant 2 : i32
    %1233 = arith.addi %1232, %c2_i32_700 : i32
    %1234 = arith.index_cast %1233 : i32 to index
    %1235 = memref.load %arg3[%1234] : memref<96xf32, #tpu.memory_space<smem>>
    %c4_i32_701 = arith.constant 4 : i32
    %1236 = arith.addi %1206, %c4_i32_701 : i32
    %c3_i32_702 = arith.constant 3 : i32
    %1237 = arith.addi %1236, %c3_i32_702 : i32
    %1238 = arith.index_cast %1237 : i32 to index
    %1239 = memref.load %arg3[%1238] : memref<96xf32, #tpu.memory_space<smem>>
    %c8_i32_703 = arith.constant 8 : i32
    %1240 = arith.addi %1206, %c8_i32_703 : i32
    %c0_i32_704 = arith.constant 0 : i32
    %1241 = arith.addi %1240, %c0_i32_704 : i32
    %1242 = arith.index_cast %1241 : i32 to index
    %1243 = memref.load %arg3[%1242] : memref<96xf32, #tpu.memory_space<smem>>
    %c8_i32_705 = arith.constant 8 : i32
    %1244 = arith.addi %1206, %c8_i32_705 : i32
    %c1_i32_706 = arith.constant 1 : i32
    %1245 = arith.addi %1244, %c1_i32_706 : i32
    %1246 = arith.index_cast %1245 : i32 to index
    %1247 = memref.load %arg3[%1246] : memref<96xf32, #tpu.memory_space<smem>>
    %c8_i32_707 = arith.constant 8 : i32
    %1248 = arith.addi %1206, %c8_i32_707 : i32
    %c2_i32_708 = arith.constant 2 : i32
    %1249 = arith.addi %1248, %c2_i32_708 : i32
    %1250 = arith.index_cast %1249 : i32 to index
    %1251 = memref.load %arg3[%1250] : memref<96xf32, #tpu.memory_space<smem>>
    %c8_i32_709 = arith.constant 8 : i32
    %1252 = arith.addi %1206, %c8_i32_709 : i32
    %c3_i32_710 = arith.constant 3 : i32
    %1253 = arith.addi %1252, %c3_i32_710 : i32
    %1254 = arith.index_cast %1253 : i32 to index
    %1255 = memref.load %arg3[%1254] : memref<96xf32, #tpu.memory_space<smem>>
    %c0_i32_711 = arith.constant 0 : i32
    %1256 = arith.addi %1207, %c0_i32_711 : i32
    %1257 = arith.index_cast %1256 : i32 to index
    %1258 = memref.load %arg4[%1257] : memref<24xf32, #tpu.memory_space<smem>>
    %c1_i32_712 = arith.constant 1 : i32
    %1259 = arith.addi %1207, %c1_i32_712 : i32
    %1260 = arith.index_cast %1259 : i32 to index
    %1261 = memref.load %arg4[%1260] : memref<24xf32, #tpu.memory_space<smem>>
    %c2_i32_713 = arith.constant 2 : i32
    %1262 = arith.addi %1207, %c2_i32_713 : i32
    %1263 = arith.index_cast %1262 : i32 to index
    %1264 = memref.load %arg4[%1263] : memref<24xf32, #tpu.memory_space<smem>>
    %c7 = arith.constant 7 : index
    %c0_714 = arith.constant 0 : index
    %c0_715 = arith.constant 0 : index
    %c0_716 = arith.constant 0 : index
    %c0_717 = arith.constant 0 : index
    %1265 = vector.load %arg2[%c7, %c0_714, %c0_715, %c0_716, %c0_717] : memref<8x2x4x2x128xf32, #tpu.memory_space<vmem>>, vector<1x1x1x2x128xf32>
    %1266 = vector.shape_cast %1265 : vector<1x1x1x2x128xf32> to vector<2x128xf32>
    %c7_718 = arith.constant 7 : index
    %c0_719 = arith.constant 0 : index
    %c1_720 = arith.constant 1 : index
    %c0_721 = arith.constant 0 : index
    %c0_722 = arith.constant 0 : index
    %1267 = vector.load %arg2[%c7_718, %c0_719, %c1_720, %c0_721, %c0_722] : memref<8x2x4x2x128xf32, #tpu.memory_space<vmem>>, vector<1x1x1x2x128xf32>
    %1268 = vector.shape_cast %1267 : vector<1x1x1x2x128xf32> to vector<2x128xf32>
    %c7_723 = arith.constant 7 : index
    %c0_724 = arith.constant 0 : index
    %c2_725 = arith.constant 2 : index
    %c0_726 = arith.constant 0 : index
    %c0_727 = arith.constant 0 : index
    %1269 = vector.load %arg2[%c7_723, %c0_724, %c2_725, %c0_726, %c0_727] : memref<8x2x4x2x128xf32, #tpu.memory_space<vmem>>, vector<1x1x1x2x128xf32>
    %1270 = vector.shape_cast %1269 : vector<1x1x1x2x128xf32> to vector<2x128xf32>
    %c7_728 = arith.constant 7 : index
    %c0_729 = arith.constant 0 : index
    %c3_730 = arith.constant 3 : index
    %c0_731 = arith.constant 0 : index
    %c0_732 = arith.constant 0 : index
    %1271 = vector.load %arg2[%c7_728, %c0_729, %c3_730, %c0_731, %c0_732] : memref<8x2x4x2x128xf32, #tpu.memory_space<vmem>>, vector<1x1x1x2x128xf32>
    %1272 = vector.shape_cast %1271 : vector<1x1x1x2x128xf32> to vector<2x128xf32>
    %1273 = vector.broadcast %1211 : f32 to vector<2x128xf32>
    %1274 = arith.mulf %1266, %1273 : vector<2x128xf32>
    %1275 = vector.broadcast %1215 : f32 to vector<2x128xf32>
    %1276 = arith.mulf %1268, %1275 : vector<2x128xf32>
    %1277 = arith.addf %1274, %1276 : vector<2x128xf32>
    %1278 = vector.broadcast %1219 : f32 to vector<2x128xf32>
    %1279 = arith.mulf %1270, %1278 : vector<2x128xf32>
    %1280 = arith.addf %1277, %1279 : vector<2x128xf32>
    %1281 = vector.broadcast %1223 : f32 to vector<2x128xf32>
    %1282 = arith.mulf %1272, %1281 : vector<2x128xf32>
    %1283 = arith.addf %1280, %1282 : vector<2x128xf32>
    %1284 = vector.broadcast %1258 : f32 to vector<2x128xf32>
    %1285 = arith.addf %1283, %1284 : vector<2x128xf32>
    %c7_733 = arith.constant 7 : index
    %c0_734 = arith.constant 0 : index
    %c0_735 = arith.constant 0 : index
    %c0_736 = arith.constant 0 : index
    %c0_737 = arith.constant 0 : index
    %1286 = vector.load %arg5[%c7_733, %c0_734, %c0_735, %c0_736, %c0_737] : memref<8x2x3x2x128xf32, #tpu.memory_space<vmem>>, vector<1x1x1x2x128xf32>
    %1287 = vector.shape_cast %1286 : vector<1x1x1x2x128xf32> to vector<2x128xf32>
    %1288 = vector.shape_cast %1285 : vector<2x128xf32> to vector<1x1x1x2x128xf32>
    tpu.vector_store %arg5[%c7_733, %c0_734, %c0_735, %c0_736, %c0_737], %1288 {strides = array<i32>} : memref<8x2x3x2x128xf32, #tpu.memory_space<vmem>>, vector<1x1x1x2x128xf32>,
    %1289 = vector.broadcast %1227 : f32 to vector<2x128xf32>
    %1290 = arith.mulf %1266, %1289 : vector<2x128xf32>
    %1291 = vector.broadcast %1231 : f32 to vector<2x128xf32>
    %1292 = arith.mulf %1268, %1291 : vector<2x128xf32>
    %1293 = arith.addf %1290, %1292 : vector<2x128xf32>
    %1294 = vector.broadcast %1235 : f32 to vector<2x128xf32>
    %1295 = arith.mulf %1270, %1294 : vector<2x128xf32>
    %1296 = arith.addf %1293, %1295 : vector<2x128xf32>
    %1297 = vector.broadcast %1239 : f32 to vector<2x128xf32>
    %1298 = arith.mulf %1272, %1297 : vector<2x128xf32>
    %1299 = arith.addf %1296, %1298 : vector<2x128xf32>
    %1300 = vector.broadcast %1261 : f32 to vector<2x128xf32>
    %1301 = arith.addf %1299, %1300 : vector<2x128xf32>
    %c7_738 = arith.constant 7 : index
    %c0_739 = arith.constant 0 : index
    %c1_740 = arith.constant 1 : index
    %c0_741 = arith.constant 0 : index
    %c0_742 = arith.constant 0 : index
    %1302 = vector.load %arg5[%c7_738, %c0_739, %c1_740, %c0_741, %c0_742] : memref<8x2x3x2x128xf32, #tpu.memory_space<vmem>>, vector<1x1x1x2x128xf32>
    %1303 = vector.shape_cast %1302 : vector<1x1x1x2x128xf32> to vector<2x128xf32>
    %1304 = vector.shape_cast %1301 : vector<2x128xf32> to vector<1x1x1x2x128xf32>
    tpu.vector_store %arg5[%c7_738, %c0_739, %c1_740, %c0_741, %c0_742], %1304 {strides = array<i32>} : memref<8x2x3x2x128xf32, #tpu.memory_space<vmem>>, vector<1x1x1x2x128xf32>,
    %1305 = vector.broadcast %1243 : f32 to vector<2x128xf32>
    %1306 = arith.mulf %1266, %1305 : vector<2x128xf32>
    %1307 = vector.broadcast %1247 : f32 to vector<2x128xf32>
    %1308 = arith.mulf %1268, %1307 : vector<2x128xf32>
    %1309 = arith.addf %1306, %1308 : vector<2x128xf32>
    %1310 = vector.broadcast %1251 : f32 to vector<2x128xf32>
    %1311 = arith.mulf %1270, %1310 : vector<2x128xf32>
    %1312 = arith.addf %1309, %1311 : vector<2x128xf32>
    %1313 = vector.broadcast %1255 : f32 to vector<2x128xf32>
    %1314 = arith.mulf %1272, %1313 : vector<2x128xf32>
    %1315 = arith.addf %1312, %1314 : vector<2x128xf32>
    %1316 = vector.broadcast %1264 : f32 to vector<2x128xf32>
    %1317 = arith.addf %1315, %1316 : vector<2x128xf32>
    %c7_743 = arith.constant 7 : index
    %c0_744 = arith.constant 0 : index
    %c2_745 = arith.constant 2 : index
    %c0_746 = arith.constant 0 : index
    %c0_747 = arith.constant 0 : index
    %1318 = vector.load %arg5[%c7_743, %c0_744, %c2_745, %c0_746, %c0_747] : memref<8x2x3x2x128xf32, #tpu.memory_space<vmem>>, vector<1x1x1x2x128xf32>
    %1319 = vector.shape_cast %1318 : vector<1x1x1x2x128xf32> to vector<2x128xf32>
    %1320 = vector.shape_cast %1317 : vector<2x128xf32> to vector<1x1x1x2x128xf32>
    tpu.vector_store %arg5[%c7_743, %c0_744, %c2_745, %c0_746, %c0_747], %1320 {strides = array<i32>} : memref<8x2x3x2x128xf32, #tpu.memory_space<vmem>>, vector<1x1x1x2x128xf32>,
    %c7_748 = arith.constant 7 : index
    %c1_749 = arith.constant 1 : index
    %c0_750 = arith.constant 0 : index
    %c0_751 = arith.constant 0 : index
    %c0_752 = arith.constant 0 : index
    %1321 = vector.load %arg2[%c7_748, %c1_749, %c0_750, %c0_751, %c0_752] : memref<8x2x4x2x128xf32, #tpu.memory_space<vmem>>, vector<1x1x1x2x128xf32>
    %1322 = vector.shape_cast %1321 : vector<1x1x1x2x128xf32> to vector<2x128xf32>
    %c7_753 = arith.constant 7 : index
    %c1_754 = arith.constant 1 : index
    %c1_755 = arith.constant 1 : index
    %c0_756 = arith.constant 0 : index
    %c0_757 = arith.constant 0 : index
    %1323 = vector.load %arg2[%c7_753, %c1_754, %c1_755, %c0_756, %c0_757] : memref<8x2x4x2x128xf32, #tpu.memory_space<vmem>>, vector<1x1x1x2x128xf32>
    %1324 = vector.shape_cast %1323 : vector<1x1x1x2x128xf32> to vector<2x128xf32>
    %c7_758 = arith.constant 7 : index
    %c1_759 = arith.constant 1 : index
    %c2_760 = arith.constant 2 : index
    %c0_761 = arith.constant 0 : index
    %c0_762 = arith.constant 0 : index
    %1325 = vector.load %arg2[%c7_758, %c1_759, %c2_760, %c0_761, %c0_762] : memref<8x2x4x2x128xf32, #tpu.memory_space<vmem>>, vector<1x1x1x2x128xf32>
    %1326 = vector.shape_cast %1325 : vector<1x1x1x2x128xf32> to vector<2x128xf32>
    %c7_763 = arith.constant 7 : index
    %c1_764 = arith.constant 1 : index
    %c3_765 = arith.constant 3 : index
    %c0_766 = arith.constant 0 : index
    %c0_767 = arith.constant 0 : index
    %1327 = vector.load %arg2[%c7_763, %c1_764, %c3_765, %c0_766, %c0_767] : memref<8x2x4x2x128xf32, #tpu.memory_space<vmem>>, vector<1x1x1x2x128xf32>
    %1328 = vector.shape_cast %1327 : vector<1x1x1x2x128xf32> to vector<2x128xf32>
    %1329 = vector.broadcast %1211 : f32 to vector<2x128xf32>
    %1330 = arith.mulf %1322, %1329 : vector<2x128xf32>
    %1331 = vector.broadcast %1215 : f32 to vector<2x128xf32>
    %1332 = arith.mulf %1324, %1331 : vector<2x128xf32>
    %1333 = arith.addf %1330, %1332 : vector<2x128xf32>
    %1334 = vector.broadcast %1219 : f32 to vector<2x128xf32>
    %1335 = arith.mulf %1326, %1334 : vector<2x128xf32>
    %1336 = arith.addf %1333, %1335 : vector<2x128xf32>
    %1337 = vector.broadcast %1223 : f32 to vector<2x128xf32>
    %1338 = arith.mulf %1328, %1337 : vector<2x128xf32>
    %1339 = arith.addf %1336, %1338 : vector<2x128xf32>
    %1340 = vector.broadcast %1258 : f32 to vector<2x128xf32>
    %1341 = arith.addf %1339, %1340 : vector<2x128xf32>
    %c7_768 = arith.constant 7 : index
    %c1_769 = arith.constant 1 : index
    %c0_770 = arith.constant 0 : index
    %c0_771 = arith.constant 0 : index
    %c0_772 = arith.constant 0 : index
    %1342 = vector.load %arg5[%c7_768, %c1_769, %c0_770, %c0_771, %c0_772] : memref<8x2x3x2x128xf32, #tpu.memory_space<vmem>>, vector<1x1x1x2x128xf32>
    %1343 = vector.shape_cast %1342 : vector<1x1x1x2x128xf32> to vector<2x128xf32>
    %1344 = vector.shape_cast %1341 : vector<2x128xf32> to vector<1x1x1x2x128xf32>
    tpu.vector_store %arg5[%c7_768, %c1_769, %c0_770, %c0_771, %c0_772], %1344 {strides = array<i32>} : memref<8x2x3x2x128xf32, #tpu.memory_space<vmem>>, vector<1x1x1x2x128xf32>,
    %1345 = vector.broadcast %1227 : f32 to vector<2x128xf32>
    %1346 = arith.mulf %1322, %1345 : vector<2x128xf32>
    %1347 = vector.broadcast %1231 : f32 to vector<2x128xf32>
    %1348 = arith.mulf %1324, %1347 : vector<2x128xf32>
    %1349 = arith.addf %1346, %1348 : vector<2x128xf32>
    %1350 = vector.broadcast %1235 : f32 to vector<2x128xf32>
    %1351 = arith.mulf %1326, %1350 : vector<2x128xf32>
    %1352 = arith.addf %1349, %1351 : vector<2x128xf32>
    %1353 = vector.broadcast %1239 : f32 to vector<2x128xf32>
    %1354 = arith.mulf %1328, %1353 : vector<2x128xf32>
    %1355 = arith.addf %1352, %1354 : vector<2x128xf32>
    %1356 = vector.broadcast %1261 : f32 to vector<2x128xf32>
    %1357 = arith.addf %1355, %1356 : vector<2x128xf32>
    %c7_773 = arith.constant 7 : index
    %c1_774 = arith.constant 1 : index
    %c1_775 = arith.constant 1 : index
    %c0_776 = arith.constant 0 : index
    %c0_777 = arith.constant 0 : index
    %1358 = vector.load %arg5[%c7_773, %c1_774, %c1_775, %c0_776, %c0_777] : memref<8x2x3x2x128xf32, #tpu.memory_space<vmem>>, vector<1x1x1x2x128xf32>
    %1359 = vector.shape_cast %1358 : vector<1x1x1x2x128xf32> to vector<2x128xf32>
    %1360 = vector.shape_cast %1357 : vector<2x128xf32> to vector<1x1x1x2x128xf32>
    tpu.vector_store %arg5[%c7_773, %c1_774, %c1_775, %c0_776, %c0_777], %1360 {strides = array<i32>} : memref<8x2x3x2x128xf32, #tpu.memory_space<vmem>>, vector<1x1x1x2x128xf32>,
    %1361 = vector.broadcast %1243 : f32 to vector<2x128xf32>
    %1362 = arith.mulf %1322, %1361 : vector<2x128xf32>
    %1363 = vector.broadcast %1247 : f32 to vector<2x128xf32>
    %1364 = arith.mulf %1324, %1363 : vector<2x128xf32>
    %1365 = arith.addf %1362, %1364 : vector<2x128xf32>
    %1366 = vector.broadcast %1251 : f32 to vector<2x128xf32>
    %1367 = arith.mulf %1326, %1366 : vector<2x128xf32>
    %1368 = arith.addf %1365, %1367 : vector<2x128xf32>
    %1369 = vector.broadcast %1255 : f32 to vector<2x128xf32>
    %1370 = arith.mulf %1328, %1369 : vector<2x128xf32>
    %1371 = arith.addf %1368, %1370 : vector<2x128xf32>
    %1372 = vector.broadcast %1264 : f32 to vector<2x128xf32>
    %1373 = arith.addf %1371, %1372 : vector<2x128xf32>
    %c7_778 = arith.constant 7 : index
    %c1_779 = arith.constant 1 : index
    %c2_780 = arith.constant 2 : index
    %c0_781 = arith.constant 0 : index
    %c0_782 = arith.constant 0 : index
    %1374 = vector.load %arg5[%c7_778, %c1_779, %c2_780, %c0_781, %c0_782] : memref<8x2x3x2x128xf32, #tpu.memory_space<vmem>>, vector<1x1x1x2x128xf32>
    %1375 = vector.shape_cast %1374 : vector<1x1x1x2x128xf32> to vector<2x128xf32>
    %1376 = vector.shape_cast %1373 : vector<2x128xf32> to vector<1x1x1x2x128xf32>
    tpu.vector_store %arg5[%c7_778, %c1_779, %c2_780, %c0_781, %c0_782], %1376 {strides = array<i32>} : memref<8x2x3x2x128xf32, #tpu.memory_space<vmem>>, vector<1x1x1x2x128xf32>,
    return
  }
  func.func @transform_0(%arg0: i32, %arg1: i32) -> (i32, i32, i32, i32, i32) {
    %c0_i32 = arith.constant 0 : i32
    %c0_i32_0 = arith.constant 0 : i32
    %c0_i32_1 = arith.constant 0 : i32
    %c0_i32_2 = arith.constant 0 : i32
    return %arg0, %c0_i32, %c0_i32_0, %arg1, %c0_i32_1 : i32, i32, i32, i32, i32
  }
  func.func @transform_1(%arg0: i32, %arg1: i32) -> i32 {
    %c0_i32 = arith.constant 0 : i32
    %c0_i32_0 = arith.constant 0 : i32
    return %c0_i32 : i32
  }
  func.func @transform_2(%arg0: i32, %arg1: i32) -> i32 {
    %c0_i32 = arith.constant 0 : i32
    %c0_i32_0 = arith.constant 0 : i32
    return %c0_i32 : i32
  }
  func.func @transform_3(%arg0: i32, %arg1: i32) -> (i32, i32, i32, i32, i32) {
    %c0_i32 = arith.constant 0 : i32
    %c0_i32_0 = arith.constant 0 : i32
    %c0_i32_1 = arith.constant 0 : i32
    %c0_i32_2 = arith.constant 0 : i32
    return %arg0, %c0_i32, %c0_i32_0, %arg1, %c0_i32_1 : i32, i32, i32, i32, i32
  }
}

</mosaic_0001>

<bundles_post_ra>
// kernel: tpu_custom_call.1
= control target key start
LH: loop header
LB: loop body
LE: loop exit
PB: predicated region body
PF: predicated region fallthrough
CT: control target
= control target key end

     0   :  { %8 = vsyncpa [#allocation3], 0  ;;  %s1879_s0 = inlined_call_operand.hbm [shape: f32[8,2,4,2,128], index: 0, kind: input, shape index: {}]   ;;  %s1880_s1 = inlined_call_operand.hbm [shape: f32[96], index: 1, kind: input, shape index: {}]   ;;  %s1881_s2 = inlined_call_operand.vmem [shape: f32[24], index: 2, kind: input, shape index: {}]   ;;  %s1882_s3 = inlined_call_operand.hbm [shape: f32[8,2,3,2,128], index: 3, kind: output, shape index: {}]  }
   0x1   :  { %9 = vsyncpa [#allocation5], 0 }
   0x2   :  { %10 = vsyncpa [#allocation6], 0 }
   0x3   :  { %11 = vsyncpa [#allocation4], 0  ;;  %s16_s14 = sshll.u32 %s1879_s0, 4  ;;  %s1255_s15 = smov [#allocation2]   ;;  %s17_s14 = int_to_ptr.hbm [resolvable:$true] %s16_s14 }
   0x4   :  { %s18_s16 = sshll.u32 %s1255_s15, 4  ;;  %s30_s19 = sshll.u32 %s1880_s1, 4  ;;  %s19_s16 = int_to_ptr.vmem [resolvable:$true] %s18_s16  ;;  %s31_s19 = int_to_ptr.hbm [resolvable:$true] %s30_s19 }
   0x5   :  { %s1256_s20 = smov 32   ;;  %s1257_s21 = smov 2  }
   0x6   :  { %24 = dma.hbm_to_vmem [thread:$0]  %s17_s14, 2048, %s19_s16, [#allocation3], %s1256_s20, %s1256_s20, %s1257_s21  }
   0x7   :  { %s1258_s22 = smov [#allocation7]   ;;  %s39_s0 = sshll.u32 %s1881_s2, 4  ;;  %s40_s0 = int_to_ptr.vmem [resolvable:$true] %s39_s0 }
   0x8   :  { %33 = dma.hbm_to_smem %s31_s19, 16, %s1258_s22, [#allocation5]  }
   0x9   :  { %s1259_s25 = smov [#allocation8]  }
   0xa   :  { %42 = dma.vmem_to_smem %s40_s0, 16, %s1259_s25, [#allocation6]  }
   0xb   :  { %1247 = dma.done.wait [#allocation3], 2048  }
   0xc   :  { %1248 = vsyncadd [#allocation3], 4294965248 }
   0xd   :  { %1249 = dma.done.wait [#allocation5], 16  }
   0xe   :  { %1250 = vsyncadd [#allocation5], 4294967280 }
   0xf   :  { %1251 = dma.done.wait [#allocation6], 16  }
  0x10   :  { %1252 = vsyncadd [#allocation6], 4294967280 }
  0x11   :  { %55 = sfence }
  0x12   :  { %s59_s1 = sld [smem:[#allocation7]]  ;;  %v87_v0 = vld [vmem:[#allocation2] sm:$0x3]  ;;  %v1297_v1 = vld [vmem:[#allocation2 + $0x8] sm:$0x3] }
  0x13   :  { %s1051_s26 = sld [smem:[#allocation7 + $0x1]]  ;;  %v89_v2 = vld [vmem:[#allocation2 + $0x2] sm:$0x3]  ;;  %v1301_v3 = vld [vmem:[#allocation2 + $0xa] sm:$0x3] }
  0x14   :  { %s1052_s27 = sld [smem:[#allocation7 + $0x2]]  ;;  %v1303_v4 = vld [vmem:[#allocation2 + $0x4] sm:$0x3]  ;;  %v1307_v6 = vld [vmem:[#allocation2 + $0xc] sm:$0x3] }
  0x15   :  { %s1293_s28 = sld [smem:[#allocation7 + $0x3]]  ;;  %v1309_v7 = vld [vmem:[#allocation2 + $0x6] sm:$0x3]  ;;  %v1316_v13 = vld [vmem:[#allocation2 + $0xe] sm:$0x3] }
  0x16   :  { %s1295_s29 = sld [smem:[#allocation8]]  ;;  %v1367_v60 = vld [vmem:[#allocation2 + $0x10] sm:$0x3]  ;;  %v1369_v61 = vld [vmem:[#allocation2 + $0x12] sm:$0x3] }
  0x17   :  { %s1299_s2 = sld [smem:[#allocation7 + $0x4]] }
  0x18   :  { %v94_v5 = vstv %s59_s1  ;;  %s1305_s30 = sld [smem:[#allocation7 + $0x5]] }
  0x19   :  { %v95_v8 = vmul.f32 %v94_v5, %v87_v0  ;;  %v96_v9 = vstv %s1051_s26  ;;  %s1311_s4 = sld [smem:[#allocation7 + $0x6]]  ;;  %v146_v10 = vmul.f32 %v1297_v1, %v94_v5 }
  0x1a   :  { %v97_v11 = vmul.f32 %v96_v9, %v89_v2  ;;  %v99_v12 = vstv %s1052_s27  ;;  %s1314_s5 = sld [smem:[#allocation7 + $0x7]]  ;;  %v147_v14 = vmul.f32 %v1301_v3, %v96_v9 }
  0x1b   :  { %v100_v15 = vmul.f32 %v99_v12, %v1303_v4  ;;  %v102_v16 = vstv %s1293_s28  ;;  %s1321_s6 = sld [smem:[#allocation8 + $0x1]]  ;;  %v149_v17 = vmul.f32 %v1307_v6, %v99_v12 }
  0x1c   :  { %v98_v18 = vadd.f32 %v97_v11, %v95_v8  ;;  %v103_v19 = vmul.f32 %v102_v16, %v1309_v7  ;;  %s1325_s7 = sld [smem:[#allocation7 + $0x8]]  ;;  %v148_v20 = vadd.f32 %v147_v14, %v146_v10  ;;  %v105_v21 = vstv %s1295_s29  ;;  %v1387_v10 = vld [vmem:[#allocation2 + $0x1a] sm:$0x3]  ;;  %v1394_v14 = vld [vmem:[#allocation2 + $0x1c] sm:$0x3] }
  0x1d   :  { %v108_v22 = vstv %s1299_s2  ;;  %s1329_s8 = sld [smem:[#allocation7 + $0x9]]  ;;  %v151_v23 = vmul.f32 %v1316_v13, %v102_v16 }
  0x1e   :  { %v101_v24 = vadd.f32 %v100_v15, %v98_v18  ;;  %v109_v25 = vmul.f32 %v108_v22, %v87_v0  ;;  %v110_v26 = vstv %s1305_s30  ;;  %s1333_s9 = sld [smem:[#allocation7 + $0xa]]  ;;  %v150_v27 = vadd.f32 %v149_v17, %v148_v20 }
  0x1f   :  { %v111_v28 = vmul.f32 %v110_v26, %v89_v2  ;;  %v113_v29 = vstv %s1311_s4  ;;  %s1336_s10 = sld [smem:[#allocation7 + $0xb]]  ;;  %v156_v30 = vmul.f32 %v1297_v1, %v108_v22  ;;  %v157_v31 = vmul.f32 %v1301_v3, %v110_v26 }
  0x20   :  { %v104_v32 = vadd.f32 %v103_v19, %v101_v24  ;;  %v114_v33 = vmul.f32 %v113_v29, %v1303_v4  ;;  %v116_v34 = vstv %s1314_s5  ;;  %s1342_s11 = sld [smem:[#allocation8 + $0x2]]  ;;  %v152_v35 = vadd.f32 %v151_v23, %v150_v27  ;;  %v1405_v23 = vld [vmem:[#allocation2 + $0x1e] sm:$0x3] }
  0x21   :  { %v112_v36 = vadd.f32 %v111_v28, %v109_v25  ;;  %v117_v37 = vmul.f32 %v116_v34, %v1309_v7  ;;  %v119_v38 = vstv %s1321_s6  ;;  %v158_v39 = vadd.f32 %v157_v31, %v156_v30  ;;  %s1346_s12 = sld [smem:[#allocation7 + $0xc]] }
  0x22   :  { %v106_v40 = vadd.f32 %v105_v21, %v104_v32  ;;  %v123_v41 = vstv %s1325_s7  ;;  %v153_v42 = vadd.f32 %v152_v35, %v105_v21  ;;  %v159_v43 = vmul.f32 %v1307_v6, %v113_v29  ;;  %s1350_s13 = sld [smem:[#allocation7 + $0xd]] }
  0x23   :  { %v115_v44 = vadd.f32 %v114_v33, %v112_v36  ;;  %v124_v45 = vmul.f32 %v123_v41, %v87_v0  ;;  %v125_v46 = vstv %s1329_s8  ;;  %v161_v47 = vmul.f32 %v1316_v13, %v116_v34  ;;  %s1354_s14 = sld [smem:[#allocation7 + $0xe]] }
  0x24   :  { %107 = vst [vmem:[#allocation9] sm:$0x3] %v106_v40  ;;  %v126_v48 = vmul.f32 %v125_v46, %v89_v2  ;;  %v128_v49 = vstv %s1333_s9  ;;  %v160_v50 = vadd.f32 %v159_v43, %v158_v39  ;;  %v166_v51 = vmul.f32 %v1297_v1, %v123_v41  ;;  %s1358_s15 = sld [smem:[#allocation7 + $0xf]]  ;;  %v1375_v2 = vld [vmem:[#allocation2 + $0x14] sm:$0x3] }
  0x25   :  { %v118_v52 = vadd.f32 %v117_v37, %v115_v44  ;;  %v129_v53 = vmul.f32 %v128_v49, %v1303_v4  ;;  %v131_v54 = vstv %s1336_s10  ;;  %155 = vst [vmem:[#allocation9 + $0x6] sm:$0x3] %v153_v42  ;;  %v167_v55 = vmul.f32 %v1301_v3, %v125_v46  ;;  %s1363_s16 = sld [smem:[#allocation8 + $0x3]]  ;;  %v1379_v3 = vld [vmem:[#allocation2 + $0x18] sm:$0x3] }
  0x26   :  { %v127_v56 = vadd.f32 %v126_v48, %v124_v45  ;;  %v132_v57 = vmul.f32 %v131_v54, %v1309_v7  ;;  %v134_v58 = vstv %s1342_s11  ;;  %v162_v59 = vadd.f32 %v161_v47, %v160_v50  ;;  %s1371_s17 = sld [smem:[#allocation7 + $0x10]]  ;;  %v1381_v7 = vld [vmem:[#allocation2 + $0x16] sm:$0x3] }
  0x27   :  { %v120_v62 = vadd.f32 %v119_v38, %v118_v52  ;;  %v168_v63 = vadd.f32 %v167_v55, %v166_v51  ;;  %v169_v0 = vmul.f32 %v1307_v6, %v128_v49  ;;  %v171_v1 = vmul.f32 %v1316_v13, %v131_v54  ;;  %s1377_s18 = sld [smem:[#allocation7 + $0x11]] }
  0x28   :  { %v130_v4 = vadd.f32 %v129_v53, %v127_v56  ;;  %v163_v5 = vadd.f32 %v162_v59, %v119_v38  ;;  %v215_v8 = vstv %s1346_s12  ;;  %v217_v9 = vstv %s1350_s13  ;;  %s1385_s19 = sld [smem:[#allocation7 + $0x12]] }
  0x29   :  { %122 = vst [vmem:[#allocation9 + $0x2] sm:$0x3] %v120_v62  ;;  %v170_v6 = vadd.f32 %v169_v0, %v168_v63  ;;  %v216_v11 = vmul.f32 %v215_v8, %v1367_v60  ;;  %v218_v12 = vmul.f32 %v217_v9, %v1369_v61  ;;  %v220_v13 = vstv %s1354_s14  ;;  %s1392_s22 = sld [smem:[#allocation7 + $0x13]] }
  0x2a   :  { %v133_v15 = vadd.f32 %v132_v57, %v130_v4  ;;  %165 = vst [vmem:[#allocation9 + $0x8] sm:$0x3] %v163_v5  ;;  %v221_v16 = vmul.f32 %v220_v13, %v1375_v2  ;;  %v223_v17 = vstv %s1358_s15  ;;  %s1398_s23 = sld [smem:[#allocation8 + $0x4]]  ;;  %v268_v18 = vmul.f32 %v1379_v3, %v215_v8 }
  0x2b   :  { %v172_v19 = vadd.f32 %v171_v1, %v170_v6  ;;  %v219_v20 = vadd.f32 %v218_v12, %v216_v11  ;;  %v224_v21 = vmul.f32 %v223_v17, %v1381_v7  ;;  %v226_v22 = vstv %s1363_s16  ;;  %s1403_s24 = sld [smem:[#allocation7 + $0x14]]  ;;  %v1452_v1 = vld [vmem:[#allocation2 + $0x22] sm:$0x3] }
  0x2c   :  { %v135_v24 = vadd.f32 %v134_v58, %v133_v15  ;;  %v230_v25 = vstv %s1371_s17  ;;  %s1408_s0 = sld [smem:[#allocation7 + $0x15]]  ;;  %v269_v26 = vmul.f32 %v1387_v10, %v217_v9  ;;  %v271_v27 = vmul.f32 %v1394_v14, %v220_v13  ;;  %v1467_v13 = vld [vmem:[#allocation2 + $0x28] sm:$0x3] }
  0x2d   :  { %v173_v28 = vadd.f32 %v172_v19, %v134_v58  ;;  %v222_v29 = vadd.f32 %v221_v16, %v219_v20  ;;  %v231_v30 = vmul.f32 %v230_v25, %v1367_v60  ;;  %v232_v31 = vstv %s1377_s18  ;;  %s1414_s25 = sld [smem:[#allocation7 + $0x16]] }
  0x2e   :  { %137 = vst [vmem:[#allocation9 + $0x4] sm:$0x3] %v135_v24  ;;  %v233_v32 = vmul.f32 %v232_v31, %v1369_v61  ;;  %v235_v33 = vstv %s1385_s19  ;;  %s1418_s1 = sld [smem:[#allocation7 + $0x17]]  ;;  %v270_v34 = vadd.f32 %v269_v26, %v268_v18  ;;  %v273_v35 = vmul.f32 %v1405_v23, %v223_v17 }
  0x2f   :  { %175 = vst [vmem:[#allocation9 + $0xa] sm:$0x3] %v173_v28  ;;  %v225_v36 = vadd.f32 %v224_v21, %v222_v29  ;;  %v236_v37 = vmul.f32 %v235_v33, %v1375_v2  ;;  %v238_v38 = vstv %s1392_s22  ;;  %s1423_s26 = sld [smem:[#allocation8 + $0x5]]  ;;  %v278_v39 = vmul.f32 %v1379_v3, %v230_v25  ;;  %v1480_v21 = vld [vmem:[#allocation2 + $0x2a] sm:$0x3] }
  0x30   :  { %v234_v40 = vadd.f32 %v233_v32, %v231_v30  ;;  %v239_v41 = vmul.f32 %v238_v38, %v1381_v7  ;;  %v241_v42 = vstv %s1398_s23  ;;  %v272_v43 = vadd.f32 %v271_v27, %v270_v34  ;;  %s1428_s27 = sld [smem:[#allocation7 + $0x18]]  ;;  %v1486_v25 = vld [vmem:[#allocation2 + $0x2c] sm:$0x3] }
  0x31   :  { %v227_v44 = vadd.f32 %v226_v22, %v225_v36  ;;  %v245_v45 = vstv %s1403_s24  ;;  %v279_v46 = vmul.f32 %v1387_v10, %v232_v31  ;;  %v281_v47 = vmul.f32 %v1394_v14, %v235_v33  ;;  %s1433_s28 = sld [smem:[#allocation7 + $0x19]] }
  0x32   :  { %v237_v48 = vadd.f32 %v236_v37, %v234_v40  ;;  %v246_v49 = vmul.f32 %v245_v45, %v1367_v60  ;;  %v247_v50 = vstv %s1408_s0  ;;  %v274_v51 = vadd.f32 %v273_v35, %v272_v43  ;;  %s1437_s29 = sld [smem:[#allocation7 + $0x1a]] }
  0x33   :  { %229 = vst [vmem:[#allocation9 + $0xc] sm:$0x3] %v227_v44  ;;  %v248_v52 = vmul.f32 %v247_v50, %v1369_v61  ;;  %v250_v53 = vstv %s1414_s25  ;;  %v280_v54 = vadd.f32 %v279_v46, %v278_v39  ;;  %v283_v55 = vmul.f32 %v1405_v23, %v238_v38  ;;  %s1442_s2 = sld [smem:[#allocation7 + $0x1b]]  ;;  %v1450_v61 = vld [vmem:[#allocation2 + $0x20] sm:$0x3] }
  0x34   :  { %v240_v56 = vadd.f32 %v239_v41, %v237_v48  ;;  %v251_v57 = vmul.f32 %v250_v53, %v1375_v2  ;;  %v253_v58 = vstv %s1418_s1  ;;  %v275_v59 = vadd.f32 %v274_v51, %v226_v22  ;;  %s1446_s30 = sld [smem:[#allocation8 + $0x6]]  ;;  %v389_v38 = vld [vmem:[#allocation2 + $0x2e] sm:$0x3] }
  0x35   :  { %v249_v60 = vadd.f32 %v248_v52, %v246_v49  ;;  %v254_v62 = vmul.f32 %v253_v58, %v1381_v7  ;;  %v256_v63 = vstv %s1423_s26  ;;  %v282_v0 = vadd.f32 %v281_v47, %v280_v54  ;;  %s1454_s4 = sld [smem:[#allocation7 + $0x1c]]  ;;  %v1459_v7 = vld [vmem:[#allocation2 + $0x24] sm:$0x3] }
  0x36   :  { %v242_v4 = vadd.f32 %v241_v42, %v240_v56  ;;  %277 = vst [vmem:[#allocation9 + $0x12] sm:$0x3] %v275_v59  ;;  %v288_v2 = vmul.f32 %v1379_v3, %v245_v45  ;;  %v289_v5 = vmul.f32 %v1387_v10, %v247_v50  ;;  %v291_v8 = vmul.f32 %v1394_v14, %v250_v53  ;;  %s1461_s5 = sld [smem:[#allocation7 + $0x1d]]  ;;  %v1469_v10 = vld [vmem:[#allocation2 + $0x26] sm:$0x3] }
  0x37   :  { %v252_v9 = vadd.f32 %v251_v57, %v249_v60  ;;  %v284_v6 = vadd.f32 %v283_v55, %v282_v0  ;;  %v293_v11 = vmul.f32 %v1405_v23, %v253_v58  ;;  %v337_v12 = vstv %s1428_s27  ;;  %s1465_s6 = sld [smem:[#allocation7 + $0x1e]] }
  0x38   :  { %244 = vst [vmem:[#allocation9 + $0xe] sm:$0x3] %v242_v4  ;;  %v290_v3 = vadd.f32 %v289_v5, %v288_v2  ;;  %v338_v14 = vmul.f32 %v337_v12, %v1450_v61  ;;  %v339_v15 = vstv %s1433_s28  ;;  %v342_v16 = vstv %s1437_s29  ;;  %s1474_s7 = sld [smem:[#allocation7 + $0x1f]] }
  0x39   :  { %v255_v17 = vadd.f32 %v254_v62, %v252_v9  ;;  %v285_v18 = vadd.f32 %v284_v6, %v241_v42  ;;  %v340_v19 = vmul.f32 %v339_v15, %v1452_v1  ;;  %v343_v20 = vmul.f32 %v342_v16, %v1459_v7  ;;  %s1478_s8 = sld [smem:[#allocation8 + $0x7]]  ;;  %v1536_v6 = vld [vmem:[#allocation2 + $0x30] sm:$0x3] }
  0x3a   :  { %v292_v22 = vadd.f32 %v291_v8, %v290_v3  ;;  %v345_v23 = vstv %s1442_s2  ;;  %v348_v24 = vstv %s1446_s30  ;;  %s1484_s9 = sld [smem:[#allocation7 + $0x20]]  ;;  %v390_v26 = vmul.f32 %v1467_v13, %v337_v12 }
  0x3b   :  { %v257_v27 = vadd.f32 %v256_v63, %v255_v17  ;;  %287 = vst [vmem:[#allocation9 + $0x14] sm:$0x3] %v285_v18  ;;  %v341_v28 = vadd.f32 %v340_v19, %v338_v14  ;;  %v346_v29 = vmul.f32 %v345_v23, %v1469_v10  ;;  %v352_v30 = vstv %s1454_s4  ;;  %s1491_s10 = sld [smem:[#allocation7 + $0x21]] }
  0x3c   :  { %v294_v31 = vadd.f32 %v293_v11, %v292_v22  ;;  %v353_v32 = vmul.f32 %v352_v30, %v1450_v61  ;;  %v354_v33 = vstv %s1461_s5  ;;  %s1495_s11 = sld [smem:[#allocation7 + $0x22]]  ;;  %v391_v34 = vmul.f32 %v1480_v21, %v339_v15  ;;  %v1538_v11 = vld [vmem:[#allocation2 + $0x32] sm:$0x3]  ;;  %v1544_v15 = vld [vmem:[#allocation2 + $0x34] sm:$0x3] }
  0x3d   :  { %259 = vst [vmem:[#allocation9 + $0x10] sm:$0x3] %v257_v27  ;;  %v344_v35 = vadd.f32 %v343_v20, %v341_v28  ;;  %v355_v36 = vmul.f32 %v354_v33, %v1452_v1  ;;  %v357_v37 = vstv %s1465_s6  ;;  %s1500_s12 = sld [smem:[#allocation7 + $0x23]]  ;;  %v393_v39 = vmul.f32 %v1486_v25, %v342_v16  ;;  %v1548_v16 = vld [vmem:[#allocation2 + $0x36] sm:$0x3] }
  0x3e   :  { %v295_v40 = vadd.f32 %v294_v31, %v256_v63  ;;  %v358_v41 = vmul.f32 %v357_v37, %v1459_v7  ;;  %v360_v42 = vstv %s1474_s7  ;;  %s1505_s13 = sld [smem:[#allocation8 + $0x8]]  ;;  %v392_v43 = vadd.f32 %v391_v34, %v390_v26  ;;  %v1569_v34 = vld [vmem:[#allocation2 + $0x3c] sm:$0x3] }
  0x3f   :  { %v347_v44 = vadd.f32 %v346_v29, %v344_v35  ;;  %v356_v45 = vadd.f32 %v355_v36, %v353_v32  ;;  %v361_v46 = vmul.f32 %v360_v42, %v1469_v10  ;;  %v363_v47 = vstv %s1478_s8  ;;  %s1509_s14 = sld [smem:[#allocation7 + $0x24]] }
  0x40   :  { %297 = vst [vmem:[#allocation9 + $0x16] sm:$0x3] %v295_v40  ;;  %v367_v48 = vstv %s1484_s9  ;;  %v394_v49 = vadd.f32 %v393_v39, %v392_v43  ;;  %v395_v50 = vmul.f32 %v389_v38, %v345_v23  ;;  %v400_v51 = vmul.f32 %v1467_v13, %v352_v30  ;;  %s1513_s15 = sld [smem:[#allocation7 + $0x25]] }
  0x41   :  { %v349_v52 = vadd.f32 %v348_v24, %v347_v44  ;;  %v359_v53 = vadd.f32 %v358_v41, %v356_v45  ;;  %v368_v54 = vmul.f32 %v367_v48, %v1450_v61  ;;  %v369_v55 = vstv %s1491_s10  ;;  %s1517_s16 = sld [smem:[#allocation7 + $0x26]] }
  0x42   :  { %v370_v56 = vmul.f32 %v369_v55, %v1452_v1  ;;  %v372_v57 = vstv %s1495_s11  ;;  %v396_v58 = vadd.f32 %v395_v50, %v394_v49  ;;  %v401_v59 = vmul.f32 %v1480_v21, %v354_v33  ;;  %s1522_s17 = sld [smem:[#allocation7 + $0x27]]  ;;  %v507_v33 = vld [vmem:[#allocation2 + $0x3a] sm:$0x3] }
  0x43   :  { %351 = vst [vmem:[#allocation9 + $0x18] sm:$0x3] %v349_v52  ;;  %v362_v60 = vadd.f32 %v361_v46, %v359_v53  ;;  %v373_v62 = vmul.f32 %v372_v57, %v1459_v7  ;;  %v375_v63 = vstv %s1500_s12  ;;  %v403_v0 = vmul.f32 %v1486_v25, %v357_v37  ;;  %s1527_s18 = sld [smem:[#allocation8 + $0x9]] }
  0x44   :  { %v371_v61 = vadd.f32 %v370_v56, %v368_v54  ;;  %v376_v4 = vmul.f32 %v375_v63, %v1469_v10  ;;  %v378_v1 = vstv %s1505_s13  ;;  %v397_v2 = vadd.f32 %v396_v58, %v348_v24  ;;  %s1531_s19 = sld [smem:[#allocation7 + $0x28]]  ;;  %v1559_v24 = vld [vmem:[#allocation2 + $0x38] sm:$0x3] }
  0x45   :  { %v364_v5 = vadd.f32 %v363_v47, %v362_v60  ;;  %v402_v8 = vadd.f32 %v401_v59, %v400_v51  ;;  %v405_v9 = vmul.f32 %v389_v38, %v360_v42  ;;  %v410_v7 = vmul.f32 %v1467_v13, %v367_v48  ;;  %s1540_s22 = sld [smem:[#allocation7 + $0x29]]  ;;  %v511_v51 = vld [vmem:[#allocation2 + $0x3e] sm:$0x3] }
  0x46   :  { %v374_v12 = vadd.f32 %v373_v62, %v371_v61  ;;  %399 = vst [vmem:[#allocation9 + $0x1e] sm:$0x3] %v397_v2  ;;  %v411_v3 = vmul.f32 %v1480_v21, %v369_v55  ;;  %v413_v10 = vmul.f32 %v1486_v25, %v372_v57  ;;  %v415_v14 = vmul.f32 %v389_v38, %v375_v63  ;;  %s1546_s23 = sld [smem:[#allocation7 + $0x2a]] }
  0x47   :  { %366 = vst [vmem:[#allocation9 + $0x1a] sm:$0x3] %v364_v5  ;;  %v404_v13 = vadd.f32 %v403_v0, %v402_v8  ;;  %v459_v17 = vstv %s1509_s14  ;;  %v461_v18 = vstv %s1513_s15  ;;  %v464_v19 = vstv %s1517_s16  ;;  %s1553_s24 = sld [smem:[#allocation7 + $0x2b]] }
  0x48   :  { %v377_v20 = vadd.f32 %v376_v4, %v374_v12  ;;  %v412_v21 = vadd.f32 %v411_v3, %v410_v7  ;;  %v460_v22 = vmul.f32 %v459_v17, %v1536_v6  ;;  %v462_v23 = vmul.f32 %v461_v18, %v1538_v11  ;;  %s1557_s0 = sld [smem:[#allocation8 + $0xa]] }
  0x49   :  { %v406_v25 = vadd.f32 %v405_v9, %v404_v13  ;;  %v465_v26 = vmul.f32 %v464_v19, %v1544_v15  ;;  %v467_v27 = vstv %s1522_s17  ;;  %v470_v28 = vstv %s1527_s18  ;;  %s1564_s25 = sld [smem:[#allocation7 + $0x2c]] }
  0x4a   :  { %v379_v29 = vadd.f32 %v378_v1, %v377_v20  ;;  %v414_v30 = vadd.f32 %v413_v10, %v412_v21  ;;  %v463_v31 = vadd.f32 %v462_v23, %v460_v22  ;;  %v468_v32 = vmul.f32 %v467_v27, %v1548_v16  ;;  %s1567_s1 = sld [smem:[#allocation7 + $0x2d]]  ;;  %v1617_v10 = vld [vmem:[#allocation2 + $0x40] sm:$0x3]  ;;  %v1631_v22 = vld [vmem:[#allocation2 + $0x46] sm:$0x3] }
  0x4b   :  { %v407_v35 = vadd.f32 %v406_v25, %v363_v47  ;;  %v474_v36 = vstv %s1531_s19  ;;  %v476_v37 = vstv %s1540_s22  ;;  %s1575_s26 = sld [smem:[#allocation7 + $0x2e]]  ;;  %v512_v38 = vmul.f32 %v1559_v24, %v459_v17  ;;  %v1624_v17 = vld [vmem:[#allocation2 + $0x42] sm:$0x3] }
  0x4c   :  { %381 = vst [vmem:[#allocation9 + $0x1c] sm:$0x3] %v379_v29  ;;  %v416_v39 = vadd.f32 %v415_v14, %v414_v30  ;;  %v466_v40 = vadd.f32 %v465_v26, %v463_v31  ;;  %v475_v41 = vmul.f32 %v474_v36, %v1536_v6  ;;  %v477_v42 = vmul.f32 %v476_v37, %v1538_v11  ;;  %s1580_s27 = sld [smem:[#allocation7 + $0x2f]] }
  0x4d   :  { %409 = vst [vmem:[#allocation9 + $0x20] sm:$0x3] %v407_v35  ;;  %v479_v43 = vstv %s1546_s23  ;;  %v482_v44 = vstv %s1553_s24  ;;  %s1584_s28 = sld [smem:[#allocation8 + $0xb]]  ;;  %v513_v45 = vmul.f32 %v507_v33, %v461_v18  ;;  %v515_v46 = vmul.f32 %v1569_v34, %v464_v19  ;;  %v1626_v18 = vld [vmem:[#allocation2 + $0x44] sm:$0x3] }
  0x4e   :  { %v417_v47 = vadd.f32 %v416_v39, %v378_v1  ;;  %v469_v48 = vadd.f32 %v468_v32, %v466_v40  ;;  %v478_v49 = vadd.f32 %v477_v42, %v475_v41  ;;  %v480_v50 = vmul.f32 %v479_v43, %v1544_v15  ;;  %s1588_s29 = sld [smem:[#allocation7 + $0x30]]  ;;  %v627_v40 = vld [vmem:[#allocation2 + $0x48] sm:$0x3] }
  0x4f   :  { %v483_v52 = vmul.f32 %v482_v44, %v1548_v16  ;;  %v485_v53 = vstv %s1557_s0  ;;  %v489_v54 = vstv %s1564_s25  ;;  %v514_v55 = vadd.f32 %v513_v45, %v512_v38  ;;  %s1593_s2 = sld [smem:[#allocation7 + $0x31]] }
  0x50   :  { %419 = vst [vmem:[#allocation9 + $0x22] sm:$0x3] %v417_v47  ;;  %v471_v56 = vadd.f32 %v470_v28, %v469_v48  ;;  %v481_v57 = vadd.f32 %v480_v50, %v478_v49  ;;  %v490_v58 = vmul.f32 %v489_v54, %v1536_v6  ;;  %v491_v59 = vstv %s1567_s1  ;;  %s1599_s30 = sld [smem:[#allocation7 + $0x32]]  ;;  %v629_v49 = vld [vmem:[#allocation2 + $0x4a] sm:$0x3] }
  0x51   :  { %v492_v60 = vmul.f32 %v491_v59, %v1538_v11  ;;  %v494_v62 = vstv %s1575_s26  ;;  %v516_v63 = vadd.f32 %v515_v46, %v514_v55  ;;  %v517_v0 = vmul.f32 %v511_v51, %v467_v27  ;;  %s1603_s4 = sld [smem:[#allocation7 + $0x33]]  ;;  %v631_v50 = vld [vmem:[#allocation2 + $0x4c] sm:$0x3] }
  0x52   :  { %473 = vst [vmem:[#allocation9 + $0x24] sm:$0x3] %v471_v56  ;;  %v484_v61 = vadd.f32 %v483_v52, %v481_v57  ;;  %v495_v4 = vmul.f32 %v494_v62, %v1544_v15  ;;  %v497_v1 = vstv %s1580_s27  ;;  %v522_v2 = vmul.f32 %v1559_v24, %v474_v36  ;;  %s1608_s5 = sld [smem:[#allocation8 + $0xc]] }
  0x53   :  { %v493_v5 = vadd.f32 %v492_v60, %v490_v58  ;;  %v498_v8 = vmul.f32 %v497_v1, %v1548_v16  ;;  %v500_v9 = vstv %s1584_s28  ;;  %v518_v7 = vadd.f32 %v517_v0, %v516_v63  ;;  %s1612_s6 = sld [smem:[#allocation7 + $0x34]] }
  0x54   :  { %v486_v6 = vadd.f32 %v485_v53, %v484_v61  ;;  %v523_v11 = vmul.f32 %v507_v33, %v476_v37  ;;  %v525_v12 = vmul.f32 %v1569_v34, %v479_v43  ;;  %v527_v3 = vmul.f32 %v511_v51, %v482_v44  ;;  %s1619_s7 = sld [smem:[#allocation7 + $0x35]] }
  0x55   :  { %v496_v14 = vadd.f32 %v495_v4, %v493_v5  ;;  %v519_v15 = vadd.f32 %v518_v7, %v470_v28  ;;  %v532_v13 = vmul.f32 %v1559_v24, %v489_v54  ;;  %v533_v16 = vmul.f32 %v507_v33, %v491_v59  ;;  %s1628_s8 = sld [smem:[#allocation7 + $0x36]]  ;;  %v633_v59 = vld [vmem:[#allocation2 + $0x4e] sm:$0x3] }
  0x56   :  { %488 = vst [vmem:[#allocation9 + $0x26] sm:$0x3] %v486_v6  ;;  %v524_v19 = vadd.f32 %v523_v11, %v522_v2  ;;  %v535_v20 = vmul.f32 %v1569_v34, %v494_v62  ;;  %v537_v21 = vmul.f32 %v511_v51, %v497_v1  ;;  %v581_v23 = vstv %s1588_s29  ;;  %s1634_s9 = sld [smem:[#allocation7 + $0x37]] }
  0x57   :  { %v499_v24 = vadd.f32 %v498_v8, %v496_v14  ;;  %521 = vst [vmem:[#allocation9 + $0x2a] sm:$0x3] %v519_v15  ;;  %v534_v25 = vadd.f32 %v533_v16, %v532_v13  ;;  %v582_v26 = vmul.f32 %v581_v23, %v1617_v10  ;;  %v583_v27 = vstv %s1593_s2  ;;  %s1638_s10 = sld [smem:[#allocation8 + $0xd]] }
  0x58   :  { %v526_v28 = vadd.f32 %v525_v12, %v524_v19  ;;  %v584_v29 = vmul.f32 %v583_v27, %v1624_v17  ;;  %v586_v30 = vstv %s1599_s30  ;;  %v589_v31 = vstv %s1603_s4  ;;  %s1643_s11 = sld [smem:[#allocation7 + $0x38]] }
  0x59   :  { %v501_v32 = vadd.f32 %v500_v9, %v499_v24  ;;  %v536_v33 = vadd.f32 %v535_v20, %v534_v25  ;;  %v587_v34 = vmul.f32 %v586_v30, %v1626_v18  ;;  %v590_v35 = vmul.f32 %v589_v31, %v1631_v22  ;;  %s1647_s12 = sld [smem:[#allocation7 + $0x39]]  ;;  %v1694_v20 = vld [vmem:[#allocation2 + $0x50] sm:$0x3]  ;;  %v698_v25 = vld [vmem:[#allocation2 + $0x52] sm:$0x3] }
  0x5a   :  { %v528_v36 = vadd.f32 %v527_v3, %v526_v28  ;;  %v585_v37 = vadd.f32 %v584_v29, %v582_v26  ;;  %v592_v38 = vstv %s1608_s5  ;;  %v596_v39 = vstv %s1612_s6  ;;  %s1651_s13 = sld [smem:[#allocation7 + $0x3a]]  ;;  %v1698_v26 = vld [vmem:[#allocation2 + $0x54] sm:$0x3]  ;;  %v1702_v29 = vld [vmem:[#allocation2 + $0x56] sm:$0x3] }
  0x5b   :  { %503 = vst [vmem:[#allocation9 + $0x28] sm:$0x3] %v501_v32  ;;  %v538_v41 = vadd.f32 %v537_v21, %v536_v33  ;;  %v597_v42 = vmul.f32 %v596_v39, %v1617_v10  ;;  %v598_v43 = vstv %s1619_s7  ;;  %v601_v44 = vstv %s1628_s8  ;;  %s1656_s14 = sld [smem:[#allocation7 + $0x3b]] }
  0x5c   :  { %v529_v45 = vadd.f32 %v528_v36, %v485_v53  ;;  %v588_v46 = vadd.f32 %v587_v34, %v585_v37  ;;  %v599_v47 = vmul.f32 %v598_v43, %v1624_v17  ;;  %v602_v48 = vmul.f32 %v601_v44, %v1626_v18  ;;  %s1662_s15 = sld [smem:[#allocation8 + $0xe]] }
  0x5d   :  { %v539_v51 = vadd.f32 %v538_v41, %v500_v9  ;;  %v604_v52 = vstv %s1634_s9  ;;  %v607_v54 = vstv %s1638_s10  ;;  %v634_v55 = vmul.f32 %v627_v40, %v581_v23  ;;  %s1666_s16 = sld [smem:[#allocation7 + $0x3c]] }
  0x5e   :  { %531 = vst [vmem:[#allocation9 + $0x2c] sm:$0x3] %v529_v45  ;;  %v591_v53 = vadd.f32 %v590_v35, %v588_v46  ;;  %v600_v56 = vadd.f32 %v599_v47, %v597_v42  ;;  %v605_v57 = vmul.f32 %v604_v52, %v1631_v22  ;;  %v611_v58 = vstv %s1643_s11  ;;  %s1670_s17 = sld [smem:[#allocation7 + $0x3d]] }
  0x5f   :  { %541 = vst [vmem:[#allocation9 + $0x2e] sm:$0x3] %v539_v51  ;;  %v612_v60 = vmul.f32 %v611_v58, %v1617_v10  ;;  %v613_v62 = vstv %s1647_s12  ;;  %v635_v63 = vmul.f32 %v629_v49, %v583_v27  ;;  %v637_v0 = vmul.f32 %v631_v50, %v586_v30  ;;  %s1674_s18 = sld [smem:[#allocation7 + $0x3e]] }
  0x60   :  { %v593_v61 = vadd.f32 %v592_v38, %v591_v53  ;;  %v603_v4 = vadd.f32 %v602_v48, %v600_v56  ;;  %v614_v1 = vmul.f32 %v613_v62, %v1624_v17  ;;  %v616_v2 = vstv %s1651_s13  ;;  %s1680_s19 = sld [smem:[#allocation7 + $0x3f]] }
  0x61   :  { %v617_v5 = vmul.f32 %v616_v2, %v1626_v18  ;;  %v619_v8 = vstv %s1656_s14  ;;  %v636_v9 = vadd.f32 %v635_v63, %v634_v55  ;;  %v639_v7 = vmul.f32 %v633_v59, %v589_v31  ;;  %s1684_s22 = sld [smem:[#allocation8 + $0xf]] }
  0x62   :  { %595 = vst [vmem:[#allocation9 + $0x30] sm:$0x3] %v593_v61  ;;  %v606_v6 = vadd.f32 %v605_v57, %v603_v4  ;;  %v615_v11 = vadd.f32 %v614_v1, %v612_v60  ;;  %v620_v12 = vmul.f32 %v619_v8, %v1631_v22  ;;  %v622_v3 = vstv %s1662_s15  ;;  %s1688_s23 = sld [smem:[#allocation7 + $0x40]]  ;;  %v753_v4 = vld [vmem:[#allocation2 + $0x5c] sm:$0x3] }
  0x63   :  { %v638_v10 = vadd.f32 %v637_v0, %v636_v9  ;;  %v644_v14 = vmul.f32 %v627_v40, %v596_v39  ;;  %v645_v15 = vmul.f32 %v629_v49, %v598_v43  ;;  %v647_v13 = vmul.f32 %v631_v50, %v601_v44  ;;  %s1690_s24 = sld [smem:[#allocation7 + $0x41]] }
  0x64   :  { %v608_v16 = vadd.f32 %v607_v54, %v606_v6  ;;  %v618_v17 = vadd.f32 %v617_v5, %v615_v11  ;;  %v649_v18 = vmul.f32 %v633_v59, %v604_v52  ;;  %v654_v19 = vmul.f32 %v627_v40, %v611_v58  ;;  %s1696_s0 = sld [smem:[#allocation7 + $0x42]]  ;;  %v749_v52 = vld [vmem:[#allocation2 + $0x58] sm:$0x3] }
  0x65   :  { %v640_v21 = vadd.f32 %v639_v7, %v638_v10  ;;  %v646_v22 = vadd.f32 %v645_v15, %v644_v14  ;;  %v655_v23 = vmul.f32 %v629_v49, %v613_v62  ;;  %v657_v24 = vmul.f32 %v631_v50, %v616_v2  ;;  %s1700_s25 = sld [smem:[#allocation7 + $0x43]]  ;;  %v751_v62 = vld [vmem:[#allocation2 + $0x5a] sm:$0x3]  ;;  %v755_v7 = vld [vmem:[#allocation2 + $0x5e] sm:$0x3] }
  0x66   :  { %610 = vst [vmem:[#allocation9 + $0x32] sm:$0x3] %v608_v16  ;;  %v621_v27 = vadd.f32 %v620_v12, %v618_v17  ;;  %v659_v28 = vmul.f32 %v633_v59, %v619_v8  ;;  %v703_v30 = vstv %s1666_s16  ;;  %v705_v31 = vstv %s1670_s17  ;;  %s1706_s1 = sld [smem:[#allocation8 + $0x10]] }
  0x67   :  { %v641_v32 = vadd.f32 %v640_v21, %v592_v38  ;;  %v648_v33 = vadd.f32 %v647_v13, %v646_v22  ;;  %v656_v34 = vadd.f32 %v655_v23, %v654_v19  ;;  %v704_v35 = vmul.f32 %v703_v30, %v1694_v20  ;;  %s1711_s26 = sld [smem:[#allocation7 + $0x44]] }
  0x68   :  { %v623_v36 = vadd.f32 %v622_v3, %v621_v27  ;;  %v706_v37 = vmul.f32 %v705_v31, %v698_v25  ;;  %v708_v39 = vstv %s1674_s18  ;;  %v711_v40 = vstv %s1680_s19  ;;  %s1715_s27 = sld [smem:[#allocation7 + $0x45]] }
  0x69   :  { %643 = vst [vmem:[#allocation9 + $0x36] sm:$0x3] %v641_v32  ;;  %v650_v41 = vadd.f32 %v649_v18, %v648_v33  ;;  %v658_v42 = vadd.f32 %v657_v24, %v656_v34  ;;  %v709_v38 = vmul.f32 %v708_v39, %v1698_v26  ;;  %v712_v43 = vmul.f32 %v711_v40, %v1702_v29  ;;  %s1719_s28 = sld [smem:[#allocation7 + $0x46]] }
  0x6a   :  { %625 = vst [vmem:[#allocation9 + $0x34] sm:$0x3] %v623_v36  ;;  %v707_v44 = vadd.f32 %v706_v37, %v704_v35  ;;  %v714_v45 = vstv %s1684_s22  ;;  %v718_v46 = vstv %s1688_s23  ;;  %v720_v47 = vstv %s1690_s24  ;;  %s1724_s29 = sld [smem:[#allocation7 + $0x47]]  ;;  %v822_v36 = vld [vmem:[#allocation2 + $0x64] sm:$0x3] }
  0x6b   :  { %v651_v48 = vadd.f32 %v650_v41, %v607_v54  ;;  %v660_v49 = vadd.f32 %v659_v28, %v658_v42  ;;  %v719_v50 = vmul.f32 %v718_v46, %v1694_v20  ;;  %v721_v51 = vmul.f32 %v720_v47, %v698_v25  ;;  %s1729_s2 = sld [smem:[#allocation8 + $0x11]]  ;;  %v1764_v28 = vld [vmem:[#allocation2 + $0x60] sm:$0x3]  ;;  %v1772_v37 = vld [vmem:[#allocation2 + $0x66] sm:$0x3] }
  0x6c   :  { %v710_v55 = vadd.f32 %v709_v38, %v707_v44  ;;  %v723_v53 = vstv %s1696_s0  ;;  %v726_v56 = vstv %s1700_s25  ;;  %v729_v57 = vstv %s1706_s1  ;;  %s1734_s30 = sld [smem:[#allocation7 + $0x48]] }
  0x6d   :  { %653 = vst [vmem:[#allocation9 + $0x38] sm:$0x3] %v651_v48  ;;  %v661_v58 = vadd.f32 %v660_v49, %v622_v3  ;;  %v722_v59 = vadd.f32 %v721_v51, %v719_v50  ;;  %v724_v54 = vmul.f32 %v723_v53, %v1698_v26  ;;  %v727_v60 = vmul.f32 %v726_v56, %v1702_v29  ;;  %s1738_s4 = sld [smem:[#allocation7 + $0x49]] }
  0x6e   :  { %v713_v63 = vadd.f32 %v712_v43, %v710_v55  ;;  %v733_v0 = vstv %s1711_s26  ;;  %v735_v61 = vstv %s1715_s27  ;;  %v756_v1 = vmul.f32 %v749_v52, %v703_v30  ;;  %s1742_s5 = sld [smem:[#allocation7 + $0x4a]] }
  0x6f   :  { %663 = vst [vmem:[#allocation9 + $0x3a] sm:$0x3] %v661_v58  ;;  %v725_v2 = vadd.f32 %v724_v54, %v722_v59  ;;  %v734_v5 = vmul.f32 %v733_v0, %v1694_v20  ;;  %v736_v8 = vmul.f32 %v735_v61, %v698_v25  ;;  %v738_v9 = vstv %s1719_s28  ;;  %s1746_s6 = sld [smem:[#allocation7 + $0x4b]] }
  0x70   :  { %v715_v6 = vadd.f32 %v714_v45, %v713_v63  ;;  %v739_v11 = vmul.f32 %v738_v9, %v1698_v26  ;;  %v741_v12 = vstv %s1724_s29  ;;  %v757_v3 = vmul.f32 %v751_v62, %v705_v31  ;;  %s1752_s7 = sld [smem:[#allocation8 + $0x12]] }
  0x71   :  { %v728_v10 = vadd.f32 %v727_v60, %v725_v2  ;;  %v737_v14 = vadd.f32 %v736_v8, %v734_v5  ;;  %v742_v15 = vmul.f32 %v741_v12, %v1702_v29  ;;  %v744_v13 = vstv %s1729_s2  ;;  %s1756_s8 = sld [smem:[#allocation7 + $0x4c]]  ;;  %v1766_v29 = vld [vmem:[#allocation2 + $0x62] sm:$0x3]  ;;  %v873_v8 = vld [vmem:[#allocation2 + $0x6a] sm:$0x3] }
  0x72   :  { %717 = vst [vmem:[#allocation9 + $0x3c] sm:$0x3] %v715_v6  ;;  %v758_v16 = vadd.f32 %v757_v3, %v756_v1  ;;  %v759_v17 = vmul.f32 %v753_v4, %v708_v39  ;;  %v761_v18 = vmul.f32 %v755_v7, %v711_v40  ;;  %v766_v19 = vmul.f32 %v749_v52, %v718_v46  ;;  %s1758_s9 = sld [smem:[#allocation7 + $0x4d]] }
  0x73   :  { %v730_v20 = vadd.f32 %v729_v57, %v728_v10  ;;  %v740_v21 = vadd.f32 %v739_v11, %v737_v14  ;;  %v767_v22 = vmul.f32 %v751_v62, %v720_v47  ;;  %v769_v23 = vmul.f32 %v753_v4, %v723_v53  ;;  %s1762_s10 = sld [smem:[#allocation7 + $0x4e]]  ;;  %v875_v11 = vld [vmem:[#allocation2 + $0x6c] sm:$0x3] }
  0x74   :  { %v760_v24 = vadd.f32 %v759_v17, %v758_v16  ;;  %v771_v25 = vmul.f32 %v755_v7, %v726_v56  ;;  %v776_v26 = vmul.f32 %v749_v52, %v733_v0  ;;  %v777_v27 = vmul.f32 %v751_v62, %v735_v61  ;;  %s1768_s11 = sld [smem:[#allocation7 + $0x4f]]  ;;  %v871_v62 = vld [vmem:[#allocation2 + $0x68] sm:$0x3] }
  0x75   :  { %732 = vst [vmem:[#allocation9 + $0x3e] sm:$0x3] %v730_v20  ;;  %v743_v30 = vadd.f32 %v742_v15, %v740_v21  ;;  %v768_v31 = vadd.f32 %v767_v22, %v766_v19  ;;  %v779_v32 = vmul.f32 %v753_v4, %v738_v9  ;;  %v781_v33 = vmul.f32 %v755_v7, %v741_v12  ;;  %s1770_s12 = sld [smem:[#allocation8 + $0x13]] }
  0x76   :  { %v762_v34 = vadd.f32 %v761_v18, %v760_v24  ;;  %v778_v35 = vadd.f32 %v777_v27, %v776_v26  ;;  %v825_v39 = vstv %s1734_s30  ;;  %v827_v40 = vstv %s1738_s4  ;;  %s1776_s13 = sld [smem:[#allocation7 + $0x50]] }
  0x77   :  { %v745_v41 = vadd.f32 %v744_v13, %v743_v30  ;;  %v770_v42 = vadd.f32 %v769_v23, %v768_v31  ;;  %v826_v38 = vmul.f32 %v825_v39, %v1764_v28  ;;  %v828_v43 = vmul.f32 %v827_v40, %v1766_v29  ;;  %s1780_s14 = sld [smem:[#allocation7 + $0x51]] }
  0x78   :  { %v763_v44 = vadd.f32 %v762_v34, %v714_v45  ;;  %v780_v46 = vadd.f32 %v779_v32, %v778_v35  ;;  %v830_v47 = vstv %s1742_s5  ;;  %v833_v48 = vstv %s1746_s6  ;;  %s1786_s15 = sld [smem:[#allocation7 + $0x52]]  ;;  %v940_v32 = vld [vmem:[#allocation2 + $0x70] sm:$0x3]  ;;  %s1260_s5 = smov [#allocation9]  }
  0x79   :  { %747 = vst [vmem:[#allocation9 + $0x40] sm:$0x3] %v745_v41  ;;  %v772_v49 = vadd.f32 %v771_v25, %v770_v42  ;;  %v829_v50 = vadd.f32 %v828_v43, %v826_v38  ;;  %v831_v51 = vmul.f32 %v830_v47, %v822_v36  ;;  %v834_v52 = vmul.f32 %v833_v48, %v1772_v37  ;;  %s1789_s16 = sld [smem:[#allocation7 + $0x53]]  ;;  %v942_v41 = vld [vmem:[#allocation2 + $0x72] sm:$0x3]  ;;  %s1034_s6 = sshll.u32 %s1260_s5, 4  ;;  %s1035_s6 = int_to_ptr.vmem [resolvable:$true] %s1034_s6 }
  0x7a   :  { %765 = vst [vmem:[#allocation9 + $0x42] sm:$0x3] %v763_v44  ;;  %v782_v55 = vadd.f32 %v781_v33, %v780_v46  ;;  %v836_v45 = vstv %s1752_s7  ;;  %v840_v53 = vstv %s1756_s8  ;;  %v842_v56 = vstv %s1758_s9  ;;  %s1794_s17 = sld [smem:[#allocation8 + $0x14]]  ;;  %v944_v46 = vld [vmem:[#allocation2 + $0x74] sm:$0x3]  ;;  %s1036_s9 = sshll.u32 %s1882_s3, 4  ;;  %s1037_s9 = int_to_ptr.hbm [resolvable:$true] %s1036_s9 }
  0x7b   :  { %v773_v58 = vadd.f32 %v772_v49, %v729_v57  ;;  %v832_v59 = vadd.f32 %v831_v51, %v829_v50  ;;  %v841_v54 = vmul.f32 %v840_v53, %v1764_v28  ;;  %v843_v60 = vmul.f32 %v842_v56, %v1766_v29  ;;  %s1800_s18 = sld [smem:[#allocation7 + $0x54]] }
  0x7c   :  { %v783_v63 = vadd.f32 %v782_v55, %v744_v13  ;;  %v845_v0 = vstv %s1762_s10  ;;  %v848_v61 = vstv %s1768_s11  ;;  %v851_v4 = vstv %s1770_s12  ;;  %s1805_s19 = sld [smem:[#allocation7 + $0x55]]  ;;  %v877_v13 = vld [vmem:[#allocation2 + $0x6e] sm:$0x3] }
  0x7d   :  { %775 = vst [vmem:[#allocation9 + $0x44] sm:$0x3] %v773_v58  ;;  %v835_v57 = vadd.f32 %v834_v52, %v832_v59  ;;  %v844_v1 = vadd.f32 %v843_v60, %v841_v54  ;;  %v846_v2 = vmul.f32 %v845_v0, %v822_v36  ;;  %v849_v5 = vmul.f32 %v848_v61, %v1772_v37  ;;  %s1808_s22 = sld [smem:[#allocation7 + $0x56]] }
  0x7e   :  { %785 = vst [vmem:[#allocation9 + $0x46] sm:$0x3] %v783_v63  ;;  %v855_v9 = vstv %s1776_s13  ;;  %v857_v7 = vstv %s1780_s14  ;;  %v860_v6 = vstv %s1786_s15  ;;  %v878_v12 = vmul.f32 %v871_v62, %v825_v39  ;;  %s1813_s23 = sld [smem:[#allocation7 + $0x57]] }
  0x7f   :  { %v837_v3 = vadd.f32 %v836_v45, %v835_v57  ;;  %v847_v10 = vadd.f32 %v846_v2, %v844_v1  ;;  %v856_v14 = vmul.f32 %v855_v9, %v1764_v28  ;;  %v858_v15 = vmul.f32 %v857_v7, %v1766_v29  ;;  %s1819_s24 = sld [smem:[#allocation8 + $0x15]] }
  0x80   :  { %v861_v16 = vmul.f32 %v860_v6, %v822_v36  ;;  %v863_v17 = vstv %s1789_s16  ;;  %v866_v18 = vstv %s1794_s17  ;;  %v879_v19 = vmul.f32 %v873_v8, %v827_v40  ;;  %s1823_s0 = sld [smem:[#allocation7 + $0x58]] }
  0x81   :  { %839 = vst [vmem:[#allocation9 + $0x48] sm:$0x3] %v837_v3  ;;  %v850_v20 = vadd.f32 %v849_v5, %v847_v10  ;;  %v859_v21 = vadd.f32 %v858_v15, %v856_v14  ;;  %v864_v22 = vmul.f32 %v863_v17, %v1772_v37  ;;  %v881_v23 = vmul.f32 %v875_v11, %v830_v47  ;;  %s1826_s25 = sld [smem:[#allocation7 + $0x59]]  ;;  %v946_v47 = vld [vmem:[#allocation2 + $0x76] sm:$0x3] }
  0x82   :  { %v880_v24 = vadd.f32 %v879_v19, %v878_v12  ;;  %v883_v25 = vmul.f32 %v877_v13, %v833_v48  ;;  %v888_v26 = vmul.f32 %v871_v62, %v840_v53  ;;  %v889_v27 = vmul.f32 %v873_v8, %v842_v56  ;;  %s1828_s1 = sld [smem:[#allocation7 + $0x5a]]  ;;  %v995_v14 = vld [vmem:[#allocation2 + $0x7a] sm:$0x3]  ;;  %v997_v19 = vld [vmem:[#allocation2 + $0x7c] sm:$0x3] }
  0x83   :  { %v852_v28 = vadd.f32 %v851_v4, %v850_v20  ;;  %v862_v29 = vadd.f32 %v861_v16, %v859_v21  ;;  %v891_v30 = vmul.f32 %v875_v11, %v845_v0  ;;  %v893_v31 = vmul.f32 %v877_v13, %v848_v61  ;;  %s1832_s26 = sld [smem:[#allocation7 + $0x5b]]  ;;  %v999_v20 = vld [vmem:[#allocation2 + $0x7e] sm:$0x3] }
  0x84   :  { %v882_v33 = vadd.f32 %v881_v23, %v880_v24  ;;  %v890_v34 = vadd.f32 %v889_v27, %v888_v26  ;;  %v898_v35 = vmul.f32 %v871_v62, %v855_v9  ;;  %v899_v36 = vmul.f32 %v873_v8, %v857_v7  ;;  %s1834_s27 = sld [smem:[#allocation8 + $0x16]] }
  0x85   :  { %854 = vst [vmem:[#allocation9 + $0x4a] sm:$0x3] %v852_v28  ;;  %v865_v37 = vadd.f32 %v864_v22, %v862_v29  ;;  %v901_v39 = vmul.f32 %v875_v11, %v860_v6  ;;  %v903_v40 = vmul.f32 %v877_v13, %v863_v17  ;;  %v947_v42 = vstv %s1800_s18  ;;  %s1837_s28 = sld [smem:[#allocation7 + $0x5c]]  ;;  %v993_v11 = vld [vmem:[#allocation2 + $0x78] sm:$0x3] }
  0x86   :  { %v884_v38 = vadd.f32 %v883_v25, %v882_v33  ;;  %v892_v43 = vadd.f32 %v891_v30, %v890_v34  ;;  %v900_v44 = vadd.f32 %v899_v36, %v898_v35  ;;  %v948_v48 = vmul.f32 %v947_v42, %v940_v32  ;;  %s1839_s29 = sld [smem:[#allocation7 + $0x5d]] }
  0x87   :  { %v867_v49 = vadd.f32 %v866_v18, %v865_v37  ;;  %v949_v50 = vstv %s1805_s19  ;;  %v952_v51 = vstv %s1808_s22  ;;  %v955_v52 = vstv %s1813_s23  ;;  %s1846_s2 = sld [smem:[#allocation7 + $0x5e]] }
  0x88   :  { %v885_v55 = vadd.f32 %v884_v38, %v836_v45  ;;  %v894_v53 = vadd.f32 %v893_v31, %v892_v43  ;;  %v902_v56 = vadd.f32 %v901_v39, %v900_v44  ;;  %v950_v58 = vmul.f32 %v949_v50, %v942_v41  ;;  %s1850_s30 = sld [smem:[#allocation7 + $0x5f]] }
  0x89   :  { %869 = vst [vmem:[#allocation9 + $0x4c] sm:$0x3] %v867_v49  ;;  %v953_v59 = vmul.f32 %v952_v51, %v944_v46  ;;  %v956_v54 = vmul.f32 %v955_v52, %v946_v47  ;;  %v958_v60 = vstv %s1819_s24  ;;  %v962_v62 = vstv %s1823_s0  ;;  %s1854_s4 = sld [smem:[#allocation8 + $0x17]] }
  0x8a   :  { %887 = vst [vmem:[#allocation9 + $0x4e] sm:$0x3] %v885_v55  ;;  %v895_v45 = vadd.f32 %v894_v53, %v851_v4  ;;  %v904_v63 = vadd.f32 %v903_v40, %v902_v56  ;;  %v951_v0 = vadd.f32 %v950_v58, %v948_v48  ;;  %v963_v61 = vmul.f32 %v962_v62, %v940_v32 }
  0x8b   :  { %v964_v57 = vstv %s1826_s25  ;;  %v967_v1 = vstv %s1828_s1  ;;  %v970_v2 = vstv %s1832_s26  ;;  %v973_v5 = vstv %s1834_s27 }
  0x8c   :  { %897 = vst [vmem:[#allocation9 + $0x50] sm:$0x3] %v895_v45  ;;  %v905_v8 = vadd.f32 %v904_v63, %v866_v18  ;;  %v954_v9 = vadd.f32 %v953_v59, %v951_v0  ;;  %v965_v7 = vmul.f32 %v964_v57, %v942_v41  ;;  %v968_v6 = vmul.f32 %v967_v1, %v944_v46 }
  0x8d   :  { %v971_v12 = vmul.f32 %v970_v2, %v946_v47  ;;  %v977_v4 = vstv %s1837_s28  ;;  %v979_v3 = vstv %s1839_s29  ;;  %v982_v10 = vstv %s1846_s2 }
  0x8e   :  { %907 = vst [vmem:[#allocation9 + $0x52] sm:$0x3] %v905_v8  ;;  %v957_v15 = vadd.f32 %v956_v54, %v954_v9  ;;  %v966_v13 = vadd.f32 %v965_v7, %v963_v61  ;;  %v978_v16 = vmul.f32 %v977_v4, %v940_v32  ;;  %v980_v17 = vmul.f32 %v979_v3, %v942_v41 }
  0x8f   :  { %v983_v18 = vmul.f32 %v982_v10, %v944_v46  ;;  %v985_v21 = vstv %s1850_s30  ;;  %v988_v22 = vstv %s1854_s4  ;;  %v1000_v23 = vmul.f32 %v993_v11, %v947_v42 }
  0x90   :  { %v959_v24 = vadd.f32 %v958_v60, %v957_v15  ;;  %v969_v25 = vadd.f32 %v968_v6, %v966_v13  ;;  %v981_v26 = vadd.f32 %v980_v17, %v978_v16  ;;  %v986_v27 = vmul.f32 %v985_v21, %v946_v47 }
  0x91   :  { %v1001_v28 = vmul.f32 %v995_v14, %v949_v50  ;;  %v1003_v29 = vmul.f32 %v997_v19, %v952_v51  ;;  %v1005_v30 = vmul.f32 %v999_v20, %v955_v52  ;;  %v1010_v31 = vmul.f32 %v993_v11, %v962_v62 }
  0x92   :  { %961 = vst [vmem:[#allocation9 + $0x54] sm:$0x3] %v959_v24  ;;  %v972_v33 = vadd.f32 %v971_v12, %v969_v25  ;;  %v984_v34 = vadd.f32 %v983_v18, %v981_v26  ;;  %v1011_v32 = vmul.f32 %v995_v14, %v964_v57  ;;  %v1013_v35 = vmul.f32 %v997_v19, %v967_v1 }
  0x93   :  { %v1002_v36 = vadd.f32 %v1001_v28, %v1000_v23  ;;  %v1015_v37 = vmul.f32 %v999_v20, %v970_v2  ;;  %v1020_v39 = vmul.f32 %v993_v11, %v977_v4  ;;  %v1021_v40 = vmul.f32 %v995_v14, %v979_v3 }
  0x94   :  { %v974_v41 = vadd.f32 %v973_v5, %v972_v33  ;;  %v987_v42 = vadd.f32 %v986_v27, %v984_v34  ;;  %v1012_v38 = vadd.f32 %v1011_v32, %v1010_v31  ;;  %v1023_v43 = vmul.f32 %v997_v19, %v982_v10 }
  0x95   :  { %v1004_v44 = vadd.f32 %v1003_v29, %v1002_v36  ;;  %v1022_v46 = vadd.f32 %v1021_v40, %v1020_v39  ;;  %v1025_v47 = vmul.f32 %v999_v20, %v985_v21 }
  0x96   :  { %976 = vst [vmem:[#allocation9 + $0x56] sm:$0x3] %v974_v41  ;;  %v989_v48 = vadd.f32 %v988_v22, %v987_v42  ;;  %v1014_v49 = vadd.f32 %v1013_v35, %v1012_v38 }
  0x97   :  { %v1006_v50 = vadd.f32 %v1005_v30, %v1004_v44  ;;  %v1024_v51 = vadd.f32 %v1023_v43, %v1022_v46 }
  0x98   :  { %991 = vst [vmem:[#allocation9 + $0x58] sm:$0x3] %v989_v48  ;;  %v1016_v52 = vadd.f32 %v1015_v37, %v1014_v49 }
  0x99   :  { %v1007_v55 = vadd.f32 %v1006_v50, %v958_v60  ;;  %v1026_v53 = vadd.f32 %v1025_v47, %v1024_v51 }
  0x9a   :  { %v1017_v56 = vadd.f32 %v1016_v52, %v973_v5 }
  0x9b   :  { %1009 = vst [vmem:[#allocation9 + $0x5a] sm:$0x3] %v1007_v55  ;;  %v1027_v58 = vadd.f32 %v1026_v53, %v988_v22 }
  0x9c   :  { %1019 = vst [vmem:[#allocation9 + $0x5c] sm:$0x3] %v1017_v56 }
  0x9d   :  { %1029 = vst [vmem:[#allocation9 + $0x5e] sm:$0x3] %v1027_v58 }
  0x9e   :  { %1042 = dma.vmem_to_hbm [thread:$0]  %s1035_s6, 1536, %s1037_s9, [#allocation4], %s1256_s20, %s1256_s20, %s1257_s21  }
  0x9f   :  { %1253 = dma.done.wait [#allocation4], 1536  }
  0xa0   :  { %1254 = vsyncadd [#allocation4], 4294965760 }
  0xa1   :  { %1047 = vsyncpa [#allocation3], 1 }
  0xa2   :  { %1048 = vsyncpa [#allocation4], 1 }
  0xa3   :  { %1049 = vsyncpa [#allocation5], 1 }
  0xa4   :  { %1050 = vsyncpa [#allocation6], 1 }

</bundles_post_ra>
